<compile_context>
chip_gen: v7x
topology: tpu7x:2x2x1
jax: 0.10.0
libtpu: 0.0.40
codegen_flags: <defaults>
</compile_context>

<pallas_src>
import functools

import numpy as np
import jax
import jax.numpy as jnp
from jax.experimental import pallas as pl
from jax.experimental.pallas import tpu as pltpu

BOARD = 3
NTOK = BOARD * BOARD                    # 9 tokens (board cells)
EMB = 32
MLP_HIDDEN = 64
POL_HIDDEN = 64
VAL_HIDDEN = 32
HEAD_HIDDEN = POL_HIDDEN + VAL_HIDDEN   # 96 fused head hidden
FLAT = NTOK * EMB                       # 288
FEAT_W = 12                             # pos_i, pos_j, 3x3 patch, const 1
OUT_W = 128                             # lane-dense packed output width
VAL_COL = 9                             # value column in packed output

# Row layout of the single packed weight slab (all starts multiples of 8).
ROW_WCOMB = 0                            # (12, 128)  feat -> [tok | qkv]
ROW_WO = 16                              # (32, 32)   attention out proj
ROW_W1 = 48                              # (32, 64)   MLP layer 1
ROW_W2 = 80                              # (64, 32)   MLP layer 2
ROW_WH1 = 144                            # (288, 96)  fused head layer 1
ROW_WH2 = 432                            # (96, 128)  fused head layer 2
ROW_BIAS = 528                           # (16, 128)  bias / LayerNorm rows
SLAB_ROWS = 544


def _gelu_tanh(x):
    # TODO(synk): PyTorch nn.GELU defaults to the exact erf form; the tanh
    # approximation (max abs err ~1e-3, within the 1e-2 tolerance) is used so
    # we only rely on ops with guaranteed Mosaic lowering (tanh on the EUP).
    c = 0.7978845608028654  # sqrt(2/pi)
    return 0.5 * x * (1.0 + jnp.tanh(c * (x + 0.044715 * x * x * x)))


def _layernorm(x, g, b, eps=1e-5):
    mu = jnp.mean(x, axis=-1, keepdims=True)
    xc = x - mu
    var = jnp.mean(xc * xc, axis=-1, keepdims=True)
    return xc * jax.lax.rsqrt(var + eps) * g + b


# ---------------------------------------------------------------------------
# Pallas kernel: one batch tile (TB samples) of the whole forward pass
# ---------------------------------------------------------------------------
def ppo_agent_kernel(feat_ref, wslab_ref, out_ref, *, tb):
    f32 = jnp.float32

    # Bias / LayerNorm rows of the packed slab.
    bias = wslab_ref[ROW_BIAS:ROW_BIAS + 16, :]                 # (16, 128)
    bo = bias[0:1, 0:EMB]
    ln1g = bias[1:2, 0:EMB]
    ln1b = bias[2:3, 0:EMB]
    b1 = bias[3:4, 0:MLP_HIDDEN]
    b2 = bias[4:5, 0:EMB]
    ln2g = bias[5:6, 0:EMB]
    ln2b = bias[6:7, 0:EMB]
    bh1 = bias[7:8, 0:HEAD_HIDDEN]
    bh2 = bias[8:9, :]                                          # (1, 128)

    # Fused token + Q/K/V projection: one lane-dense (nt,12)x(12,128) matmul.
    # Conv bias and in_proj bias are folded via the constant-1 feature column.
    feat = feat_ref[...]                                        # (nt, 12)
    proj = jnp.dot(feat, wslab_ref[ROW_WCOMB:ROW_WCOMB + FEAT_W, :],
                   preferred_element_type=f32)                  # (nt, 128)
    tok = proj[:, 0:EMB]
    q = proj[:, EMB:2 * EMB]
    k = proj[:, 2 * EMB:3 * EMB]
    v = proj[:, 3 * EMB:4 * EMB]

    # Block-diagonal attention.  Rows are token-major (row = t*tb + b), so
    # each (tb,32) token slice holds the whole sample batch for that token.
    # Per-sample 9x9 attention = 81 VPU-mul + lane-reduce score vectors,
    # a 9-way elementwise softmax, and an elementwise p*v weighted sum —
    # no (9*tb)^2 masked matmuls, no mask fill, no S/P spill traffic.
    scale = 1.0 / float(np.sqrt(EMB))
    k_toks = [k[t * tb:(t + 1) * tb, :] for t in range(NTOK)]
    v_toks = [v[t * tb:(t + 1) * tb, :] for t in range(NTOK)]
    attn_toks = []
    for ti in range(NTOK):                                      # static unroll
        q_t = q[ti * tb:(ti + 1) * tb, :]                       # (tb, 32)
        s = [jnp.sum(q_t * k_toks[tj], axis=-1, keepdims=True) * scale
             for tj in range(NTOK)]                             # 9 x (tb, 1)
        m = s[0]
        for tj in range(1, NTOK):
            m = jnp.maximum(m, s[tj])
        denom = jnp.zeros((tb, 1), f32)
        acc = jnp.zeros((tb, EMB), f32)
        for tj in range(NTOK):
            p = jnp.exp(s[tj] - m)                              # (tb, 1)
            denom = denom + p
            acc = acc + p * v_toks[tj]
        attn_toks.append(acc * pl.reciprocal(denom, approx=True))  # EUP divide
    attn = jnp.concatenate(attn_toks, axis=0)                   # (nt, 32)
    attn = jnp.dot(attn, wslab_ref[ROW_WO:ROW_WO + EMB, 0:EMB],
                   preferred_element_type=f32) + bo

    # Residual + LayerNorm 1
    x1 = _layernorm(attn + tok, ln1g, ln1b)

    # MLP 32 -> 64 -> GELU -> 32
    h = jnp.dot(x1, wslab_ref[ROW_W1:ROW_W1 + EMB, 0:MLP_HIDDEN],
                preferred_element_type=f32) + b1
    h = _gelu_tanh(h)
    mlp = jnp.dot(h, wslab_ref[ROW_W2:ROW_W2 + MLP_HIDDEN, 0:EMB],
                  preferred_element_type=f32) + b2

    # Residual + LayerNorm 2
    x2 = _layernorm(mlp + x1, ln2g, ln2b)                       # (nt, 32)

    # Fused policy/value heads.  Per-sample flatten (t*32+c ordering) is
    # realised as 9 sublane-aligned (tb,32)x(32,96) dots against the fused
    # (288,96) first-layer weight; the second layer is one lane-dense (96,128)
    # matmul (policy -> cols 0..8, tanh'd value -> col 9).
    hid = jnp.zeros((tb, HEAD_HIDDEN), f32)
    for t in range(NTOK):                                       # static unroll
        xt = x2[t * tb:(t + 1) * tb, :]                         # (tb, 32)
        wt = wslab_ref[ROW_WH1 + t * EMB:ROW_WH1 + (t + 1) * EMB, 0:HEAD_HIDDEN]
        hid = hid + jnp.dot(xt, wt, preferred_element_type=f32)
    hid = jnp.maximum(hid + bh1, 0.0)                           # shared ReLU
    raw = jnp.dot(hid, wslab_ref[ROW_WH2:ROW_WH2 + HEAD_HIDDEN, :],
                  preferred_element_type=f32) + bh2             # (tb, 128)
    col = jax.lax.broadcasted_iota(jnp.int32, raw.shape, 1)
    out_ref[...] = jnp.where(col == VAL_COL, jnp.tanh(raw), raw)


# ---------------------------------------------------------------------------
# Parameter init (deterministic, synthetic; mirrors the PyTorch parameters)
# ---------------------------------------------------------------------------
def init_params(key):
    ks = jax.random.split(key, 18)

    def w(k, shape, scale=0.1):
        return jax.random.normal(k, shape, jnp.float32) * scale

    p = {}
    p['conv_w'] = w(ks[0], (30, 1, 3, 3))                 # nn.Conv2d(1, 30, 3)
    p['conv_b'] = w(ks[1], (30,), 0.05)
    p['in_proj_w'] = w(ks[2], (3 * EMB, EMB))             # MHA packed q,k,v
    p['in_proj_b'] = w(ks[3], (3 * EMB,), 0.05)
    p['out_proj_w'] = w(ks[4], (EMB, EMB))
    p['out_proj_b'] = w(ks[5], (EMB,), 0.05)
    p['ln1_g'] = jnp.ones((EMB,), jnp.float32)
    p['ln1_b'] = jnp.zeros((EMB,), jnp.float32)
    p['mlp_w1'] = w(ks[6], (MLP_HIDDEN, EMB))
    p['mlp_b1'] = w(ks[7], (MLP_HIDDEN,), 0.05)
    p['mlp_w2'] = w(ks[8], (EMB, MLP_HIDDEN))
    p['mlp_b2'] = w(ks[9], (EMB,), 0.05)
    p['ln2_g'] = jnp.ones((EMB,), jnp.float32)
    p['ln2_b'] = jnp.zeros((EMB,), jnp.float32)
    p['pol_w1'] = w(ks[10], (POL_HIDDEN, FLAT))
    p['pol_b1'] = w(ks[11], (POL_HIDDEN,), 0.05)
    p['pol_w2'] = w(ks[12], (NTOK, POL_HIDDEN))
    p['pol_b2'] = w(ks[13], (NTOK,), 0.05)
    p['val_w1'] = w(ks[14], (VAL_HIDDEN, FLAT))
    p['val_b1'] = w(ks[15], (VAL_HIDDEN,), 0.05)
    p['val_w2'] = w(ks[16], (1, VAL_HIDDEN))
    p['val_b2'] = w(ks[17], (1,), 0.05)
    return p


def _position_rows():
    pos = np.zeros((NTOK, 2), np.float32)
    for i in range(BOARD):
        for j in range(BOARD):
            pos[i * BOARD + j] = (i / 10.0, j / 10.0)
    return pos


def _choose_tb(batch):
    """Any multiple of 8 samples.  Single tile for small batches; >=2 tiles
    once the batch exceeds 128 (v7x megacore sharding), tile rows capped at
    256 so live f32 intermediates stay well inside v5e's 16 MiB scoped VMEM
    default (no vmem_limit override needed on any generation)."""
    b8 = max(8, ((batch + 7) // 8) * 8)
    if b8 <= 128:
        return b8
    tiles = max(2, (b8 + 255) // 256)
    return (((b8 + tiles - 1) // tiles) + 7) // 8 * 8


def _build_feat(x, tb):
    """x: (B,3,3) f32 -> (G*9*TB, 12) tile-major, token-major-within-tile rows
    [pos_i, pos_j, 3x3 zero-padded patch, 1.0]."""
    B = x.shape[0]
    G = pl.cdiv(B, tb)
    B_pad = G * tb
    x = x.reshape(B, BOARD, BOARD).astype(jnp.float32)
    if B_pad > B:
        x = jnp.pad(x, ((0, B_pad - B), (0, 0), (0, 0)))
    xpad = jnp.pad(x, ((0, 0), (1, 1), (1, 1)))
    patches = [xpad[:, i:i + BOARD, j:j + BOARD].reshape(B_pad, 9)
               for i in range(BOARD) for j in range(BOARD)]
    patches = jnp.stack(patches, axis=0)                        # (9, Bp, 9)
    posb = jnp.broadcast_to(jnp.asarray(_position_rows())[:, None, :],
                            (NTOK, B_pad, 2))
    ones = jnp.ones((NTOK, B_pad, 1), jnp.float32)
    feat = jnp.concatenate([posb, patches, ones], axis=-1)      # (9, Bp, 12)
    feat = feat.reshape(NTOK, G, tb, FEAT_W).transpose(1, 0, 2, 3)
    return feat.reshape(G * NTOK * tb, FEAT_W), G, B_pad


def _pack_params(params):
    """Fuse / pack all 20+ small parameters into ONE (544,128) lane-dense slab."""
    # Token projection: positions pass-through, conv as matmul, bias via ones.
    wtok = jnp.zeros((FEAT_W, EMB), jnp.float32)
    wtok = wtok.at[0, 0].set(1.0).at[1, 1].set(1.0)
    wtok = wtok.at[2:11, 2:].set(params['conv_w'].reshape(30, 9).T)
    wtok = wtok.at[11, 2:].set(params['conv_b'])

    # Fold token projection into QKV: [wtok | wtok @ wqkv], qkv bias on the
    # constant-1 row.
    wqkv = params['in_proj_w'].T                                # (32, 96)
    wcomb = jnp.zeros((FEAT_W, 128), jnp.float32)
    wcomb = wcomb.at[:, 0:EMB].set(wtok)
    wcomb = wcomb.at[:, EMB:128].set(wtok @ wqkv)
    wcomb = wcomb.at[11, EMB:128].add(params['in_proj_b'])

    wo = params['out_proj_w'].T                                 # (32, 32)
    w1 = params['mlp_w1'].T                                     # (32, 64)
    w2 = params['mlp_w2'].T                                     # (64, 32)

    # Fused head layer 1: (288, 96) = [pol_w1.T | val_w1.T]
    wh1 = jnp.concatenate([params['pol_w1'].T, params['val_w1'].T], axis=1)
    # Fused head layer 2: (96, 128) lane-dense; policy cols 0..8, value col 9.
    wh2 = jnp.zeros((HEAD_HIDDEN, OUT_W), jnp.float32)
    wh2 = wh2.at[0:POL_HIDDEN, 0:NTOK].set(params['pol_w2'].T)
    wh2 = wh2.at[POL_HIDDEN:, VAL_COL].set(params['val_w2'][0])

    bh2 = jnp.zeros((OUT_W,), jnp.float32)
    bh2 = bh2.at[0:NTOK].set(params['pol_b2']).at[VAL_COL].set(params['val_b2'][0])

    slab = jnp.zeros((SLAB_ROWS, 128), jnp.float32)
    slab = slab.at[ROW_WCOMB:ROW_WCOMB + FEAT_W, :].set(wcomb)
    slab = slab.at[ROW_WO:ROW_WO + EMB, 0:EMB].set(wo)
    slab = slab.at[ROW_W1:ROW_W1 + EMB, 0:MLP_HIDDEN].set(w1)
    slab = slab.at[ROW_W2:ROW_W2 + MLP_HIDDEN, 0:EMB].set(w2)
    slab = slab.at[ROW_WH1:ROW_WH1 + FLAT, 0:HEAD_HIDDEN].set(wh1)
    slab = slab.at[ROW_WH2:ROW_WH2 + HEAD_HIDDEN, :].set(wh2)
    b = ROW_BIAS
    slab = slab.at[b + 0, 0:EMB].set(params['out_proj_b'])
    slab = slab.at[b + 1, 0:EMB].set(params['ln1_g'])
    slab = slab.at[b + 2, 0:EMB].set(params['ln1_b'])
    slab = slab.at[b + 3, 0:MLP_HIDDEN].set(params['mlp_b1'])
    slab = slab.at[b + 4, 0:EMB].set(params['mlp_b2'])
    slab = slab.at[b + 5, 0:EMB].set(params['ln2_g'])
    slab = slab.at[b + 6, 0:EMB].set(params['ln2_b'])
    slab = slab.at[b + 7, 0:HEAD_HIDDEN].set(
        jnp.concatenate([params['pol_b1'], params['val_b1']]))
    slab = slab.at[b + 8, :].set(bh2)
    return slab


def ppo_agent_forward(x, params, tb=None):
    B = x.shape[0]
    tb = _choose_tb(B) if tb is None else tb
    assert tb % 8 == 0 and tb > 0, "tile must be a positive multiple of 8"
    feat, G, B_pad = _build_feat(x, tb)
    slab = _pack_params(params)

    feat_spec = pl.BlockSpec((NTOK * tb, FEAT_W), lambda i: (i, 0))
    slab_spec = pl.BlockSpec((SLAB_ROWS, 128), lambda i: (0, 0))
    out_spec = pl.BlockSpec((tb, OUT_W), lambda i: (i, 0))

    # Advisory cost estimate so XLA can schedule the im2col / split around it.
    nrows = B_pad * NTOK
    flops = 2 * (nrows * FEAT_W * 128            # fused tok+qkv projection
                 + 2 * nrows * NTOK * EMB        # block-diagonal attention
                 + nrows * EMB * EMB             # attention out proj
                 + 2 * nrows * EMB * MLP_HIDDEN  # MLP
                 + nrows * EMB * HEAD_HIDDEN     # fused head layer 1
                 + B_pad * HEAD_HIDDEN * OUT_W)  # fused head layer 2
    transcendentals = (nrows * NTOK + nrows * MLP_HIDDEN + 3 * nrows
                       + B_pad * OUT_W)
    bytes_accessed = 4 * (int(feat.size) + int(slab.size) + B_pad * OUT_W)

    fn = pl.pallas_call(
        functools.partial(ppo_agent_kernel, tb=tb),
        out_shape=jax.ShapeDtypeStruct((B_pad, OUT_W), jnp.float32),
        grid=(G,),
        in_specs=[feat_spec, slab_spec],
        out_specs=out_spec,
        compiler_params=pltpu.CompilerParams(
            dimension_semantics=("parallel",)),
        cost_estimate=pl.CostEstimate(flops=flops,
                                      transcendentals=transcendentals,
                                      bytes_accessed=bytes_accessed),
    )
    out = fn(feat, slab)
    return out[:B, 0:NTOK], out[:B, VAL_COL:VAL_COL + 1]


# ---------------------------------------------------------------------------
# Pure-JAX reference (mirrors the PyTorch forward, exact erf GELU)
# ---------------------------------------------------------------------------
def reference_forward(x, p):
    B = x.shape[0]
    xi = x.reshape(B, 1, BOARD, BOARD).astype(jnp.float32)
    conv = jax.lax.conv_general_dilated(
        xi, p['conv_w'], window_strides=(1, 1), padding='SAME',
        dimension_numbers=('NCHW', 'OIHW', 'NCHW'))
    conv = conv + p['conv_b'].reshape(1, 30, 1, 1)
    pos = jnp.asarray(_position_rows()).T.reshape(1, 2, BOARD, BOARD)
    xc = jnp.concatenate(
        [jnp.broadcast_to(pos, (B, 2, BOARD, BOARD)), conv], axis=1)
    tok = xc.reshape(B, EMB, NTOK).transpose(0, 2, 1)           # (B,9,32)

    ipw, ipb = p['in_proj_w'], p['in_proj_b']
    q = tok @ ipw[0:EMB].T + ipb[0:EMB]
    k = tok @ ipw[EMB:2 * EMB].T + ipb[EMB:2 * EMB]
    v = tok @ ipw[2 * EMB:].T + ipb[2 * EMB:]
    s = jnp.einsum('bqd,bkd->bqk', q, k) / np.sqrt(EMB)
    a = jax.nn.softmax(s, axis=-1)
    o = jnp.einsum('bqk,bkd->bqd', a, v) @ p['out_proj_w'].T + p['out_proj_b']

    def ln(z, g, b):
        mu = z.mean(-1, keepdims=True)
        var = ((z - mu) ** 2).mean(-1, keepdims=True)
        return (z - mu) / jnp.sqrt(var + 1e-5) * g + b

    x1 = ln(o + tok, p['ln1_g'], p['ln1_b'])
    h = jax.nn.gelu(x1 @ p['mlp_w1'].T + p['mlp_b1'], approximate=False)
    m = h @ p['mlp_w2'].T + p['mlp_b2']
    x2 = ln(m + x1, p['ln2_g'], p['ln2_b'])
    flat = x2.reshape(B, FLAT)
    ph = jnp.maximum(flat @ p['pol_w1'].T + p['pol_b1'], 0.0)
    policy = ph @ p['pol_w2'].T + p['pol_b2']
    vh = jnp.maximum(flat @ p['val_w1'].T + p['val_b1'], 0.0)
    value = jnp.tanh(vh @ p['val_w2'].T + p['val_b2'])
    return policy, value


if __name__ == "__main__":
    key = jax.random.PRNGKey(0)
    pkey, xkey = jax.random.split(key)
    params = init_params(pkey)

    x = jax.random.normal(xkey, (2, BOARD, BOARD), jnp.float32)  # batch of boards

    policy, value = ppo_agent_forward(x, params)
    jax.block_until_ready((policy, value))

    ref_p, ref_v = reference_forward(x, params)
    assert policy.shape == (2, NTOK) and value.shape == (2, 1)
    assert np.allclose(np.asarray(policy), np.asarray(ref_p), atol=1e-2, rtol=1e-2)
    assert np.allclose(np.asarray(value), np.asarray(ref_v), atol=1e-2, rtol=1e-2)
    print("KERNEL_OK")
</pallas_src>

<mosaic_0001>
module attributes {stable_mosaic.version = 11 : i64} {
  func.func @ppo_agent_kernel(%arg0: i32, %arg1: memref<72x12xf32, #tpu.memory_space<vmem>>, %arg2: memref<544x128xf32, #tpu.memory_space<vmem>>, %arg3: memref<8x128xf32, #tpu.memory_space<vmem>>) attributes {dimension_semantics = [#tpu.dimension_semantics<parallel>], iteration_bounds = array<i64: 1>, scalar_prefetch = 0 : i64, scratch_operands = 0 : i64, tpu.core_type = #tpu.core_type<tc>, window_params = [{transform_indices = @transform_0, window_bounds = array<i64: 72, 12>}, {pipeline_mode = #tpu.pipeline_mode<synchronous>, transform_indices = @transform_1, window_bounds = array<i64: 544, 128>}, {transform_indices = @transform_2, window_bounds = array<i64: 8, 128>}]} {
    %c528 = arith.constant 528 : index
    %c0 = arith.constant 0 : index
    %0 = vector.load %arg2[%c528, %c0] : memref<544x128xf32, #tpu.memory_space<vmem>>, vector<16x128xf32>
    %1 = vector.extract_strided_slice %0 {offsets = [0, 0], sizes = [1, 32], strides = [1, 1]} : vector<16x128xf32> to vector<1x32xf32>
    %2 = vector.extract_strided_slice %0 {offsets = [1, 0], sizes = [1, 32], strides = [1, 1]} : vector<16x128xf32> to vector<1x32xf32>
    %3 = vector.extract_strided_slice %0 {offsets = [2, 0], sizes = [1, 32], strides = [1, 1]} : vector<16x128xf32> to vector<1x32xf32>
    %4 = vector.extract_strided_slice %0 {offsets = [3, 0], sizes = [1, 64], strides = [1, 1]} : vector<16x128xf32> to vector<1x64xf32>
    %5 = vector.extract_strided_slice %0 {offsets = [4, 0], sizes = [1, 32], strides = [1, 1]} : vector<16x128xf32> to vector<1x32xf32>
    %6 = vector.extract_strided_slice %0 {offsets = [5, 0], sizes = [1, 32], strides = [1, 1]} : vector<16x128xf32> to vector<1x32xf32>
    %7 = vector.extract_strided_slice %0 {offsets = [6, 0], sizes = [1, 32], strides = [1, 1]} : vector<16x128xf32> to vector<1x32xf32>
    %8 = vector.extract_strided_slice %0 {offsets = [7, 0], sizes = [1, 96], strides = [1, 1]} : vector<16x128xf32> to vector<1x96xf32>
    %9 = vector.extract_strided_slice %0 {offsets = [8, 0], sizes = [1, 128], strides = [1, 1]} : vector<16x128xf32> to vector<1x128xf32>
    %c0_0 = arith.constant 0 : index
    %c0_1 = arith.constant 0 : index
    %10 = vector.load %arg1[%c0_0, %c0_1] : memref<72x12xf32, #tpu.memory_space<vmem>>, vector<72x12xf32>
    %c0_2 = arith.constant 0 : index
    %c0_3 = arith.constant 0 : index
    %11 = vector.load %arg2[%c0_2, %c0_3] : memref<544x128xf32, #tpu.memory_space<vmem>>, vector<12x128xf32>
    %cst = arith.constant dense<0.000000e+00> : vector<72x128xf32>
    %12 = tpu.matmul %10, %11, %cst {dimension_numbers = #tpu.dot_dimension_numbers<[1], [0], [0], [1], [0, 0, 1, 1], [], []>} : vector<72x12xf32>, vector<12x128xf32>, vector<72x128xf32> -> vector<72x128xf32>
    %13 = vector.extract_strided_slice %12 {offsets = [0, 0], sizes = [72, 32], strides = [1, 1]} : vector<72x128xf32> to vector<72x32xf32>
    %14 = vector.extract_strided_slice %12 {offsets = [0, 32], sizes = [72, 32], strides = [1, 1]} : vector<72x128xf32> to vector<72x32xf32>
    %15 = vector.extract_strided_slice %12 {offsets = [0, 64], sizes = [72, 32], strides = [1, 1]} : vector<72x128xf32> to vector<72x32xf32>
    %16 = vector.extract_strided_slice %12 {offsets = [0, 96], sizes = [72, 32], strides = [1, 1]} : vector<72x128xf32> to vector<72x32xf32>
    %17 = vector.extract_strided_slice %15 {offsets = [0, 0], sizes = [8, 32], strides = [1, 1]} : vector<72x32xf32> to vector<8x32xf32>
    %18 = vector.extract_strided_slice %15 {offsets = [8, 0], sizes = [8, 32], strides = [1, 1]} : vector<72x32xf32> to vector<8x32xf32>
    %19 = vector.extract_strided_slice %15 {offsets = [16, 0], sizes = [8, 32], strides = [1, 1]} : vector<72x32xf32> to vector<8x32xf32>
    %20 = vector.extract_strided_slice %15 {offsets = [24, 0], sizes = [8, 32], strides = [1, 1]} : vector<72x32xf32> to vector<8x32xf32>
    %21 = vector.extract_strided_slice %15 {offsets = [32, 0], sizes = [8, 32], strides = [1, 1]} : vector<72x32xf32> to vector<8x32xf32>
    %22 = vector.extract_strided_slice %15 {offsets = [40, 0], sizes = [8, 32], strides = [1, 1]} : vector<72x32xf32> to vector<8x32xf32>
    %23 = vector.extract_strided_slice %15 {offsets = [48, 0], sizes = [8, 32], strides = [1, 1]} : vector<72x32xf32> to vector<8x32xf32>
    %24 = vector.extract_strided_slice %15 {offsets = [56, 0], sizes = [8, 32], strides = [1, 1]} : vector<72x32xf32> to vector<8x32xf32>
    %25 = vector.extract_strided_slice %15 {offsets = [64, 0], sizes = [8, 32], strides = [1, 1]} : vector<72x32xf32> to vector<8x32xf32>
    %26 = vector.extract_strided_slice %16 {offsets = [0, 0], sizes = [8, 32], strides = [1, 1]} : vector<72x32xf32> to vector<8x32xf32>
    %27 = vector.extract_strided_slice %16 {offsets = [8, 0], sizes = [8, 32], strides = [1, 1]} : vector<72x32xf32> to vector<8x32xf32>
    %28 = vector.extract_strided_slice %16 {offsets = [16, 0], sizes = [8, 32], strides = [1, 1]} : vector<72x32xf32> to vector<8x32xf32>
    %29 = vector.extract_strided_slice %16 {offsets = [24, 0], sizes = [8, 32], strides = [1, 1]} : vector<72x32xf32> to vector<8x32xf32>
    %30 = vector.extract_strided_slice %16 {offsets = [32, 0], sizes = [8, 32], strides = [1, 1]} : vector<72x32xf32> to vector<8x32xf32>
    %31 = vector.extract_strided_slice %16 {offsets = [40, 0], sizes = [8, 32], strides = [1, 1]} : vector<72x32xf32> to vector<8x32xf32>
    %32 = vector.extract_strided_slice %16 {offsets = [48, 0], sizes = [8, 32], strides = [1, 1]} : vector<72x32xf32> to vector<8x32xf32>
    %33 = vector.extract_strided_slice %16 {offsets = [56, 0], sizes = [8, 32], strides = [1, 1]} : vector<72x32xf32> to vector<8x32xf32>
    %34 = vector.extract_strided_slice %16 {offsets = [64, 0], sizes = [8, 32], strides = [1, 1]} : vector<72x32xf32> to vector<8x32xf32>
    %35 = vector.extract_strided_slice %14 {offsets = [0, 0], sizes = [8, 32], strides = [1, 1]} : vector<72x32xf32> to vector<8x32xf32>
    %36 = arith.mulf %35, %17 : vector<8x32xf32>
    %cst_4 = arith.constant dense<0.000000e+00> : vector<8xf32>
    %37 = vector.multi_reduction <add>, %36, %cst_4 [1] : vector<8x32xf32> to vector<8xf32>
    %38 = vector.shape_cast %37 : vector<8xf32> to vector<8x1xf32>
    %cst_5 = arith.constant 0.176776692 : f32
    %39 = vector.broadcast %cst_5 : f32 to vector<8x1xf32>
    %40 = arith.mulf %38, %39 : vector<8x1xf32>
    %41 = arith.mulf %35, %18 : vector<8x32xf32>
    %cst_6 = arith.constant dense<0.000000e+00> : vector<8xf32>
    %42 = vector.multi_reduction <add>, %41, %cst_6 [1] : vector<8x32xf32> to vector<8xf32>
    %43 = vector.shape_cast %42 : vector<8xf32> to vector<8x1xf32>
    %cst_7 = arith.constant 0.176776692 : f32
    %44 = vector.broadcast %cst_7 : f32 to vector<8x1xf32>
    %45 = arith.mulf %43, %44 : vector<8x1xf32>
    %46 = arith.mulf %35, %19 : vector<8x32xf32>
    %cst_8 = arith.constant dense<0.000000e+00> : vector<8xf32>
    %47 = vector.multi_reduction <add>, %46, %cst_8 [1] : vector<8x32xf32> to vector<8xf32>
    %48 = vector.shape_cast %47 : vector<8xf32> to vector<8x1xf32>
    %cst_9 = arith.constant 0.176776692 : f32
    %49 = vector.broadcast %cst_9 : f32 to vector<8x1xf32>
    %50 = arith.mulf %48, %49 : vector<8x1xf32>
    %51 = arith.mulf %35, %20 : vector<8x32xf32>
    %cst_10 = arith.constant dense<0.000000e+00> : vector<8xf32>
    %52 = vector.multi_reduction <add>, %51, %cst_10 [1] : vector<8x32xf32> to vector<8xf32>
    %53 = vector.shape_cast %52 : vector<8xf32> to vector<8x1xf32>
    %cst_11 = arith.constant 0.176776692 : f32
    %54 = vector.broadcast %cst_11 : f32 to vector<8x1xf32>
    %55 = arith.mulf %53, %54 : vector<8x1xf32>
    %56 = arith.mulf %35, %21 : vector<8x32xf32>
    %cst_12 = arith.constant dense<0.000000e+00> : vector<8xf32>
    %57 = vector.multi_reduction <add>, %56, %cst_12 [1] : vector<8x32xf32> to vector<8xf32>
    %58 = vector.shape_cast %57 : vector<8xf32> to vector<8x1xf32>
    %cst_13 = arith.constant 0.176776692 : f32
    %59 = vector.broadcast %cst_13 : f32 to vector<8x1xf32>
    %60 = arith.mulf %58, %59 : vector<8x1xf32>
    %61 = arith.mulf %35, %22 : vector<8x32xf32>
    %cst_14 = arith.constant dense<0.000000e+00> : vector<8xf32>
    %62 = vector.multi_reduction <add>, %61, %cst_14 [1] : vector<8x32xf32> to vector<8xf32>
    %63 = vector.shape_cast %62 : vector<8xf32> to vector<8x1xf32>
    %cst_15 = arith.constant 0.176776692 : f32
    %64 = vector.broadcast %cst_15 : f32 to vector<8x1xf32>
    %65 = arith.mulf %63, %64 : vector<8x1xf32>
    %66 = arith.mulf %35, %23 : vector<8x32xf32>
    %cst_16 = arith.constant dense<0.000000e+00> : vector<8xf32>
    %67 = vector.multi_reduction <add>, %66, %cst_16 [1] : vector<8x32xf32> to vector<8xf32>
    %68 = vector.shape_cast %67 : vector<8xf32> to vector<8x1xf32>
    %cst_17 = arith.constant 0.176776692 : f32
    %69 = vector.broadcast %cst_17 : f32 to vector<8x1xf32>
    %70 = arith.mulf %68, %69 : vector<8x1xf32>
    %71 = arith.mulf %35, %24 : vector<8x32xf32>
    %cst_18 = arith.constant dense<0.000000e+00> : vector<8xf32>
    %72 = vector.multi_reduction <add>, %71, %cst_18 [1] : vector<8x32xf32> to vector<8xf32>
    %73 = vector.shape_cast %72 : vector<8xf32> to vector<8x1xf32>
    %cst_19 = arith.constant 0.176776692 : f32
    %74 = vector.broadcast %cst_19 : f32 to vector<8x1xf32>
    %75 = arith.mulf %73, %74 : vector<8x1xf32>
    %76 = arith.mulf %35, %25 : vector<8x32xf32>
    %cst_20 = arith.constant dense<0.000000e+00> : vector<8xf32>
    %77 = vector.multi_reduction <add>, %76, %cst_20 [1] : vector<8x32xf32> to vector<8xf32>
    %78 = vector.shape_cast %77 : vector<8xf32> to vector<8x1xf32>
    %cst_21 = arith.constant 0.176776692 : f32
    %79 = vector.broadcast %cst_21 : f32 to vector<8x1xf32>
    %80 = arith.mulf %78, %79 : vector<8x1xf32>
    %81 = arith.maximumf %40, %45 : vector<8x1xf32>
    %82 = arith.maximumf %81, %50 : vector<8x1xf32>
    %83 = arith.maximumf %82, %55 : vector<8x1xf32>
    %84 = arith.maximumf %83, %60 : vector<8x1xf32>
    %85 = arith.maximumf %84, %65 : vector<8x1xf32>
    %86 = arith.maximumf %85, %70 : vector<8x1xf32>
    %87 = arith.maximumf %86, %75 : vector<8x1xf32>
    %88 = arith.maximumf %87, %80 : vector<8x1xf32>
    %cst_22 = arith.constant 0.000000e+00 : f32
    %89 = vector.broadcast %cst_22 : f32 to vector<8x1xf32>
    %cst_23 = arith.constant 0.000000e+00 : f32
    %90 = vector.broadcast %cst_23 : f32 to vector<8x32xf32>
    %91 = arith.subf %40, %88 : vector<8x1xf32>
    %92 = math.exp %91 : vector<8x1xf32>
    %93 = arith.addf %89, %92 : vector<8x1xf32>
    %94 = vector.broadcast %92 : vector<8x1xf32> to vector<8x32xf32>
    %95 = arith.mulf %94, %26 : vector<8x32xf32>
    %96 = arith.addf %90, %95 : vector<8x32xf32>
    %97 = arith.subf %45, %88 : vector<8x1xf32>
    %98 = math.exp %97 : vector<8x1xf32>
    %99 = arith.addf %93, %98 : vector<8x1xf32>
    %100 = vector.broadcast %98 : vector<8x1xf32> to vector<8x32xf32>
    %101 = arith.mulf %100, %27 : vector<8x32xf32>
    %102 = arith.addf %96, %101 : vector<8x32xf32>
    %103 = arith.subf %50, %88 : vector<8x1xf32>
    %104 = math.exp %103 : vector<8x1xf32>
    %105 = arith.addf %99, %104 : vector<8x1xf32>
    %106 = vector.broadcast %104 : vector<8x1xf32> to vector<8x32xf32>
    %107 = arith.mulf %106, %28 : vector<8x32xf32>
    %108 = arith.addf %102, %107 : vector<8x32xf32>
    %109 = arith.subf %55, %88 : vector<8x1xf32>
    %110 = math.exp %109 : vector<8x1xf32>
    %111 = arith.addf %105, %110 : vector<8x1xf32>
    %112 = vector.broadcast %110 : vector<8x1xf32> to vector<8x32xf32>
    %113 = arith.mulf %112, %29 : vector<8x32xf32>
    %114 = arith.addf %108, %113 : vector<8x32xf32>
    %115 = arith.subf %60, %88 : vector<8x1xf32>
    %116 = math.exp %115 : vector<8x1xf32>
    %117 = arith.addf %111, %116 : vector<8x1xf32>
    %118 = vector.broadcast %116 : vector<8x1xf32> to vector<8x32xf32>
    %119 = arith.mulf %118, %30 : vector<8x32xf32>
    %120 = arith.addf %114, %119 : vector<8x32xf32>
    %121 = arith.subf %65, %88 : vector<8x1xf32>
    %122 = math.exp %121 : vector<8x1xf32>
    %123 = arith.addf %117, %122 : vector<8x1xf32>
    %124 = vector.broadcast %122 : vector<8x1xf32> to vector<8x32xf32>
    %125 = arith.mulf %124, %31 : vector<8x32xf32>
    %126 = arith.addf %120, %125 : vector<8x32xf32>
    %127 = arith.subf %70, %88 : vector<8x1xf32>
    %128 = math.exp %127 : vector<8x1xf32>
    %129 = arith.addf %123, %128 : vector<8x1xf32>
    %130 = vector.broadcast %128 : vector<8x1xf32> to vector<8x32xf32>
    %131 = arith.mulf %130, %32 : vector<8x32xf32>
    %132 = arith.addf %126, %131 : vector<8x32xf32>
    %133 = arith.subf %75, %88 : vector<8x1xf32>
    %134 = math.exp %133 : vector<8x1xf32>
    %135 = arith.addf %129, %134 : vector<8x1xf32>
    %136 = vector.broadcast %134 : vector<8x1xf32> to vector<8x32xf32>
    %137 = arith.mulf %136, %33 : vector<8x32xf32>
    %138 = arith.addf %132, %137 : vector<8x32xf32>
    %139 = arith.subf %80, %88 : vector<8x1xf32>
    %140 = math.exp %139 : vector<8x1xf32>
    %141 = arith.addf %135, %140 : vector<8x1xf32>
    %142 = vector.broadcast %140 : vector<8x1xf32> to vector<8x32xf32>
    %143 = arith.mulf %142, %34 : vector<8x32xf32>
    %144 = arith.addf %138, %143 : vector<8x32xf32>
    %145 = tpu.reciprocal %141 {approx = true} : vector<8x1xf32> -> vector<8x1xf32>
    %146 = vector.broadcast %145 : vector<8x1xf32> to vector<8x32xf32>
    %147 = arith.mulf %144, %146 : vector<8x32xf32>
    %148 = vector.extract_strided_slice %14 {offsets = [8, 0], sizes = [8, 32], strides = [1, 1]} : vector<72x32xf32> to vector<8x32xf32>
    %149 = arith.mulf %148, %17 : vector<8x32xf32>
    %cst_24 = arith.constant dense<0.000000e+00> : vector<8xf32>
    %150 = vector.multi_reduction <add>, %149, %cst_24 [1] : vector<8x32xf32> to vector<8xf32>
    %151 = vector.shape_cast %150 : vector<8xf32> to vector<8x1xf32>
    %cst_25 = arith.constant 0.176776692 : f32
    %152 = vector.broadcast %cst_25 : f32 to vector<8x1xf32>
    %153 = arith.mulf %151, %152 : vector<8x1xf32>
    %154 = arith.mulf %148, %18 : vector<8x32xf32>
    %cst_26 = arith.constant dense<0.000000e+00> : vector<8xf32>
    %155 = vector.multi_reduction <add>, %154, %cst_26 [1] : vector<8x32xf32> to vector<8xf32>
    %156 = vector.shape_cast %155 : vector<8xf32> to vector<8x1xf32>
    %cst_27 = arith.constant 0.176776692 : f32
    %157 = vector.broadcast %cst_27 : f32 to vector<8x1xf32>
    %158 = arith.mulf %156, %157 : vector<8x1xf32>
    %159 = arith.mulf %148, %19 : vector<8x32xf32>
    %cst_28 = arith.constant dense<0.000000e+00> : vector<8xf32>
    %160 = vector.multi_reduction <add>, %159, %cst_28 [1] : vector<8x32xf32> to vector<8xf32>
    %161 = vector.shape_cast %160 : vector<8xf32> to vector<8x1xf32>
    %cst_29 = arith.constant 0.176776692 : f32
    %162 = vector.broadcast %cst_29 : f32 to vector<8x1xf32>
    %163 = arith.mulf %161, %162 : vector<8x1xf32>
    %164 = arith.mulf %148, %20 : vector<8x32xf32>
    %cst_30 = arith.constant dense<0.000000e+00> : vector<8xf32>
    %165 = vector.multi_reduction <add>, %164, %cst_30 [1] : vector<8x32xf32> to vector<8xf32>
    %166 = vector.shape_cast %165 : vector<8xf32> to vector<8x1xf32>
    %cst_31 = arith.constant 0.176776692 : f32
    %167 = vector.broadcast %cst_31 : f32 to vector<8x1xf32>
    %168 = arith.mulf %166, %167 : vector<8x1xf32>
    %169 = arith.mulf %148, %21 : vector<8x32xf32>
    %cst_32 = arith.constant dense<0.000000e+00> : vector<8xf32>
    %170 = vector.multi_reduction <add>, %169, %cst_32 [1] : vector<8x32xf32> to vector<8xf32>
    %171 = vector.shape_cast %170 : vector<8xf32> to vector<8x1xf32>
    %cst_33 = arith.constant 0.176776692 : f32
    %172 = vector.broadcast %cst_33 : f32 to vector<8x1xf32>
    %173 = arith.mulf %171, %172 : vector<8x1xf32>
    %174 = arith.mulf %148, %22 : vector<8x32xf32>
    %cst_34 = arith.constant dense<0.000000e+00> : vector<8xf32>
    %175 = vector.multi_reduction <add>, %174, %cst_34 [1] : vector<8x32xf32> to vector<8xf32>
    %176 = vector.shape_cast %175 : vector<8xf32> to vector<8x1xf32>
    %cst_35 = arith.constant 0.176776692 : f32
    %177 = vector.broadcast %cst_35 : f32 to vector<8x1xf32>
    %178 = arith.mulf %176, %177 : vector<8x1xf32>
    %179 = arith.mulf %148, %23 : vector<8x32xf32>
    %cst_36 = arith.constant dense<0.000000e+00> : vector<8xf32>
    %180 = vector.multi_reduction <add>, %179, %cst_36 [1] : vector<8x32xf32> to vector<8xf32>
    %181 = vector.shape_cast %180 : vector<8xf32> to vector<8x1xf32>
    %cst_37 = arith.constant 0.176776692 : f32
    %182 = vector.broadcast %cst_37 : f32 to vector<8x1xf32>
    %183 = arith.mulf %181, %182 : vector<8x1xf32>
    %184 = arith.mulf %148, %24 : vector<8x32xf32>
    %cst_38 = arith.constant dense<0.000000e+00> : vector<8xf32>
    %185 = vector.multi_reduction <add>, %184, %cst_38 [1] : vector<8x32xf32> to vector<8xf32>
    %186 = vector.shape_cast %185 : vector<8xf32> to vector<8x1xf32>
    %cst_39 = arith.constant 0.176776692 : f32
    %187 = vector.broadcast %cst_39 : f32 to vector<8x1xf32>
    %188 = arith.mulf %186, %187 : vector<8x1xf32>
    %189 = arith.mulf %148, %25 : vector<8x32xf32>
    %cst_40 = arith.constant dense<0.000000e+00> : vector<8xf32>
    %190 = vector.multi_reduction <add>, %189, %cst_40 [1] : vector<8x32xf32> to vector<8xf32>
    %191 = vector.shape_cast %190 : vector<8xf32> to vector<8x1xf32>
    %cst_41 = arith.constant 0.176776692 : f32
    %192 = vector.broadcast %cst_41 : f32 to vector<8x1xf32>
    %193 = arith.mulf %191, %192 : vector<8x1xf32>
    %194 = arith.maximumf %153, %158 : vector<8x1xf32>
    %195 = arith.maximumf %194, %163 : vector<8x1xf32>
    %196 = arith.maximumf %195, %168 : vector<8x1xf32>
    %197 = arith.maximumf %196, %173 : vector<8x1xf32>
    %198 = arith.maximumf %197, %178 : vector<8x1xf32>
    %199 = arith.maximumf %198, %183 : vector<8x1xf32>
    %200 = arith.maximumf %199, %188 : vector<8x1xf32>
    %201 = arith.maximumf %200, %193 : vector<8x1xf32>
    %cst_42 = arith.constant 0.000000e+00 : f32
    %202 = vector.broadcast %cst_42 : f32 to vector<8x1xf32>
    %cst_43 = arith.constant 0.000000e+00 : f32
    %203 = vector.broadcast %cst_43 : f32 to vector<8x32xf32>
    %204 = arith.subf %153, %201 : vector<8x1xf32>
    %205 = math.exp %204 : vector<8x1xf32>
    %206 = arith.addf %202, %205 : vector<8x1xf32>
    %207 = vector.broadcast %205 : vector<8x1xf32> to vector<8x32xf32>
    %208 = arith.mulf %207, %26 : vector<8x32xf32>
    %209 = arith.addf %203, %208 : vector<8x32xf32>
    %210 = arith.subf %158, %201 : vector<8x1xf32>
    %211 = math.exp %210 : vector<8x1xf32>
    %212 = arith.addf %206, %211 : vector<8x1xf32>
    %213 = vector.broadcast %211 : vector<8x1xf32> to vector<8x32xf32>
    %214 = arith.mulf %213, %27 : vector<8x32xf32>
    %215 = arith.addf %209, %214 : vector<8x32xf32>
    %216 = arith.subf %163, %201 : vector<8x1xf32>
    %217 = math.exp %216 : vector<8x1xf32>
    %218 = arith.addf %212, %217 : vector<8x1xf32>
    %219 = vector.broadcast %217 : vector<8x1xf32> to vector<8x32xf32>
    %220 = arith.mulf %219, %28 : vector<8x32xf32>
    %221 = arith.addf %215, %220 : vector<8x32xf32>
    %222 = arith.subf %168, %201 : vector<8x1xf32>
    %223 = math.exp %222 : vector<8x1xf32>
    %224 = arith.addf %218, %223 : vector<8x1xf32>
    %225 = vector.broadcast %223 : vector<8x1xf32> to vector<8x32xf32>
    %226 = arith.mulf %225, %29 : vector<8x32xf32>
    %227 = arith.addf %221, %226 : vector<8x32xf32>
    %228 = arith.subf %173, %201 : vector<8x1xf32>
    %229 = math.exp %228 : vector<8x1xf32>
    %230 = arith.addf %224, %229 : vector<8x1xf32>
    %231 = vector.broadcast %229 : vector<8x1xf32> to vector<8x32xf32>
    %232 = arith.mulf %231, %30 : vector<8x32xf32>
    %233 = arith.addf %227, %232 : vector<8x32xf32>
    %234 = arith.subf %178, %201 : vector<8x1xf32>
    %235 = math.exp %234 : vector<8x1xf32>
    %236 = arith.addf %230, %235 : vector<8x1xf32>
    %237 = vector.broadcast %235 : vector<8x1xf32> to vector<8x32xf32>
    %238 = arith.mulf %237, %31 : vector<8x32xf32>
    %239 = arith.addf %233, %238 : vector<8x32xf32>
    %240 = arith.subf %183, %201 : vector<8x1xf32>
    %241 = math.exp %240 : vector<8x1xf32>
    %242 = arith.addf %236, %241 : vector<8x1xf32>
    %243 = vector.broadcast %241 : vector<8x1xf32> to vector<8x32xf32>
    %244 = arith.mulf %243, %32 : vector<8x32xf32>
    %245 = arith.addf %239, %244 : vector<8x32xf32>
    %246 = arith.subf %188, %201 : vector<8x1xf32>
    %247 = math.exp %246 : vector<8x1xf32>
    %248 = arith.addf %242, %247 : vector<8x1xf32>
    %249 = vector.broadcast %247 : vector<8x1xf32> to vector<8x32xf32>
    %250 = arith.mulf %249, %33 : vector<8x32xf32>
    %251 = arith.addf %245, %250 : vector<8x32xf32>
    %252 = arith.subf %193, %201 : vector<8x1xf32>
    %253 = math.exp %252 : vector<8x1xf32>
    %254 = arith.addf %248, %253 : vector<8x1xf32>
    %255 = vector.broadcast %253 : vector<8x1xf32> to vector<8x32xf32>
    %256 = arith.mulf %255, %34 : vector<8x32xf32>
    %257 = arith.addf %251, %256 : vector<8x32xf32>
    %258 = tpu.reciprocal %254 {approx = true} : vector<8x1xf32> -> vector<8x1xf32>
    %259 = vector.broadcast %258 : vector<8x1xf32> to vector<8x32xf32>
    %260 = arith.mulf %257, %259 : vector<8x32xf32>
    %261 = vector.extract_strided_slice %14 {offsets = [16, 0], sizes = [8, 32], strides = [1, 1]} : vector<72x32xf32> to vector<8x32xf32>
    %262 = arith.mulf %261, %17 : vector<8x32xf32>
    %cst_44 = arith.constant dense<0.000000e+00> : vector<8xf32>
    %263 = vector.multi_reduction <add>, %262, %cst_44 [1] : vector<8x32xf32> to vector<8xf32>
    %264 = vector.shape_cast %263 : vector<8xf32> to vector<8x1xf32>
    %cst_45 = arith.constant 0.176776692 : f32
    %265 = vector.broadcast %cst_45 : f32 to vector<8x1xf32>
    %266 = arith.mulf %264, %265 : vector<8x1xf32>
    %267 = arith.mulf %261, %18 : vector<8x32xf32>
    %cst_46 = arith.constant dense<0.000000e+00> : vector<8xf32>
    %268 = vector.multi_reduction <add>, %267, %cst_46 [1] : vector<8x32xf32> to vector<8xf32>
    %269 = vector.shape_cast %268 : vector<8xf32> to vector<8x1xf32>
    %cst_47 = arith.constant 0.176776692 : f32
    %270 = vector.broadcast %cst_47 : f32 to vector<8x1xf32>
    %271 = arith.mulf %269, %270 : vector<8x1xf32>
    %272 = arith.mulf %261, %19 : vector<8x32xf32>
    %cst_48 = arith.constant dense<0.000000e+00> : vector<8xf32>
    %273 = vector.multi_reduction <add>, %272, %cst_48 [1] : vector<8x32xf32> to vector<8xf32>
    %274 = vector.shape_cast %273 : vector<8xf32> to vector<8x1xf32>
    %cst_49 = arith.constant 0.176776692 : f32
    %275 = vector.broadcast %cst_49 : f32 to vector<8x1xf32>
    %276 = arith.mulf %274, %275 : vector<8x1xf32>
    %277 = arith.mulf %261, %20 : vector<8x32xf32>
    %cst_50 = arith.constant dense<0.000000e+00> : vector<8xf32>
    %278 = vector.multi_reduction <add>, %277, %cst_50 [1] : vector<8x32xf32> to vector<8xf32>
    %279 = vector.shape_cast %278 : vector<8xf32> to vector<8x1xf32>
    %cst_51 = arith.constant 0.176776692 : f32
    %280 = vector.broadcast %cst_51 : f32 to vector<8x1xf32>
    %281 = arith.mulf %279, %280 : vector<8x1xf32>
    %282 = arith.mulf %261, %21 : vector<8x32xf32>
    %cst_52 = arith.constant dense<0.000000e+00> : vector<8xf32>
    %283 = vector.multi_reduction <add>, %282, %cst_52 [1] : vector<8x32xf32> to vector<8xf32>
    %284 = vector.shape_cast %283 : vector<8xf32> to vector<8x1xf32>
    %cst_53 = arith.constant 0.176776692 : f32
    %285 = vector.broadcast %cst_53 : f32 to vector<8x1xf32>
    %286 = arith.mulf %284, %285 : vector<8x1xf32>
    %287 = arith.mulf %261, %22 : vector<8x32xf32>
    %cst_54 = arith.constant dense<0.000000e+00> : vector<8xf32>
    %288 = vector.multi_reduction <add>, %287, %cst_54 [1] : vector<8x32xf32> to vector<8xf32>
    %289 = vector.shape_cast %288 : vector<8xf32> to vector<8x1xf32>
    %cst_55 = arith.constant 0.176776692 : f32
    %290 = vector.broadcast %cst_55 : f32 to vector<8x1xf32>
    %291 = arith.mulf %289, %290 : vector<8x1xf32>
    %292 = arith.mulf %261, %23 : vector<8x32xf32>
    %cst_56 = arith.constant dense<0.000000e+00> : vector<8xf32>
    %293 = vector.multi_reduction <add>, %292, %cst_56 [1] : vector<8x32xf32> to vector<8xf32>
    %294 = vector.shape_cast %293 : vector<8xf32> to vector<8x1xf32>
    %cst_57 = arith.constant 0.176776692 : f32
    %295 = vector.broadcast %cst_57 : f32 to vector<8x1xf32>
    %296 = arith.mulf %294, %295 : vector<8x1xf32>
    %297 = arith.mulf %261, %24 : vector<8x32xf32>
    %cst_58 = arith.constant dense<0.000000e+00> : vector<8xf32>
    %298 = vector.multi_reduction <add>, %297, %cst_58 [1] : vector<8x32xf32> to vector<8xf32>
    %299 = vector.shape_cast %298 : vector<8xf32> to vector<8x1xf32>
    %cst_59 = arith.constant 0.176776692 : f32
    %300 = vector.broadcast %cst_59 : f32 to vector<8x1xf32>
    %301 = arith.mulf %299, %300 : vector<8x1xf32>
    %302 = arith.mulf %261, %25 : vector<8x32xf32>
    %cst_60 = arith.constant dense<0.000000e+00> : vector<8xf32>
    %303 = vector.multi_reduction <add>, %302, %cst_60 [1] : vector<8x32xf32> to vector<8xf32>
    %304 = vector.shape_cast %303 : vector<8xf32> to vector<8x1xf32>
    %cst_61 = arith.constant 0.176776692 : f32
    %305 = vector.broadcast %cst_61 : f32 to vector<8x1xf32>
    %306 = arith.mulf %304, %305 : vector<8x1xf32>
    %307 = arith.maximumf %266, %271 : vector<8x1xf32>
    %308 = arith.maximumf %307, %276 : vector<8x1xf32>
    %309 = arith.maximumf %308, %281 : vector<8x1xf32>
    %310 = arith.maximumf %309, %286 : vector<8x1xf32>
    %311 = arith.maximumf %310, %291 : vector<8x1xf32>
    %312 = arith.maximumf %311, %296 : vector<8x1xf32>
    %313 = arith.maximumf %312, %301 : vector<8x1xf32>
    %314 = arith.maximumf %313, %306 : vector<8x1xf32>
    %cst_62 = arith.constant 0.000000e+00 : f32
    %315 = vector.broadcast %cst_62 : f32 to vector<8x1xf32>
    %cst_63 = arith.constant 0.000000e+00 : f32
    %316 = vector.broadcast %cst_63 : f32 to vector<8x32xf32>
    %317 = arith.subf %266, %314 : vector<8x1xf32>
    %318 = math.exp %317 : vector<8x1xf32>
    %319 = arith.addf %315, %318 : vector<8x1xf32>
    %320 = vector.broadcast %318 : vector<8x1xf32> to vector<8x32xf32>
    %321 = arith.mulf %320, %26 : vector<8x32xf32>
    %322 = arith.addf %316, %321 : vector<8x32xf32>
    %323 = arith.subf %271, %314 : vector<8x1xf32>
    %324 = math.exp %323 : vector<8x1xf32>
    %325 = arith.addf %319, %324 : vector<8x1xf32>
    %326 = vector.broadcast %324 : vector<8x1xf32> to vector<8x32xf32>
    %327 = arith.mulf %326, %27 : vector<8x32xf32>
    %328 = arith.addf %322, %327 : vector<8x32xf32>
    %329 = arith.subf %276, %314 : vector<8x1xf32>
    %330 = math.exp %329 : vector<8x1xf32>
    %331 = arith.addf %325, %330 : vector<8x1xf32>
    %332 = vector.broadcast %330 : vector<8x1xf32> to vector<8x32xf32>
    %333 = arith.mulf %332, %28 : vector<8x32xf32>
    %334 = arith.addf %328, %333 : vector<8x32xf32>
    %335 = arith.subf %281, %314 : vector<8x1xf32>
    %336 = math.exp %335 : vector<8x1xf32>
    %337 = arith.addf %331, %336 : vector<8x1xf32>
    %338 = vector.broadcast %336 : vector<8x1xf32> to vector<8x32xf32>
    %339 = arith.mulf %338, %29 : vector<8x32xf32>
    %340 = arith.addf %334, %339 : vector<8x32xf32>
    %341 = arith.subf %286, %314 : vector<8x1xf32>
    %342 = math.exp %341 : vector<8x1xf32>
    %343 = arith.addf %337, %342 : vector<8x1xf32>
    %344 = vector.broadcast %342 : vector<8x1xf32> to vector<8x32xf32>
    %345 = arith.mulf %344, %30 : vector<8x32xf32>
    %346 = arith.addf %340, %345 : vector<8x32xf32>
    %347 = arith.subf %291, %314 : vector<8x1xf32>
    %348 = math.exp %347 : vector<8x1xf32>
    %349 = arith.addf %343, %348 : vector<8x1xf32>
    %350 = vector.broadcast %348 : vector<8x1xf32> to vector<8x32xf32>
    %351 = arith.mulf %350, %31 : vector<8x32xf32>
    %352 = arith.addf %346, %351 : vector<8x32xf32>
    %353 = arith.subf %296, %314 : vector<8x1xf32>
    %354 = math.exp %353 : vector<8x1xf32>
    %355 = arith.addf %349, %354 : vector<8x1xf32>
    %356 = vector.broadcast %354 : vector<8x1xf32> to vector<8x32xf32>
    %357 = arith.mulf %356, %32 : vector<8x32xf32>
    %358 = arith.addf %352, %357 : vector<8x32xf32>
    %359 = arith.subf %301, %314 : vector<8x1xf32>
    %360 = math.exp %359 : vector<8x1xf32>
    %361 = arith.addf %355, %360 : vector<8x1xf32>
    %362 = vector.broadcast %360 : vector<8x1xf32> to vector<8x32xf32>
    %363 = arith.mulf %362, %33 : vector<8x32xf32>
    %364 = arith.addf %358, %363 : vector<8x32xf32>
    %365 = arith.subf %306, %314 : vector<8x1xf32>
    %366 = math.exp %365 : vector<8x1xf32>
    %367 = arith.addf %361, %366 : vector<8x1xf32>
    %368 = vector.broadcast %366 : vector<8x1xf32> to vector<8x32xf32>
    %369 = arith.mulf %368, %34 : vector<8x32xf32>
    %370 = arith.addf %364, %369 : vector<8x32xf32>
    %371 = tpu.reciprocal %367 {approx = true} : vector<8x1xf32> -> vector<8x1xf32>
    %372 = vector.broadcast %371 : vector<8x1xf32> to vector<8x32xf32>
    %373 = arith.mulf %370, %372 : vector<8x32xf32>
    %374 = vector.extract_strided_slice %14 {offsets = [24, 0], sizes = [8, 32], strides = [1, 1]} : vector<72x32xf32> to vector<8x32xf32>
    %375 = arith.mulf %374, %17 : vector<8x32xf32>
    %cst_64 = arith.constant dense<0.000000e+00> : vector<8xf32>
    %376 = vector.multi_reduction <add>, %375, %cst_64 [1] : vector<8x32xf32> to vector<8xf32>
    %377 = vector.shape_cast %376 : vector<8xf32> to vector<8x1xf32>
    %cst_65 = arith.constant 0.176776692 : f32
    %378 = vector.broadcast %cst_65 : f32 to vector<8x1xf32>
    %379 = arith.mulf %377, %378 : vector<8x1xf32>
    %380 = arith.mulf %374, %18 : vector<8x32xf32>
    %cst_66 = arith.constant dense<0.000000e+00> : vector<8xf32>
    %381 = vector.multi_reduction <add>, %380, %cst_66 [1] : vector<8x32xf32> to vector<8xf32>
    %382 = vector.shape_cast %381 : vector<8xf32> to vector<8x1xf32>
    %cst_67 = arith.constant 0.176776692 : f32
    %383 = vector.broadcast %cst_67 : f32 to vector<8x1xf32>
    %384 = arith.mulf %382, %383 : vector<8x1xf32>
    %385 = arith.mulf %374, %19 : vector<8x32xf32>
    %cst_68 = arith.constant dense<0.000000e+00> : vector<8xf32>
    %386 = vector.multi_reduction <add>, %385, %cst_68 [1] : vector<8x32xf32> to vector<8xf32>
    %387 = vector.shape_cast %386 : vector<8xf32> to vector<8x1xf32>
    %cst_69 = arith.constant 0.176776692 : f32
    %388 = vector.broadcast %cst_69 : f32 to vector<8x1xf32>
    %389 = arith.mulf %387, %388 : vector<8x1xf32>
    %390 = arith.mulf %374, %20 : vector<8x32xf32>
    %cst_70 = arith.constant dense<0.000000e+00> : vector<8xf32>
    %391 = vector.multi_reduction <add>, %390, %cst_70 [1] : vector<8x32xf32> to vector<8xf32>
    %392 = vector.shape_cast %391 : vector<8xf32> to vector<8x1xf32>
    %cst_71 = arith.constant 0.176776692 : f32
    %393 = vector.broadcast %cst_71 : f32 to vector<8x1xf32>
    %394 = arith.mulf %392, %393 : vector<8x1xf32>
    %395 = arith.mulf %374, %21 : vector<8x32xf32>
    %cst_72 = arith.constant dense<0.000000e+00> : vector<8xf32>
    %396 = vector.multi_reduction <add>, %395, %cst_72 [1] : vector<8x32xf32> to vector<8xf32>
    %397 = vector.shape_cast %396 : vector<8xf32> to vector<8x1xf32>
    %cst_73 = arith.constant 0.176776692 : f32
    %398 = vector.broadcast %cst_73 : f32 to vector<8x1xf32>
    %399 = arith.mulf %397, %398 : vector<8x1xf32>
    %400 = arith.mulf %374, %22 : vector<8x32xf32>
    %cst_74 = arith.constant dense<0.000000e+00> : vector<8xf32>
    %401 = vector.multi_reduction <add>, %400, %cst_74 [1] : vector<8x32xf32> to vector<8xf32>
    %402 = vector.shape_cast %401 : vector<8xf32> to vector<8x1xf32>
    %cst_75 = arith.constant 0.176776692 : f32
    %403 = vector.broadcast %cst_75 : f32 to vector<8x1xf32>
    %404 = arith.mulf %402, %403 : vector<8x1xf32>
    %405 = arith.mulf %374, %23 : vector<8x32xf32>
    %cst_76 = arith.constant dense<0.000000e+00> : vector<8xf32>
    %406 = vector.multi_reduction <add>, %405, %cst_76 [1] : vector<8x32xf32> to vector<8xf32>
    %407 = vector.shape_cast %406 : vector<8xf32> to vector<8x1xf32>
    %cst_77 = arith.constant 0.176776692 : f32
    %408 = vector.broadcast %cst_77 : f32 to vector<8x1xf32>
    %409 = arith.mulf %407, %408 : vector<8x1xf32>
    %410 = arith.mulf %374, %24 : vector<8x32xf32>
    %cst_78 = arith.constant dense<0.000000e+00> : vector<8xf32>
    %411 = vector.multi_reduction <add>, %410, %cst_78 [1] : vector<8x32xf32> to vector<8xf32>
    %412 = vector.shape_cast %411 : vector<8xf32> to vector<8x1xf32>
    %cst_79 = arith.constant 0.176776692 : f32
    %413 = vector.broadcast %cst_79 : f32 to vector<8x1xf32>
    %414 = arith.mulf %412, %413 : vector<8x1xf32>
    %415 = arith.mulf %374, %25 : vector<8x32xf32>
    %cst_80 = arith.constant dense<0.000000e+00> : vector<8xf32>
    %416 = vector.multi_reduction <add>, %415, %cst_80 [1] : vector<8x32xf32> to vector<8xf32>
    %417 = vector.shape_cast %416 : vector<8xf32> to vector<8x1xf32>
    %cst_81 = arith.constant 0.176776692 : f32
    %418 = vector.broadcast %cst_81 : f32 to vector<8x1xf32>
    %419 = arith.mulf %417, %418 : vector<8x1xf32>
    %420 = arith.maximumf %379, %384 : vector<8x1xf32>
    %421 = arith.maximumf %420, %389 : vector<8x1xf32>
    %422 = arith.maximumf %421, %394 : vector<8x1xf32>
    %423 = arith.maximumf %422, %399 : vector<8x1xf32>
    %424 = arith.maximumf %423, %404 : vector<8x1xf32>
    %425 = arith.maximumf %424, %409 : vector<8x1xf32>
    %426 = arith.maximumf %425, %414 : vector<8x1xf32>
    %427 = arith.maximumf %426, %419 : vector<8x1xf32>
    %cst_82 = arith.constant 0.000000e+00 : f32
    %428 = vector.broadcast %cst_82 : f32 to vector<8x1xf32>
    %cst_83 = arith.constant 0.000000e+00 : f32
    %429 = vector.broadcast %cst_83 : f32 to vector<8x32xf32>
    %430 = arith.subf %379, %427 : vector<8x1xf32>
    %431 = math.exp %430 : vector<8x1xf32>
    %432 = arith.addf %428, %431 : vector<8x1xf32>
    %433 = vector.broadcast %431 : vector<8x1xf32> to vector<8x32xf32>
    %434 = arith.mulf %433, %26 : vector<8x32xf32>
    %435 = arith.addf %429, %434 : vector<8x32xf32>
    %436 = arith.subf %384, %427 : vector<8x1xf32>
    %437 = math.exp %436 : vector<8x1xf32>
    %438 = arith.addf %432, %437 : vector<8x1xf32>
    %439 = vector.broadcast %437 : vector<8x1xf32> to vector<8x32xf32>
    %440 = arith.mulf %439, %27 : vector<8x32xf32>
    %441 = arith.addf %435, %440 : vector<8x32xf32>
    %442 = arith.subf %389, %427 : vector<8x1xf32>
    %443 = math.exp %442 : vector<8x1xf32>
    %444 = arith.addf %438, %443 : vector<8x1xf32>
    %445 = vector.broadcast %443 : vector<8x1xf32> to vector<8x32xf32>
    %446 = arith.mulf %445, %28 : vector<8x32xf32>
    %447 = arith.addf %441, %446 : vector<8x32xf32>
    %448 = arith.subf %394, %427 : vector<8x1xf32>
    %449 = math.exp %448 : vector<8x1xf32>
    %450 = arith.addf %444, %449 : vector<8x1xf32>
    %451 = vector.broadcast %449 : vector<8x1xf32> to vector<8x32xf32>
    %452 = arith.mulf %451, %29 : vector<8x32xf32>
    %453 = arith.addf %447, %452 : vector<8x32xf32>
    %454 = arith.subf %399, %427 : vector<8x1xf32>
    %455 = math.exp %454 : vector<8x1xf32>
    %456 = arith.addf %450, %455 : vector<8x1xf32>
    %457 = vector.broadcast %455 : vector<8x1xf32> to vector<8x32xf32>
    %458 = arith.mulf %457, %30 : vector<8x32xf32>
    %459 = arith.addf %453, %458 : vector<8x32xf32>
    %460 = arith.subf %404, %427 : vector<8x1xf32>
    %461 = math.exp %460 : vector<8x1xf32>
    %462 = arith.addf %456, %461 : vector<8x1xf32>
    %463 = vector.broadcast %461 : vector<8x1xf32> to vector<8x32xf32>
    %464 = arith.mulf %463, %31 : vector<8x32xf32>
    %465 = arith.addf %459, %464 : vector<8x32xf32>
    %466 = arith.subf %409, %427 : vector<8x1xf32>
    %467 = math.exp %466 : vector<8x1xf32>
    %468 = arith.addf %462, %467 : vector<8x1xf32>
    %469 = vector.broadcast %467 : vector<8x1xf32> to vector<8x32xf32>
    %470 = arith.mulf %469, %32 : vector<8x32xf32>
    %471 = arith.addf %465, %470 : vector<8x32xf32>
    %472 = arith.subf %414, %427 : vector<8x1xf32>
    %473 = math.exp %472 : vector<8x1xf32>
    %474 = arith.addf %468, %473 : vector<8x1xf32>
    %475 = vector.broadcast %473 : vector<8x1xf32> to vector<8x32xf32>
    %476 = arith.mulf %475, %33 : vector<8x32xf32>
    %477 = arith.addf %471, %476 : vector<8x32xf32>
    %478 = arith.subf %419, %427 : vector<8x1xf32>
    %479 = math.exp %478 : vector<8x1xf32>
    %480 = arith.addf %474, %479 : vector<8x1xf32>
    %481 = vector.broadcast %479 : vector<8x1xf32> to vector<8x32xf32>
    %482 = arith.mulf %481, %34 : vector<8x32xf32>
    %483 = arith.addf %477, %482 : vector<8x32xf32>
    %484 = tpu.reciprocal %480 {approx = true} : vector<8x1xf32> -> vector<8x1xf32>
    %485 = vector.broadcast %484 : vector<8x1xf32> to vector<8x32xf32>
    %486 = arith.mulf %483, %485 : vector<8x32xf32>
    %487 = vector.extract_strided_slice %14 {offsets = [32, 0], sizes = [8, 32], strides = [1, 1]} : vector<72x32xf32> to vector<8x32xf32>
    %488 = arith.mulf %487, %17 : vector<8x32xf32>
    %cst_84 = arith.constant dense<0.000000e+00> : vector<8xf32>
    %489 = vector.multi_reduction <add>, %488, %cst_84 [1] : vector<8x32xf32> to vector<8xf32>
    %490 = vector.shape_cast %489 : vector<8xf32> to vector<8x1xf32>
    %cst_85 = arith.constant 0.176776692 : f32
    %491 = vector.broadcast %cst_85 : f32 to vector<8x1xf32>
    %492 = arith.mulf %490, %491 : vector<8x1xf32>
    %493 = arith.mulf %487, %18 : vector<8x32xf32>
    %cst_86 = arith.constant dense<0.000000e+00> : vector<8xf32>
    %494 = vector.multi_reduction <add>, %493, %cst_86 [1] : vector<8x32xf32> to vector<8xf32>
    %495 = vector.shape_cast %494 : vector<8xf32> to vector<8x1xf32>
    %cst_87 = arith.constant 0.176776692 : f32
    %496 = vector.broadcast %cst_87 : f32 to vector<8x1xf32>
    %497 = arith.mulf %495, %496 : vector<8x1xf32>
    %498 = arith.mulf %487, %19 : vector<8x32xf32>
    %cst_88 = arith.constant dense<0.000000e+00> : vector<8xf32>
    %499 = vector.multi_reduction <add>, %498, %cst_88 [1] : vector<8x32xf32> to vector<8xf32>
    %500 = vector.shape_cast %499 : vector<8xf32> to vector<8x1xf32>
    %cst_89 = arith.constant 0.176776692 : f32
    %501 = vector.broadcast %cst_89 : f32 to vector<8x1xf32>
    %502 = arith.mulf %500, %501 : vector<8x1xf32>
    %503 = arith.mulf %487, %20 : vector<8x32xf32>
    %cst_90 = arith.constant dense<0.000000e+00> : vector<8xf32>
    %504 = vector.multi_reduction <add>, %503, %cst_90 [1] : vector<8x32xf32> to vector<8xf32>
    %505 = vector.shape_cast %504 : vector<8xf32> to vector<8x1xf32>
    %cst_91 = arith.constant 0.176776692 : f32
    %506 = vector.broadcast %cst_91 : f32 to vector<8x1xf32>
    %507 = arith.mulf %505, %506 : vector<8x1xf32>
    %508 = arith.mulf %487, %21 : vector<8x32xf32>
    %cst_92 = arith.constant dense<0.000000e+00> : vector<8xf32>
    %509 = vector.multi_reduction <add>, %508, %cst_92 [1] : vector<8x32xf32> to vector<8xf32>
    %510 = vector.shape_cast %509 : vector<8xf32> to vector<8x1xf32>
    %cst_93 = arith.constant 0.176776692 : f32
    %511 = vector.broadcast %cst_93 : f32 to vector<8x1xf32>
    %512 = arith.mulf %510, %511 : vector<8x1xf32>
    %513 = arith.mulf %487, %22 : vector<8x32xf32>
    %cst_94 = arith.constant dense<0.000000e+00> : vector<8xf32>
    %514 = vector.multi_reduction <add>, %513, %cst_94 [1] : vector<8x32xf32> to vector<8xf32>
    %515 = vector.shape_cast %514 : vector<8xf32> to vector<8x1xf32>
    %cst_95 = arith.constant 0.176776692 : f32
    %516 = vector.broadcast %cst_95 : f32 to vector<8x1xf32>
    %517 = arith.mulf %515, %516 : vector<8x1xf32>
    %518 = arith.mulf %487, %23 : vector<8x32xf32>
    %cst_96 = arith.constant dense<0.000000e+00> : vector<8xf32>
    %519 = vector.multi_reduction <add>, %518, %cst_96 [1] : vector<8x32xf32> to vector<8xf32>
    %520 = vector.shape_cast %519 : vector<8xf32> to vector<8x1xf32>
    %cst_97 = arith.constant 0.176776692 : f32
    %521 = vector.broadcast %cst_97 : f32 to vector<8x1xf32>
    %522 = arith.mulf %520, %521 : vector<8x1xf32>
    %523 = arith.mulf %487, %24 : vector<8x32xf32>
    %cst_98 = arith.constant dense<0.000000e+00> : vector<8xf32>
    %524 = vector.multi_reduction <add>, %523, %cst_98 [1] : vector<8x32xf32> to vector<8xf32>
    %525 = vector.shape_cast %524 : vector<8xf32> to vector<8x1xf32>
    %cst_99 = arith.constant 0.176776692 : f32
    %526 = vector.broadcast %cst_99 : f32 to vector<8x1xf32>
    %527 = arith.mulf %525, %526 : vector<8x1xf32>
    %528 = arith.mulf %487, %25 : vector<8x32xf32>
    %cst_100 = arith.constant dense<0.000000e+00> : vector<8xf32>
    %529 = vector.multi_reduction <add>, %528, %cst_100 [1] : vector<8x32xf32> to vector<8xf32>
    %530 = vector.shape_cast %529 : vector<8xf32> to vector<8x1xf32>
    %cst_101 = arith.constant 0.176776692 : f32
    %531 = vector.broadcast %cst_101 : f32 to vector<8x1xf32>
    %532 = arith.mulf %530, %531 : vector<8x1xf32>
    %533 = arith.maximumf %492, %497 : vector<8x1xf32>
    %534 = arith.maximumf %533, %502 : vector<8x1xf32>
    %535 = arith.maximumf %534, %507 : vector<8x1xf32>
    %536 = arith.maximumf %535, %512 : vector<8x1xf32>
    %537 = arith.maximumf %536, %517 : vector<8x1xf32>
    %538 = arith.maximumf %537, %522 : vector<8x1xf32>
    %539 = arith.maximumf %538, %527 : vector<8x1xf32>
    %540 = arith.maximumf %539, %532 : vector<8x1xf32>
    %cst_102 = arith.constant 0.000000e+00 : f32
    %541 = vector.broadcast %cst_102 : f32 to vector<8x1xf32>
    %cst_103 = arith.constant 0.000000e+00 : f32
    %542 = vector.broadcast %cst_103 : f32 to vector<8x32xf32>
    %543 = arith.subf %492, %540 : vector<8x1xf32>
    %544 = math.exp %543 : vector<8x1xf32>
    %545 = arith.addf %541, %544 : vector<8x1xf32>
    %546 = vector.broadcast %544 : vector<8x1xf32> to vector<8x32xf32>
    %547 = arith.mulf %546, %26 : vector<8x32xf32>
    %548 = arith.addf %542, %547 : vector<8x32xf32>
    %549 = arith.subf %497, %540 : vector<8x1xf32>
    %550 = math.exp %549 : vector<8x1xf32>
    %551 = arith.addf %545, %550 : vector<8x1xf32>
    %552 = vector.broadcast %550 : vector<8x1xf32> to vector<8x32xf32>
    %553 = arith.mulf %552, %27 : vector<8x32xf32>
    %554 = arith.addf %548, %553 : vector<8x32xf32>
    %555 = arith.subf %502, %540 : vector<8x1xf32>
    %556 = math.exp %555 : vector<8x1xf32>
    %557 = arith.addf %551, %556 : vector<8x1xf32>
    %558 = vector.broadcast %556 : vector<8x1xf32> to vector<8x32xf32>
    %559 = arith.mulf %558, %28 : vector<8x32xf32>
    %560 = arith.addf %554, %559 : vector<8x32xf32>
    %561 = arith.subf %507, %540 : vector<8x1xf32>
    %562 = math.exp %561 : vector<8x1xf32>
    %563 = arith.addf %557, %562 : vector<8x1xf32>
    %564 = vector.broadcast %562 : vector<8x1xf32> to vector<8x32xf32>
    %565 = arith.mulf %564, %29 : vector<8x32xf32>
    %566 = arith.addf %560, %565 : vector<8x32xf32>
    %567 = arith.subf %512, %540 : vector<8x1xf32>
    %568 = math.exp %567 : vector<8x1xf32>
    %569 = arith.addf %563, %568 : vector<8x1xf32>
    %570 = vector.broadcast %568 : vector<8x1xf32> to vector<8x32xf32>
    %571 = arith.mulf %570, %30 : vector<8x32xf32>
    %572 = arith.addf %566, %571 : vector<8x32xf32>
    %573 = arith.subf %517, %540 : vector<8x1xf32>
    %574 = math.exp %573 : vector<8x1xf32>
    %575 = arith.addf %569, %574 : vector<8x1xf32>
    %576 = vector.broadcast %574 : vector<8x1xf32> to vector<8x32xf32>
    %577 = arith.mulf %576, %31 : vector<8x32xf32>
    %578 = arith.addf %572, %577 : vector<8x32xf32>
    %579 = arith.subf %522, %540 : vector<8x1xf32>
    %580 = math.exp %579 : vector<8x1xf32>
    %581 = arith.addf %575, %580 : vector<8x1xf32>
    %582 = vector.broadcast %580 : vector<8x1xf32> to vector<8x32xf32>
    %583 = arith.mulf %582, %32 : vector<8x32xf32>
    %584 = arith.addf %578, %583 : vector<8x32xf32>
    %585 = arith.subf %527, %540 : vector<8x1xf32>
    %586 = math.exp %585 : vector<8x1xf32>
    %587 = arith.addf %581, %586 : vector<8x1xf32>
    %588 = vector.broadcast %586 : vector<8x1xf32> to vector<8x32xf32>
    %589 = arith.mulf %588, %33 : vector<8x32xf32>
    %590 = arith.addf %584, %589 : vector<8x32xf32>
    %591 = arith.subf %532, %540 : vector<8x1xf32>
    %592 = math.exp %591 : vector<8x1xf32>
    %593 = arith.addf %587, %592 : vector<8x1xf32>
    %594 = vector.broadcast %592 : vector<8x1xf32> to vector<8x32xf32>
    %595 = arith.mulf %594, %34 : vector<8x32xf32>
    %596 = arith.addf %590, %595 : vector<8x32xf32>
    %597 = tpu.reciprocal %593 {approx = true} : vector<8x1xf32> -> vector<8x1xf32>
    %598 = vector.broadcast %597 : vector<8x1xf32> to vector<8x32xf32>
    %599 = arith.mulf %596, %598 : vector<8x32xf32>
    %600 = vector.extract_strided_slice %14 {offsets = [40, 0], sizes = [8, 32], strides = [1, 1]} : vector<72x32xf32> to vector<8x32xf32>
    %601 = arith.mulf %600, %17 : vector<8x32xf32>
    %cst_104 = arith.constant dense<0.000000e+00> : vector<8xf32>
    %602 = vector.multi_reduction <add>, %601, %cst_104 [1] : vector<8x32xf32> to vector<8xf32>
    %603 = vector.shape_cast %602 : vector<8xf32> to vector<8x1xf32>
    %cst_105 = arith.constant 0.176776692 : f32
    %604 = vector.broadcast %cst_105 : f32 to vector<8x1xf32>
    %605 = arith.mulf %603, %604 : vector<8x1xf32>
    %606 = arith.mulf %600, %18 : vector<8x32xf32>
    %cst_106 = arith.constant dense<0.000000e+00> : vector<8xf32>
    %607 = vector.multi_reduction <add>, %606, %cst_106 [1] : vector<8x32xf32> to vector<8xf32>
    %608 = vector.shape_cast %607 : vector<8xf32> to vector<8x1xf32>
    %cst_107 = arith.constant 0.176776692 : f32
    %609 = vector.broadcast %cst_107 : f32 to vector<8x1xf32>
    %610 = arith.mulf %608, %609 : vector<8x1xf32>
    %611 = arith.mulf %600, %19 : vector<8x32xf32>
    %cst_108 = arith.constant dense<0.000000e+00> : vector<8xf32>
    %612 = vector.multi_reduction <add>, %611, %cst_108 [1] : vector<8x32xf32> to vector<8xf32>
    %613 = vector.shape_cast %612 : vector<8xf32> to vector<8x1xf32>
    %cst_109 = arith.constant 0.176776692 : f32
    %614 = vector.broadcast %cst_109 : f32 to vector<8x1xf32>
    %615 = arith.mulf %613, %614 : vector<8x1xf32>
    %616 = arith.mulf %600, %20 : vector<8x32xf32>
    %cst_110 = arith.constant dense<0.000000e+00> : vector<8xf32>
    %617 = vector.multi_reduction <add>, %616, %cst_110 [1] : vector<8x32xf32> to vector<8xf32>
    %618 = vector.shape_cast %617 : vector<8xf32> to vector<8x1xf32>
    %cst_111 = arith.constant 0.176776692 : f32
    %619 = vector.broadcast %cst_111 : f32 to vector<8x1xf32>
    %620 = arith.mulf %618, %619 : vector<8x1xf32>
    %621 = arith.mulf %600, %21 : vector<8x32xf32>
    %cst_112 = arith.constant dense<0.000000e+00> : vector<8xf32>
    %622 = vector.multi_reduction <add>, %621, %cst_112 [1] : vector<8x32xf32> to vector<8xf32>
    %623 = vector.shape_cast %622 : vector<8xf32> to vector<8x1xf32>
    %cst_113 = arith.constant 0.176776692 : f32
    %624 = vector.broadcast %cst_113 : f32 to vector<8x1xf32>
    %625 = arith.mulf %623, %624 : vector<8x1xf32>
    %626 = arith.mulf %600, %22 : vector<8x32xf32>
    %cst_114 = arith.constant dense<0.000000e+00> : vector<8xf32>
    %627 = vector.multi_reduction <add>, %626, %cst_114 [1] : vector<8x32xf32> to vector<8xf32>
    %628 = vector.shape_cast %627 : vector<8xf32> to vector<8x1xf32>
    %cst_115 = arith.constant 0.176776692 : f32
    %629 = vector.broadcast %cst_115 : f32 to vector<8x1xf32>
    %630 = arith.mulf %628, %629 : vector<8x1xf32>
    %631 = arith.mulf %600, %23 : vector<8x32xf32>
    %cst_116 = arith.constant dense<0.000000e+00> : vector<8xf32>
    %632 = vector.multi_reduction <add>, %631, %cst_116 [1] : vector<8x32xf32> to vector<8xf32>
    %633 = vector.shape_cast %632 : vector<8xf32> to vector<8x1xf32>
    %cst_117 = arith.constant 0.176776692 : f32
    %634 = vector.broadcast %cst_117 : f32 to vector<8x1xf32>
    %635 = arith.mulf %633, %634 : vector<8x1xf32>
    %636 = arith.mulf %600, %24 : vector<8x32xf32>
    %cst_118 = arith.constant dense<0.000000e+00> : vector<8xf32>
    %637 = vector.multi_reduction <add>, %636, %cst_118 [1] : vector<8x32xf32> to vector<8xf32>
    %638 = vector.shape_cast %637 : vector<8xf32> to vector<8x1xf32>
    %cst_119 = arith.constant 0.176776692 : f32
    %639 = vector.broadcast %cst_119 : f32 to vector<8x1xf32>
    %640 = arith.mulf %638, %639 : vector<8x1xf32>
    %641 = arith.mulf %600, %25 : vector<8x32xf32>
    %cst_120 = arith.constant dense<0.000000e+00> : vector<8xf32>
    %642 = vector.multi_reduction <add>, %641, %cst_120 [1] : vector<8x32xf32> to vector<8xf32>
    %643 = vector.shape_cast %642 : vector<8xf32> to vector<8x1xf32>
    %cst_121 = arith.constant 0.176776692 : f32
    %644 = vector.broadcast %cst_121 : f32 to vector<8x1xf32>
    %645 = arith.mulf %643, %644 : vector<8x1xf32>
    %646 = arith.maximumf %605, %610 : vector<8x1xf32>
    %647 = arith.maximumf %646, %615 : vector<8x1xf32>
    %648 = arith.maximumf %647, %620 : vector<8x1xf32>
    %649 = arith.maximumf %648, %625 : vector<8x1xf32>
    %650 = arith.maximumf %649, %630 : vector<8x1xf32>
    %651 = arith.maximumf %650, %635 : vector<8x1xf32>
    %652 = arith.maximumf %651, %640 : vector<8x1xf32>
    %653 = arith.maximumf %652, %645 : vector<8x1xf32>
    %cst_122 = arith.constant 0.000000e+00 : f32
    %654 = vector.broadcast %cst_122 : f32 to vector<8x1xf32>
    %cst_123 = arith.constant 0.000000e+00 : f32
    %655 = vector.broadcast %cst_123 : f32 to vector<8x32xf32>
    %656 = arith.subf %605, %653 : vector<8x1xf32>
    %657 = math.exp %656 : vector<8x1xf32>
    %658 = arith.addf %654, %657 : vector<8x1xf32>
    %659 = vector.broadcast %657 : vector<8x1xf32> to vector<8x32xf32>
    %660 = arith.mulf %659, %26 : vector<8x32xf32>
    %661 = arith.addf %655, %660 : vector<8x32xf32>
    %662 = arith.subf %610, %653 : vector<8x1xf32>
    %663 = math.exp %662 : vector<8x1xf32>
    %664 = arith.addf %658, %663 : vector<8x1xf32>
    %665 = vector.broadcast %663 : vector<8x1xf32> to vector<8x32xf32>
    %666 = arith.mulf %665, %27 : vector<8x32xf32>
    %667 = arith.addf %661, %666 : vector<8x32xf32>
    %668 = arith.subf %615, %653 : vector<8x1xf32>
    %669 = math.exp %668 : vector<8x1xf32>
    %670 = arith.addf %664, %669 : vector<8x1xf32>
    %671 = vector.broadcast %669 : vector<8x1xf32> to vector<8x32xf32>
    %672 = arith.mulf %671, %28 : vector<8x32xf32>
    %673 = arith.addf %667, %672 : vector<8x32xf32>
    %674 = arith.subf %620, %653 : vector<8x1xf32>
    %675 = math.exp %674 : vector<8x1xf32>
    %676 = arith.addf %670, %675 : vector<8x1xf32>
    %677 = vector.broadcast %675 : vector<8x1xf32> to vector<8x32xf32>
    %678 = arith.mulf %677, %29 : vector<8x32xf32>
    %679 = arith.addf %673, %678 : vector<8x32xf32>
    %680 = arith.subf %625, %653 : vector<8x1xf32>
    %681 = math.exp %680 : vector<8x1xf32>
    %682 = arith.addf %676, %681 : vector<8x1xf32>
    %683 = vector.broadcast %681 : vector<8x1xf32> to vector<8x32xf32>
    %684 = arith.mulf %683, %30 : vector<8x32xf32>
    %685 = arith.addf %679, %684 : vector<8x32xf32>
    %686 = arith.subf %630, %653 : vector<8x1xf32>
    %687 = math.exp %686 : vector<8x1xf32>
    %688 = arith.addf %682, %687 : vector<8x1xf32>
    %689 = vector.broadcast %687 : vector<8x1xf32> to vector<8x32xf32>
    %690 = arith.mulf %689, %31 : vector<8x32xf32>
    %691 = arith.addf %685, %690 : vector<8x32xf32>
    %692 = arith.subf %635, %653 : vector<8x1xf32>
    %693 = math.exp %692 : vector<8x1xf32>
    %694 = arith.addf %688, %693 : vector<8x1xf32>
    %695 = vector.broadcast %693 : vector<8x1xf32> to vector<8x32xf32>
    %696 = arith.mulf %695, %32 : vector<8x32xf32>
    %697 = arith.addf %691, %696 : vector<8x32xf32>
    %698 = arith.subf %640, %653 : vector<8x1xf32>
    %699 = math.exp %698 : vector<8x1xf32>
    %700 = arith.addf %694, %699 : vector<8x1xf32>
    %701 = vector.broadcast %699 : vector<8x1xf32> to vector<8x32xf32>
    %702 = arith.mulf %701, %33 : vector<8x32xf32>
    %703 = arith.addf %697, %702 : vector<8x32xf32>
    %704 = arith.subf %645, %653 : vector<8x1xf32>
    %705 = math.exp %704 : vector<8x1xf32>
    %706 = arith.addf %700, %705 : vector<8x1xf32>
    %707 = vector.broadcast %705 : vector<8x1xf32> to vector<8x32xf32>
    %708 = arith.mulf %707, %34 : vector<8x32xf32>
    %709 = arith.addf %703, %708 : vector<8x32xf32>
    %710 = tpu.reciprocal %706 {approx = true} : vector<8x1xf32> -> vector<8x1xf32>
    %711 = vector.broadcast %710 : vector<8x1xf32> to vector<8x32xf32>
    %712 = arith.mulf %709, %711 : vector<8x32xf32>
    %713 = vector.extract_strided_slice %14 {offsets = [48, 0], sizes = [8, 32], strides = [1, 1]} : vector<72x32xf32> to vector<8x32xf32>
    %714 = arith.mulf %713, %17 : vector<8x32xf32>
    %cst_124 = arith.constant dense<0.000000e+00> : vector<8xf32>
    %715 = vector.multi_reduction <add>, %714, %cst_124 [1] : vector<8x32xf32> to vector<8xf32>
    %716 = vector.shape_cast %715 : vector<8xf32> to vector<8x1xf32>
    %cst_125 = arith.constant 0.176776692 : f32
    %717 = vector.broadcast %cst_125 : f32 to vector<8x1xf32>
    %718 = arith.mulf %716, %717 : vector<8x1xf32>
    %719 = arith.mulf %713, %18 : vector<8x32xf32>
    %cst_126 = arith.constant dense<0.000000e+00> : vector<8xf32>
    %720 = vector.multi_reduction <add>, %719, %cst_126 [1] : vector<8x32xf32> to vector<8xf32>
    %721 = vector.shape_cast %720 : vector<8xf32> to vector<8x1xf32>
    %cst_127 = arith.constant 0.176776692 : f32
    %722 = vector.broadcast %cst_127 : f32 to vector<8x1xf32>
    %723 = arith.mulf %721, %722 : vector<8x1xf32>
    %724 = arith.mulf %713, %19 : vector<8x32xf32>
    %cst_128 = arith.constant dense<0.000000e+00> : vector<8xf32>
    %725 = vector.multi_reduction <add>, %724, %cst_128 [1] : vector<8x32xf32> to vector<8xf32>
    %726 = vector.shape_cast %725 : vector<8xf32> to vector<8x1xf32>
    %cst_129 = arith.constant 0.176776692 : f32
    %727 = vector.broadcast %cst_129 : f32 to vector<8x1xf32>
    %728 = arith.mulf %726, %727 : vector<8x1xf32>
    %729 = arith.mulf %713, %20 : vector<8x32xf32>
    %cst_130 = arith.constant dense<0.000000e+00> : vector<8xf32>
    %730 = vector.multi_reduction <add>, %729, %cst_130 [1] : vector<8x32xf32> to vector<8xf32>
    %731 = vector.shape_cast %730 : vector<8xf32> to vector<8x1xf32>
    %cst_131 = arith.constant 0.176776692 : f32
    %732 = vector.broadcast %cst_131 : f32 to vector<8x1xf32>
    %733 = arith.mulf %731, %732 : vector<8x1xf32>
    %734 = arith.mulf %713, %21 : vector<8x32xf32>
    %cst_132 = arith.constant dense<0.000000e+00> : vector<8xf32>
    %735 = vector.multi_reduction <add>, %734, %cst_132 [1] : vector<8x32xf32> to vector<8xf32>
    %736 = vector.shape_cast %735 : vector<8xf32> to vector<8x1xf32>
    %cst_133 = arith.constant 0.176776692 : f32
    %737 = vector.broadcast %cst_133 : f32 to vector<8x1xf32>
    %738 = arith.mulf %736, %737 : vector<8x1xf32>
    %739 = arith.mulf %713, %22 : vector<8x32xf32>
    %cst_134 = arith.constant dense<0.000000e+00> : vector<8xf32>
    %740 = vector.multi_reduction <add>, %739, %cst_134 [1] : vector<8x32xf32> to vector<8xf32>
    %741 = vector.shape_cast %740 : vector<8xf32> to vector<8x1xf32>
    %cst_135 = arith.constant 0.176776692 : f32
    %742 = vector.broadcast %cst_135 : f32 to vector<8x1xf32>
    %743 = arith.mulf %741, %742 : vector<8x1xf32>
    %744 = arith.mulf %713, %23 : vector<8x32xf32>
    %cst_136 = arith.constant dense<0.000000e+00> : vector<8xf32>
    %745 = vector.multi_reduction <add>, %744, %cst_136 [1] : vector<8x32xf32> to vector<8xf32>
    %746 = vector.shape_cast %745 : vector<8xf32> to vector<8x1xf32>
    %cst_137 = arith.constant 0.176776692 : f32
    %747 = vector.broadcast %cst_137 : f32 to vector<8x1xf32>
    %748 = arith.mulf %746, %747 : vector<8x1xf32>
    %749 = arith.mulf %713, %24 : vector<8x32xf32>
    %cst_138 = arith.constant dense<0.000000e+00> : vector<8xf32>
    %750 = vector.multi_reduction <add>, %749, %cst_138 [1] : vector<8x32xf32> to vector<8xf32>
    %751 = vector.shape_cast %750 : vector<8xf32> to vector<8x1xf32>
    %cst_139 = arith.constant 0.176776692 : f32
    %752 = vector.broadcast %cst_139 : f32 to vector<8x1xf32>
    %753 = arith.mulf %751, %752 : vector<8x1xf32>
    %754 = arith.mulf %713, %25 : vector<8x32xf32>
    %cst_140 = arith.constant dense<0.000000e+00> : vector<8xf32>
    %755 = vector.multi_reduction <add>, %754, %cst_140 [1] : vector<8x32xf32> to vector<8xf32>
    %756 = vector.shape_cast %755 : vector<8xf32> to vector<8x1xf32>
    %cst_141 = arith.constant 0.176776692 : f32
    %757 = vector.broadcast %cst_141 : f32 to vector<8x1xf32>
    %758 = arith.mulf %756, %757 : vector<8x1xf32>
    %759 = arith.maximumf %718, %723 : vector<8x1xf32>
    %760 = arith.maximumf %759, %728 : vector<8x1xf32>
    %761 = arith.maximumf %760, %733 : vector<8x1xf32>
    %762 = arith.maximumf %761, %738 : vector<8x1xf32>
    %763 = arith.maximumf %762, %743 : vector<8x1xf32>
    %764 = arith.maximumf %763, %748 : vector<8x1xf32>
    %765 = arith.maximumf %764, %753 : vector<8x1xf32>
    %766 = arith.maximumf %765, %758 : vector<8x1xf32>
    %cst_142 = arith.constant 0.000000e+00 : f32
    %767 = vector.broadcast %cst_142 : f32 to vector<8x1xf32>
    %cst_143 = arith.constant 0.000000e+00 : f32
    %768 = vector.broadcast %cst_143 : f32 to vector<8x32xf32>
    %769 = arith.subf %718, %766 : vector<8x1xf32>
    %770 = math.exp %769 : vector<8x1xf32>
    %771 = arith.addf %767, %770 : vector<8x1xf32>
    %772 = vector.broadcast %770 : vector<8x1xf32> to vector<8x32xf32>
    %773 = arith.mulf %772, %26 : vector<8x32xf32>
    %774 = arith.addf %768, %773 : vector<8x32xf32>
    %775 = arith.subf %723, %766 : vector<8x1xf32>
    %776 = math.exp %775 : vector<8x1xf32>
    %777 = arith.addf %771, %776 : vector<8x1xf32>
    %778 = vector.broadcast %776 : vector<8x1xf32> to vector<8x32xf32>
    %779 = arith.mulf %778, %27 : vector<8x32xf32>
    %780 = arith.addf %774, %779 : vector<8x32xf32>
    %781 = arith.subf %728, %766 : vector<8x1xf32>
    %782 = math.exp %781 : vector<8x1xf32>
    %783 = arith.addf %777, %782 : vector<8x1xf32>
    %784 = vector.broadcast %782 : vector<8x1xf32> to vector<8x32xf32>
    %785 = arith.mulf %784, %28 : vector<8x32xf32>
    %786 = arith.addf %780, %785 : vector<8x32xf32>
    %787 = arith.subf %733, %766 : vector<8x1xf32>
    %788 = math.exp %787 : vector<8x1xf32>
    %789 = arith.addf %783, %788 : vector<8x1xf32>
    %790 = vector.broadcast %788 : vector<8x1xf32> to vector<8x32xf32>
    %791 = arith.mulf %790, %29 : vector<8x32xf32>
    %792 = arith.addf %786, %791 : vector<8x32xf32>
    %793 = arith.subf %738, %766 : vector<8x1xf32>
    %794 = math.exp %793 : vector<8x1xf32>
    %795 = arith.addf %789, %794 : vector<8x1xf32>
    %796 = vector.broadcast %794 : vector<8x1xf32> to vector<8x32xf32>
    %797 = arith.mulf %796, %30 : vector<8x32xf32>
    %798 = arith.addf %792, %797 : vector<8x32xf32>
    %799 = arith.subf %743, %766 : vector<8x1xf32>
    %800 = math.exp %799 : vector<8x1xf32>
    %801 = arith.addf %795, %800 : vector<8x1xf32>
    %802 = vector.broadcast %800 : vector<8x1xf32> to vector<8x32xf32>
    %803 = arith.mulf %802, %31 : vector<8x32xf32>
    %804 = arith.addf %798, %803 : vector<8x32xf32>
    %805 = arith.subf %748, %766 : vector<8x1xf32>
    %806 = math.exp %805 : vector<8x1xf32>
    %807 = arith.addf %801, %806 : vector<8x1xf32>
    %808 = vector.broadcast %806 : vector<8x1xf32> to vector<8x32xf32>
    %809 = arith.mulf %808, %32 : vector<8x32xf32>
    %810 = arith.addf %804, %809 : vector<8x32xf32>
    %811 = arith.subf %753, %766 : vector<8x1xf32>
    %812 = math.exp %811 : vector<8x1xf32>
    %813 = arith.addf %807, %812 : vector<8x1xf32>
    %814 = vector.broadcast %812 : vector<8x1xf32> to vector<8x32xf32>
    %815 = arith.mulf %814, %33 : vector<8x32xf32>
    %816 = arith.addf %810, %815 : vector<8x32xf32>
    %817 = arith.subf %758, %766 : vector<8x1xf32>
    %818 = math.exp %817 : vector<8x1xf32>
    %819 = arith.addf %813, %818 : vector<8x1xf32>
    %820 = vector.broadcast %818 : vector<8x1xf32> to vector<8x32xf32>
    %821 = arith.mulf %820, %34 : vector<8x32xf32>
    %822 = arith.addf %816, %821 : vector<8x32xf32>
    %823 = tpu.reciprocal %819 {approx = true} : vector<8x1xf32> -> vector<8x1xf32>
    %824 = vector.broadcast %823 : vector<8x1xf32> to vector<8x32xf32>
    %825 = arith.mulf %822, %824 : vector<8x32xf32>
    %826 = vector.extract_strided_slice %14 {offsets = [56, 0], sizes = [8, 32], strides = [1, 1]} : vector<72x32xf32> to vector<8x32xf32>
    %827 = arith.mulf %826, %17 : vector<8x32xf32>
    %cst_144 = arith.constant dense<0.000000e+00> : vector<8xf32>
    %828 = vector.multi_reduction <add>, %827, %cst_144 [1] : vector<8x32xf32> to vector<8xf32>
    %829 = vector.shape_cast %828 : vector<8xf32> to vector<8x1xf32>
    %cst_145 = arith.constant 0.176776692 : f32
    %830 = vector.broadcast %cst_145 : f32 to vector<8x1xf32>
    %831 = arith.mulf %829, %830 : vector<8x1xf32>
    %832 = arith.mulf %826, %18 : vector<8x32xf32>
    %cst_146 = arith.constant dense<0.000000e+00> : vector<8xf32>
    %833 = vector.multi_reduction <add>, %832, %cst_146 [1] : vector<8x32xf32> to vector<8xf32>
    %834 = vector.shape_cast %833 : vector<8xf32> to vector<8x1xf32>
    %cst_147 = arith.constant 0.176776692 : f32
    %835 = vector.broadcast %cst_147 : f32 to vector<8x1xf32>
    %836 = arith.mulf %834, %835 : vector<8x1xf32>
    %837 = arith.mulf %826, %19 : vector<8x32xf32>
    %cst_148 = arith.constant dense<0.000000e+00> : vector<8xf32>
    %838 = vector.multi_reduction <add>, %837, %cst_148 [1] : vector<8x32xf32> to vector<8xf32>
    %839 = vector.shape_cast %838 : vector<8xf32> to vector<8x1xf32>
    %cst_149 = arith.constant 0.176776692 : f32
    %840 = vector.broadcast %cst_149 : f32 to vector<8x1xf32>
    %841 = arith.mulf %839, %840 : vector<8x1xf32>
    %842 = arith.mulf %826, %20 : vector<8x32xf32>
    %cst_150 = arith.constant dense<0.000000e+00> : vector<8xf32>
    %843 = vector.multi_reduction <add>, %842, %cst_150 [1] : vector<8x32xf32> to vector<8xf32>
    %844 = vector.shape_cast %843 : vector<8xf32> to vector<8x1xf32>
    %cst_151 = arith.constant 0.176776692 : f32
    %845 = vector.broadcast %cst_151 : f32 to vector<8x1xf32>
    %846 = arith.mulf %844, %845 : vector<8x1xf32>
    %847 = arith.mulf %826, %21 : vector<8x32xf32>
    %cst_152 = arith.constant dense<0.000000e+00> : vector<8xf32>
    %848 = vector.multi_reduction <add>, %847, %cst_152 [1] : vector<8x32xf32> to vector<8xf32>
    %849 = vector.shape_cast %848 : vector<8xf32> to vector<8x1xf32>
    %cst_153 = arith.constant 0.176776692 : f32
    %850 = vector.broadcast %cst_153 : f32 to vector<8x1xf32>
    %851 = arith.mulf %849, %850 : vector<8x1xf32>
    %852 = arith.mulf %826, %22 : vector<8x32xf32>
    %cst_154 = arith.constant dense<0.000000e+00> : vector<8xf32>
    %853 = vector.multi_reduction <add>, %852, %cst_154 [1] : vector<8x32xf32> to vector<8xf32>
    %854 = vector.shape_cast %853 : vector<8xf32> to vector<8x1xf32>
    %cst_155 = arith.constant 0.176776692 : f32
    %855 = vector.broadcast %cst_155 : f32 to vector<8x1xf32>
    %856 = arith.mulf %854, %855 : vector<8x1xf32>
    %857 = arith.mulf %826, %23 : vector<8x32xf32>
    %cst_156 = arith.constant dense<0.000000e+00> : vector<8xf32>
    %858 = vector.multi_reduction <add>, %857, %cst_156 [1] : vector<8x32xf32> to vector<8xf32>
    %859 = vector.shape_cast %858 : vector<8xf32> to vector<8x1xf32>
    %cst_157 = arith.constant 0.176776692 : f32
    %860 = vector.broadcast %cst_157 : f32 to vector<8x1xf32>
    %861 = arith.mulf %859, %860 : vector<8x1xf32>
    %862 = arith.mulf %826, %24 : vector<8x32xf32>
    %cst_158 = arith.constant dense<0.000000e+00> : vector<8xf32>
    %863 = vector.multi_reduction <add>, %862, %cst_158 [1] : vector<8x32xf32> to vector<8xf32>
    %864 = vector.shape_cast %863 : vector<8xf32> to vector<8x1xf32>
    %cst_159 = arith.constant 0.176776692 : f32
    %865 = vector.broadcast %cst_159 : f32 to vector<8x1xf32>
    %866 = arith.mulf %864, %865 : vector<8x1xf32>
    %867 = arith.mulf %826, %25 : vector<8x32xf32>
    %cst_160 = arith.constant dense<0.000000e+00> : vector<8xf32>
    %868 = vector.multi_reduction <add>, %867, %cst_160 [1] : vector<8x32xf32> to vector<8xf32>
    %869 = vector.shape_cast %868 : vector<8xf32> to vector<8x1xf32>
    %cst_161 = arith.constant 0.176776692 : f32
    %870 = vector.broadcast %cst_161 : f32 to vector<8x1xf32>
    %871 = arith.mulf %869, %870 : vector<8x1xf32>
    %872 = arith.maximumf %831, %836 : vector<8x1xf32>
    %873 = arith.maximumf %872, %841 : vector<8x1xf32>
    %874 = arith.maximumf %873, %846 : vector<8x1xf32>
    %875 = arith.maximumf %874, %851 : vector<8x1xf32>
    %876 = arith.maximumf %875, %856 : vector<8x1xf32>
    %877 = arith.maximumf %876, %861 : vector<8x1xf32>
    %878 = arith.maximumf %877, %866 : vector<8x1xf32>
    %879 = arith.maximumf %878, %871 : vector<8x1xf32>
    %cst_162 = arith.constant 0.000000e+00 : f32
    %880 = vector.broadcast %cst_162 : f32 to vector<8x1xf32>
    %cst_163 = arith.constant 0.000000e+00 : f32
    %881 = vector.broadcast %cst_163 : f32 to vector<8x32xf32>
    %882 = arith.subf %831, %879 : vector<8x1xf32>
    %883 = math.exp %882 : vector<8x1xf32>
    %884 = arith.addf %880, %883 : vector<8x1xf32>
    %885 = vector.broadcast %883 : vector<8x1xf32> to vector<8x32xf32>
    %886 = arith.mulf %885, %26 : vector<8x32xf32>
    %887 = arith.addf %881, %886 : vector<8x32xf32>
    %888 = arith.subf %836, %879 : vector<8x1xf32>
    %889 = math.exp %888 : vector<8x1xf32>
    %890 = arith.addf %884, %889 : vector<8x1xf32>
    %891 = vector.broadcast %889 : vector<8x1xf32> to vector<8x32xf32>
    %892 = arith.mulf %891, %27 : vector<8x32xf32>
    %893 = arith.addf %887, %892 : vector<8x32xf32>
    %894 = arith.subf %841, %879 : vector<8x1xf32>
    %895 = math.exp %894 : vector<8x1xf32>
    %896 = arith.addf %890, %895 : vector<8x1xf32>
    %897 = vector.broadcast %895 : vector<8x1xf32> to vector<8x32xf32>
    %898 = arith.mulf %897, %28 : vector<8x32xf32>
    %899 = arith.addf %893, %898 : vector<8x32xf32>
    %900 = arith.subf %846, %879 : vector<8x1xf32>
    %901 = math.exp %900 : vector<8x1xf32>
    %902 = arith.addf %896, %901 : vector<8x1xf32>
    %903 = vector.broadcast %901 : vector<8x1xf32> to vector<8x32xf32>
    %904 = arith.mulf %903, %29 : vector<8x32xf32>
    %905 = arith.addf %899, %904 : vector<8x32xf32>
    %906 = arith.subf %851, %879 : vector<8x1xf32>
    %907 = math.exp %906 : vector<8x1xf32>
    %908 = arith.addf %902, %907 : vector<8x1xf32>
    %909 = vector.broadcast %907 : vector<8x1xf32> to vector<8x32xf32>
    %910 = arith.mulf %909, %30 : vector<8x32xf32>
    %911 = arith.addf %905, %910 : vector<8x32xf32>
    %912 = arith.subf %856, %879 : vector<8x1xf32>
    %913 = math.exp %912 : vector<8x1xf32>
    %914 = arith.addf %908, %913 : vector<8x1xf32>
    %915 = vector.broadcast %913 : vector<8x1xf32> to vector<8x32xf32>
    %916 = arith.mulf %915, %31 : vector<8x32xf32>
    %917 = arith.addf %911, %916 : vector<8x32xf32>
    %918 = arith.subf %861, %879 : vector<8x1xf32>
    %919 = math.exp %918 : vector<8x1xf32>
    %920 = arith.addf %914, %919 : vector<8x1xf32>
    %921 = vector.broadcast %919 : vector<8x1xf32> to vector<8x32xf32>
    %922 = arith.mulf %921, %32 : vector<8x32xf32>
    %923 = arith.addf %917, %922 : vector<8x32xf32>
    %924 = arith.subf %866, %879 : vector<8x1xf32>
    %925 = math.exp %924 : vector<8x1xf32>
    %926 = arith.addf %920, %925 : vector<8x1xf32>
    %927 = vector.broadcast %925 : vector<8x1xf32> to vector<8x32xf32>
    %928 = arith.mulf %927, %33 : vector<8x32xf32>
    %929 = arith.addf %923, %928 : vector<8x32xf32>
    %930 = arith.subf %871, %879 : vector<8x1xf32>
    %931 = math.exp %930 : vector<8x1xf32>
    %932 = arith.addf %926, %931 : vector<8x1xf32>
    %933 = vector.broadcast %931 : vector<8x1xf32> to vector<8x32xf32>
    %934 = arith.mulf %933, %34 : vector<8x32xf32>
    %935 = arith.addf %929, %934 : vector<8x32xf32>
    %936 = tpu.reciprocal %932 {approx = true} : vector<8x1xf32> -> vector<8x1xf32>
    %937 = vector.broadcast %936 : vector<8x1xf32> to vector<8x32xf32>
    %938 = arith.mulf %935, %937 : vector<8x32xf32>
    %939 = vector.extract_strided_slice %14 {offsets = [64, 0], sizes = [8, 32], strides = [1, 1]} : vector<72x32xf32> to vector<8x32xf32>
    %940 = arith.mulf %939, %17 : vector<8x32xf32>
    %cst_164 = arith.constant dense<0.000000e+00> : vector<8xf32>
    %941 = vector.multi_reduction <add>, %940, %cst_164 [1] : vector<8x32xf32> to vector<8xf32>
    %942 = vector.shape_cast %941 : vector<8xf32> to vector<8x1xf32>
    %cst_165 = arith.constant 0.176776692 : f32
    %943 = vector.broadcast %cst_165 : f32 to vector<8x1xf32>
    %944 = arith.mulf %942, %943 : vector<8x1xf32>
    %945 = arith.mulf %939, %18 : vector<8x32xf32>
    %cst_166 = arith.constant dense<0.000000e+00> : vector<8xf32>
    %946 = vector.multi_reduction <add>, %945, %cst_166 [1] : vector<8x32xf32> to vector<8xf32>
    %947 = vector.shape_cast %946 : vector<8xf32> to vector<8x1xf32>
    %cst_167 = arith.constant 0.176776692 : f32
    %948 = vector.broadcast %cst_167 : f32 to vector<8x1xf32>
    %949 = arith.mulf %947, %948 : vector<8x1xf32>
    %950 = arith.mulf %939, %19 : vector<8x32xf32>
    %cst_168 = arith.constant dense<0.000000e+00> : vector<8xf32>
    %951 = vector.multi_reduction <add>, %950, %cst_168 [1] : vector<8x32xf32> to vector<8xf32>
    %952 = vector.shape_cast %951 : vector<8xf32> to vector<8x1xf32>
    %cst_169 = arith.constant 0.176776692 : f32
    %953 = vector.broadcast %cst_169 : f32 to vector<8x1xf32>
    %954 = arith.mulf %952, %953 : vector<8x1xf32>
    %955 = arith.mulf %939, %20 : vector<8x32xf32>
    %cst_170 = arith.constant dense<0.000000e+00> : vector<8xf32>
    %956 = vector.multi_reduction <add>, %955, %cst_170 [1] : vector<8x32xf32> to vector<8xf32>
    %957 = vector.shape_cast %956 : vector<8xf32> to vector<8x1xf32>
    %cst_171 = arith.constant 0.176776692 : f32
    %958 = vector.broadcast %cst_171 : f32 to vector<8x1xf32>
    %959 = arith.mulf %957, %958 : vector<8x1xf32>
    %960 = arith.mulf %939, %21 : vector<8x32xf32>
    %cst_172 = arith.constant dense<0.000000e+00> : vector<8xf32>
    %961 = vector.multi_reduction <add>, %960, %cst_172 [1] : vector<8x32xf32> to vector<8xf32>
    %962 = vector.shape_cast %961 : vector<8xf32> to vector<8x1xf32>
    %cst_173 = arith.constant 0.176776692 : f32
    %963 = vector.broadcast %cst_173 : f32 to vector<8x1xf32>
    %964 = arith.mulf %962, %963 : vector<8x1xf32>
    %965 = arith.mulf %939, %22 : vector<8x32xf32>
    %cst_174 = arith.constant dense<0.000000e+00> : vector<8xf32>
    %966 = vector.multi_reduction <add>, %965, %cst_174 [1] : vector<8x32xf32> to vector<8xf32>
    %967 = vector.shape_cast %966 : vector<8xf32> to vector<8x1xf32>
    %cst_175 = arith.constant 0.176776692 : f32
    %968 = vector.broadcast %cst_175 : f32 to vector<8x1xf32>
    %969 = arith.mulf %967, %968 : vector<8x1xf32>
    %970 = arith.mulf %939, %23 : vector<8x32xf32>
    %cst_176 = arith.constant dense<0.000000e+00> : vector<8xf32>
    %971 = vector.multi_reduction <add>, %970, %cst_176 [1] : vector<8x32xf32> to vector<8xf32>
    %972 = vector.shape_cast %971 : vector<8xf32> to vector<8x1xf32>
    %cst_177 = arith.constant 0.176776692 : f32
    %973 = vector.broadcast %cst_177 : f32 to vector<8x1xf32>
    %974 = arith.mulf %972, %973 : vector<8x1xf32>
    %975 = arith.mulf %939, %24 : vector<8x32xf32>
    %cst_178 = arith.constant dense<0.000000e+00> : vector<8xf32>
    %976 = vector.multi_reduction <add>, %975, %cst_178 [1] : vector<8x32xf32> to vector<8xf32>
    %977 = vector.shape_cast %976 : vector<8xf32> to vector<8x1xf32>
    %cst_179 = arith.constant 0.176776692 : f32
    %978 = vector.broadcast %cst_179 : f32 to vector<8x1xf32>
    %979 = arith.mulf %977, %978 : vector<8x1xf32>
    %980 = arith.mulf %939, %25 : vector<8x32xf32>
    %cst_180 = arith.constant dense<0.000000e+00> : vector<8xf32>
    %981 = vector.multi_reduction <add>, %980, %cst_180 [1] : vector<8x32xf32> to vector<8xf32>
    %982 = vector.shape_cast %981 : vector<8xf32> to vector<8x1xf32>
    %cst_181 = arith.constant 0.176776692 : f32
    %983 = vector.broadcast %cst_181 : f32 to vector<8x1xf32>
    %984 = arith.mulf %982, %983 : vector<8x1xf32>
    %985 = arith.maximumf %944, %949 : vector<8x1xf32>
    %986 = arith.maximumf %985, %954 : vector<8x1xf32>
    %987 = arith.maximumf %986, %959 : vector<8x1xf32>
    %988 = arith.maximumf %987, %964 : vector<8x1xf32>
    %989 = arith.maximumf %988, %969 : vector<8x1xf32>
    %990 = arith.maximumf %989, %974 : vector<8x1xf32>
    %991 = arith.maximumf %990, %979 : vector<8x1xf32>
    %992 = arith.maximumf %991, %984 : vector<8x1xf32>
    %cst_182 = arith.constant 0.000000e+00 : f32
    %993 = vector.broadcast %cst_182 : f32 to vector<8x1xf32>
    %cst_183 = arith.constant 0.000000e+00 : f32
    %994 = vector.broadcast %cst_183 : f32 to vector<8x32xf32>
    %995 = arith.subf %944, %992 : vector<8x1xf32>
    %996 = math.exp %995 : vector<8x1xf32>
    %997 = arith.addf %993, %996 : vector<8x1xf32>
    %998 = vector.broadcast %996 : vector<8x1xf32> to vector<8x32xf32>
    %999 = arith.mulf %998, %26 : vector<8x32xf32>
    %1000 = arith.addf %994, %999 : vector<8x32xf32>
    %1001 = arith.subf %949, %992 : vector<8x1xf32>
    %1002 = math.exp %1001 : vector<8x1xf32>
    %1003 = arith.addf %997, %1002 : vector<8x1xf32>
    %1004 = vector.broadcast %1002 : vector<8x1xf32> to vector<8x32xf32>
    %1005 = arith.mulf %1004, %27 : vector<8x32xf32>
    %1006 = arith.addf %1000, %1005 : vector<8x32xf32>
    %1007 = arith.subf %954, %992 : vector<8x1xf32>
    %1008 = math.exp %1007 : vector<8x1xf32>
    %1009 = arith.addf %1003, %1008 : vector<8x1xf32>
    %1010 = vector.broadcast %1008 : vector<8x1xf32> to vector<8x32xf32>
    %1011 = arith.mulf %1010, %28 : vector<8x32xf32>
    %1012 = arith.addf %1006, %1011 : vector<8x32xf32>
    %1013 = arith.subf %959, %992 : vector<8x1xf32>
    %1014 = math.exp %1013 : vector<8x1xf32>
    %1015 = arith.addf %1009, %1014 : vector<8x1xf32>
    %1016 = vector.broadcast %1014 : vector<8x1xf32> to vector<8x32xf32>
    %1017 = arith.mulf %1016, %29 : vector<8x32xf32>
    %1018 = arith.addf %1012, %1017 : vector<8x32xf32>
    %1019 = arith.subf %964, %992 : vector<8x1xf32>
    %1020 = math.exp %1019 : vector<8x1xf32>
    %1021 = arith.addf %1015, %1020 : vector<8x1xf32>
    %1022 = vector.broadcast %1020 : vector<8x1xf32> to vector<8x32xf32>
    %1023 = arith.mulf %1022, %30 : vector<8x32xf32>
    %1024 = arith.addf %1018, %1023 : vector<8x32xf32>
    %1025 = arith.subf %969, %992 : vector<8x1xf32>
    %1026 = math.exp %1025 : vector<8x1xf32>
    %1027 = arith.addf %1021, %1026 : vector<8x1xf32>
    %1028 = vector.broadcast %1026 : vector<8x1xf32> to vector<8x32xf32>
    %1029 = arith.mulf %1028, %31 : vector<8x32xf32>
    %1030 = arith.addf %1024, %1029 : vector<8x32xf32>
    %1031 = arith.subf %974, %992 : vector<8x1xf32>
    %1032 = math.exp %1031 : vector<8x1xf32>
    %1033 = arith.addf %1027, %1032 : vector<8x1xf32>
    %1034 = vector.broadcast %1032 : vector<8x1xf32> to vector<8x32xf32>
    %1035 = arith.mulf %1034, %32 : vector<8x32xf32>
    %1036 = arith.addf %1030, %1035 : vector<8x32xf32>
    %1037 = arith.subf %979, %992 : vector<8x1xf32>
    %1038 = math.exp %1037 : vector<8x1xf32>
    %1039 = arith.addf %1033, %1038 : vector<8x1xf32>
    %1040 = vector.broadcast %1038 : vector<8x1xf32> to vector<8x32xf32>
    %1041 = arith.mulf %1040, %33 : vector<8x32xf32>
    %1042 = arith.addf %1036, %1041 : vector<8x32xf32>
    %1043 = arith.subf %984, %992 : vector<8x1xf32>
    %1044 = math.exp %1043 : vector<8x1xf32>
    %1045 = arith.addf %1039, %1044 : vector<8x1xf32>
    %1046 = vector.broadcast %1044 : vector<8x1xf32> to vector<8x32xf32>
    %1047 = arith.mulf %1046, %34 : vector<8x32xf32>
    %1048 = arith.addf %1042, %1047 : vector<8x32xf32>
    %1049 = tpu.reciprocal %1045 {approx = true} : vector<8x1xf32> -> vector<8x1xf32>
    %1050 = vector.broadcast %1049 : vector<8x1xf32> to vector<8x32xf32>
    %1051 = arith.mulf %1048, %1050 : vector<8x32xf32>
    %1052 = tpu.concatenate %147, %260, %373, %486, %599, %712, %825, %938, %1051 in 0 : vector<8x32xf32>, vector<8x32xf32>, vector<8x32xf32>, vector<8x32xf32>, vector<8x32xf32>, vector<8x32xf32>, vector<8x32xf32>, vector<8x32xf32>, vector<8x32xf32> -> vector<72x32xf32>
    %c16 = arith.constant 16 : index
    %c0_184 = arith.constant 0 : index
    %1053 = vector.load %arg2[%c16, %c0_184] : memref<544x128xf32, #tpu.memory_space<vmem>>, vector<32x32xf32>
    %cst_185 = arith.constant dense<0.000000e+00> : vector<72x32xf32>
    %1054 = tpu.matmul %1052, %1053, %cst_185 {dimension_numbers = #tpu.dot_dimension_numbers<[1], [0], [0], [1], [0, 0, 1, 1], [], []>} : vector<72x32xf32>, vector<32x32xf32>, vector<72x32xf32> -> vector<72x32xf32>
    %1055 = vector.broadcast %1 : vector<1x32xf32> to vector<72x32xf32>
    %1056 = arith.addf %1054, %1055 : vector<72x32xf32>
    %1057 = arith.addf %1056, %13 : vector<72x32xf32>
    %cst_186 = arith.constant dense<0.000000e+00> : vector<72xf32>
    %1058 = vector.multi_reduction <add>, %1057, %cst_186 [1] : vector<72x32xf32> to vector<72xf32>
    %1059 = vector.shape_cast %1058 : vector<72xf32> to vector<72x1xf32>
    %cst_187 = arith.constant 3.200000e+01 : f32
    %1060 = vector.broadcast %cst_187 : f32 to vector<72x1xf32>
    %1061 = arith.divf %1059, %1060 : vector<72x1xf32>
    %1062 = vector.broadcast %1061 : vector<72x1xf32> to vector<72x32xf32>
    %1063 = arith.subf %1057, %1062 : vector<72x32xf32>
    %1064 = arith.mulf %1063, %1063 : vector<72x32xf32>
    %cst_188 = arith.constant dense<0.000000e+00> : vector<72xf32>
    %1065 = vector.multi_reduction <add>, %1064, %cst_188 [1] : vector<72x32xf32> to vector<72xf32>
    %1066 = vector.shape_cast %1065 : vector<72xf32> to vector<72x1xf32>
    %cst_189 = arith.constant 3.200000e+01 : f32
    %1067 = vector.broadcast %cst_189 : f32 to vector<72x1xf32>
    %1068 = arith.divf %1066, %1067 : vector<72x1xf32>
    %cst_190 = arith.constant 9.99999974E-6 : f32
    %1069 = vector.broadcast %cst_190 : f32 to vector<72x1xf32>
    %1070 = arith.addf %1068, %1069 : vector<72x1xf32>
    %1071 = math.rsqrt %1070 : vector<72x1xf32>
    %1072 = vector.broadcast %1071 : vector<72x1xf32> to vector<72x32xf32>
    %1073 = arith.mulf %1063, %1072 : vector<72x32xf32>
    %1074 = vector.broadcast %2 : vector<1x32xf32> to vector<72x32xf32>
    %1075 = arith.mulf %1073, %1074 : vector<72x32xf32>
    %1076 = vector.broadcast %3 : vector<1x32xf32> to vector<72x32xf32>
    %1077 = arith.addf %1075, %1076 : vector<72x32xf32>
    %c48 = arith.constant 48 : index
    %c0_191 = arith.constant 0 : index
    %1078 = vector.load %arg2[%c48, %c0_191] : memref<544x128xf32, #tpu.memory_space<vmem>>, vector<32x64xf32>
    %cst_192 = arith.constant dense<0.000000e+00> : vector<72x64xf32>
    %1079 = tpu.matmul %1077, %1078, %cst_192 {dimension_numbers = #tpu.dot_dimension_numbers<[1], [0], [0], [1], [0, 0, 1, 1], [], []>} : vector<72x32xf32>, vector<32x64xf32>, vector<72x64xf32> -> vector<72x64xf32>
    %1080 = vector.broadcast %4 : vector<1x64xf32> to vector<72x64xf32>
    %1081 = arith.addf %1079, %1080 : vector<72x64xf32>
    %cst_193 = arith.constant 5.000000e-01 : f32
    %1082 = vector.broadcast %cst_193 : f32 to vector<72x64xf32>
    %1083 = arith.mulf %1082, %1081 : vector<72x64xf32>
    %cst_194 = arith.constant 4.471500e-02 : f32
    %1084 = vector.broadcast %cst_194 : f32 to vector<72x64xf32>
    %1085 = arith.mulf %1084, %1081 : vector<72x64xf32>
    %1086 = arith.mulf %1085, %1081 : vector<72x64xf32>
    %1087 = arith.mulf %1086, %1081 : vector<72x64xf32>
    %1088 = arith.addf %1081, %1087 : vector<72x64xf32>
    %cst_195 = arith.constant 0.797884583 : f32
    %1089 = vector.broadcast %cst_195 : f32 to vector<72x64xf32>
    %1090 = arith.mulf %1089, %1088 : vector<72x64xf32>
    %1091 = math.tanh %1090 : vector<72x64xf32>
    %cst_196 = arith.constant 1.000000e+00 : f32
    %1092 = vector.broadcast %cst_196 : f32 to vector<72x64xf32>
    %1093 = arith.addf %1092, %1091 : vector<72x64xf32>
    %1094 = arith.mulf %1083, %1093 : vector<72x64xf32>
    %c80 = arith.constant 80 : index
    %c0_197 = arith.constant 0 : index
    %1095 = vector.load %arg2[%c80, %c0_197] : memref<544x128xf32, #tpu.memory_space<vmem>>, vector<64x32xf32>
    %cst_198 = arith.constant dense<0.000000e+00> : vector<72x32xf32>
    %1096 = tpu.matmul %1094, %1095, %cst_198 {dimension_numbers = #tpu.dot_dimension_numbers<[1], [0], [0], [1], [0, 0, 1, 1], [], []>} : vector<72x64xf32>, vector<64x32xf32>, vector<72x32xf32> -> vector<72x32xf32>
    %1097 = vector.broadcast %5 : vector<1x32xf32> to vector<72x32xf32>
    %1098 = arith.addf %1096, %1097 : vector<72x32xf32>
    %1099 = arith.addf %1098, %1077 : vector<72x32xf32>
    %cst_199 = arith.constant dense<0.000000e+00> : vector<72xf32>
    %1100 = vector.multi_reduction <add>, %1099, %cst_199 [1] : vector<72x32xf32> to vector<72xf32>
    %1101 = vector.shape_cast %1100 : vector<72xf32> to vector<72x1xf32>
    %cst_200 = arith.constant 3.200000e+01 : f32
    %1102 = vector.broadcast %cst_200 : f32 to vector<72x1xf32>
    %1103 = arith.divf %1101, %1102 : vector<72x1xf32>
    %1104 = vector.broadcast %1103 : vector<72x1xf32> to vector<72x32xf32>
    %1105 = arith.subf %1099, %1104 : vector<72x32xf32>
    %1106 = arith.mulf %1105, %1105 : vector<72x32xf32>
    %cst_201 = arith.constant dense<0.000000e+00> : vector<72xf32>
    %1107 = vector.multi_reduction <add>, %1106, %cst_201 [1] : vector<72x32xf32> to vector<72xf32>
    %1108 = vector.shape_cast %1107 : vector<72xf32> to vector<72x1xf32>
    %cst_202 = arith.constant 3.200000e+01 : f32
    %1109 = vector.broadcast %cst_202 : f32 to vector<72x1xf32>
    %1110 = arith.divf %1108, %1109 : vector<72x1xf32>
    %cst_203 = arith.constant 9.99999974E-6 : f32
    %1111 = vector.broadcast %cst_203 : f32 to vector<72x1xf32>
    %1112 = arith.addf %1110, %1111 : vector<72x1xf32>
    %1113 = math.rsqrt %1112 : vector<72x1xf32>
    %1114 = vector.broadcast %1113 : vector<72x1xf32> to vector<72x32xf32>
    %1115 = arith.mulf %1105, %1114 : vector<72x32xf32>
    %1116 = vector.broadcast %6 : vector<1x32xf32> to vector<72x32xf32>
    %1117 = arith.mulf %1115, %1116 : vector<72x32xf32>
    %1118 = vector.broadcast %7 : vector<1x32xf32> to vector<72x32xf32>
    %1119 = arith.addf %1117, %1118 : vector<72x32xf32>
    %cst_204 = arith.constant 0.000000e+00 : f32
    %1120 = vector.broadcast %cst_204 : f32 to vector<8x96xf32>
    %1121 = vector.extract_strided_slice %1119 {offsets = [0, 0], sizes = [8, 32], strides = [1, 1]} : vector<72x32xf32> to vector<8x32xf32>
    %c144 = arith.constant 144 : index
    %c0_205 = arith.constant 0 : index
    %1122 = vector.load %arg2[%c144, %c0_205] : memref<544x128xf32, #tpu.memory_space<vmem>>, vector<32x96xf32>
    %cst_206 = arith.constant dense<0.000000e+00> : vector<8x96xf32>
    %1123 = tpu.matmul %1121, %1122, %cst_206 {dimension_numbers = #tpu.dot_dimension_numbers<[1], [0], [0], [1], [0, 0, 1, 1], [], []>} : vector<8x32xf32>, vector<32x96xf32>, vector<8x96xf32> -> vector<8x96xf32>
    %1124 = arith.addf %1120, %1123 : vector<8x96xf32>
    %1125 = vector.extract_strided_slice %1119 {offsets = [8, 0], sizes = [8, 32], strides = [1, 1]} : vector<72x32xf32> to vector<8x32xf32>
    %c176 = arith.constant 176 : index
    %c0_207 = arith.constant 0 : index
    %1126 = vector.load %arg2[%c176, %c0_207] : memref<544x128xf32, #tpu.memory_space<vmem>>, vector<32x96xf32>
    %cst_208 = arith.constant dense<0.000000e+00> : vector<8x96xf32>
    %1127 = tpu.matmul %1125, %1126, %cst_208 {dimension_numbers = #tpu.dot_dimension_numbers<[1], [0], [0], [1], [0, 0, 1, 1], [], []>} : vector<8x32xf32>, vector<32x96xf32>, vector<8x96xf32> -> vector<8x96xf32>
    %1128 = arith.addf %1124, %1127 : vector<8x96xf32>
    %1129 = vector.extract_strided_slice %1119 {offsets = [16, 0], sizes = [8, 32], strides = [1, 1]} : vector<72x32xf32> to vector<8x32xf32>
    %c208 = arith.constant 208 : index
    %c0_209 = arith.constant 0 : index
    %1130 = vector.load %arg2[%c208, %c0_209] : memref<544x128xf32, #tpu.memory_space<vmem>>, vector<32x96xf32>
    %cst_210 = arith.constant dense<0.000000e+00> : vector<8x96xf32>
    %1131 = tpu.matmul %1129, %1130, %cst_210 {dimension_numbers = #tpu.dot_dimension_numbers<[1], [0], [0], [1], [0, 0, 1, 1], [], []>} : vector<8x32xf32>, vector<32x96xf32>, vector<8x96xf32> -> vector<8x96xf32>
    %1132 = arith.addf %1128, %1131 : vector<8x96xf32>
    %1133 = vector.extract_strided_slice %1119 {offsets = [24, 0], sizes = [8, 32], strides = [1, 1]} : vector<72x32xf32> to vector<8x32xf32>
    %c240 = arith.constant 240 : index
    %c0_211 = arith.constant 0 : index
    %1134 = vector.load %arg2[%c240, %c0_211] : memref<544x128xf32, #tpu.memory_space<vmem>>, vector<32x96xf32>
    %cst_212 = arith.constant dense<0.000000e+00> : vector<8x96xf32>
    %1135 = tpu.matmul %1133, %1134, %cst_212 {dimension_numbers = #tpu.dot_dimension_numbers<[1], [0], [0], [1], [0, 0, 1, 1], [], []>} : vector<8x32xf32>, vector<32x96xf32>, vector<8x96xf32> -> vector<8x96xf32>
    %1136 = arith.addf %1132, %1135 : vector<8x96xf32>
    %1137 = vector.extract_strided_slice %1119 {offsets = [32, 0], sizes = [8, 32], strides = [1, 1]} : vector<72x32xf32> to vector<8x32xf32>
    %c272 = arith.constant 272 : index
    %c0_213 = arith.constant 0 : index
    %1138 = vector.load %arg2[%c272, %c0_213] : memref<544x128xf32, #tpu.memory_space<vmem>>, vector<32x96xf32>
    %cst_214 = arith.constant dense<0.000000e+00> : vector<8x96xf32>
    %1139 = tpu.matmul %1137, %1138, %cst_214 {dimension_numbers = #tpu.dot_dimension_numbers<[1], [0], [0], [1], [0, 0, 1, 1], [], []>} : vector<8x32xf32>, vector<32x96xf32>, vector<8x96xf32> -> vector<8x96xf32>
    %1140 = arith.addf %1136, %1139 : vector<8x96xf32>
    %1141 = vector.extract_strided_slice %1119 {offsets = [40, 0], sizes = [8, 32], strides = [1, 1]} : vector<72x32xf32> to vector<8x32xf32>
    %c304 = arith.constant 304 : index
    %c0_215 = arith.constant 0 : index
    %1142 = vector.load %arg2[%c304, %c0_215] : memref<544x128xf32, #tpu.memory_space<vmem>>, vector<32x96xf32>
    %cst_216 = arith.constant dense<0.000000e+00> : vector<8x96xf32>
    %1143 = tpu.matmul %1141, %1142, %cst_216 {dimension_numbers = #tpu.dot_dimension_numbers<[1], [0], [0], [1], [0, 0, 1, 1], [], []>} : vector<8x32xf32>, vector<32x96xf32>, vector<8x96xf32> -> vector<8x96xf32>
    %1144 = arith.addf %1140, %1143 : vector<8x96xf32>
    %1145 = vector.extract_strided_slice %1119 {offsets = [48, 0], sizes = [8, 32], strides = [1, 1]} : vector<72x32xf32> to vector<8x32xf32>
    %c336 = arith.constant 336 : index
    %c0_217 = arith.constant 0 : index
    %1146 = vector.load %arg2[%c336, %c0_217] : memref<544x128xf32, #tpu.memory_space<vmem>>, vector<32x96xf32>
    %cst_218 = arith.constant dense<0.000000e+00> : vector<8x96xf32>
    %1147 = tpu.matmul %1145, %1146, %cst_218 {dimension_numbers = #tpu.dot_dimension_numbers<[1], [0], [0], [1], [0, 0, 1, 1], [], []>} : vector<8x32xf32>, vector<32x96xf32>, vector<8x96xf32> -> vector<8x96xf32>
    %1148 = arith.addf %1144, %1147 : vector<8x96xf32>
    %1149 = vector.extract_strided_slice %1119 {offsets = [56, 0], sizes = [8, 32], strides = [1, 1]} : vector<72x32xf32> to vector<8x32xf32>
    %c368 = arith.constant 368 : index
    %c0_219 = arith.constant 0 : index
    %1150 = vector.load %arg2[%c368, %c0_219] : memref<544x128xf32, #tpu.memory_space<vmem>>, vector<32x96xf32>
    %cst_220 = arith.constant dense<0.000000e+00> : vector<8x96xf32>
    %1151 = tpu.matmul %1149, %1150, %cst_220 {dimension_numbers = #tpu.dot_dimension_numbers<[1], [0], [0], [1], [0, 0, 1, 1], [], []>} : vector<8x32xf32>, vector<32x96xf32>, vector<8x96xf32> -> vector<8x96xf32>
    %1152 = arith.addf %1148, %1151 : vector<8x96xf32>
    %1153 = vector.extract_strided_slice %1119 {offsets = [64, 0], sizes = [8, 32], strides = [1, 1]} : vector<72x32xf32> to vector<8x32xf32>
    %c400 = arith.constant 400 : index
    %c0_221 = arith.constant 0 : index
    %1154 = vector.load %arg2[%c400, %c0_221] : memref<544x128xf32, #tpu.memory_space<vmem>>, vector<32x96xf32>
    %cst_222 = arith.constant dense<0.000000e+00> : vector<8x96xf32>
    %1155 = tpu.matmul %1153, %1154, %cst_222 {dimension_numbers = #tpu.dot_dimension_numbers<[1], [0], [0], [1], [0, 0, 1, 1], [], []>} : vector<8x32xf32>, vector<32x96xf32>, vector<8x96xf32> -> vector<8x96xf32>
    %1156 = arith.addf %1152, %1155 : vector<8x96xf32>
    %1157 = vector.broadcast %8 : vector<1x96xf32> to vector<8x96xf32>
    %1158 = arith.addf %1156, %1157 : vector<8x96xf32>
    %cst_223 = arith.constant 0.000000e+00 : f32
    %1159 = vector.broadcast %cst_223 : f32 to vector<8x96xf32>
    %1160 = arith.maximumf %1158, %1159 : vector<8x96xf32>
    %c432 = arith.constant 432 : index
    %c0_224 = arith.constant 0 : index
    %1161 = vector.load %arg2[%c432, %c0_224] : memref<544x128xf32, #tpu.memory_space<vmem>>, vector<96x128xf32>
    %cst_225 = arith.constant dense<0.000000e+00> : vector<8x128xf32>
    %1162 = tpu.matmul %1160, %1161, %cst_225 {dimension_numbers = #tpu.dot_dimension_numbers<[1], [0], [0], [1], [0, 0, 1, 1], [], []>} : vector<8x96xf32>, vector<96x128xf32>, vector<8x128xf32> -> vector<8x128xf32>
    %1163 = vector.broadcast %9 : vector<1x128xf32> to vector<8x128xf32>
    %1164 = arith.addf %1162, %1163 : vector<8x128xf32>
    %1165 = tpu.iota {dimensions = array<i32: 1>} : vector<8x128xi32>
    %c9_i32 = arith.constant 9 : i32
    %1166 = vector.broadcast %c9_i32 : i32 to vector<8x128xi32>
    %1167 = arith.cmpi eq, %1165, %1166 : vector<8x128xi32>
    %1168 = math.tanh %1164 : vector<8x128xf32>
    %1169 = arith.select %1167, %1168, %1164 : vector<8x128xi1>, vector<8x128xf32>
    %c0_226 = arith.constant 0 : index
    %c0_227 = arith.constant 0 : index
    %1170 = vector.load %arg3[%c0_226, %c0_227] : memref<8x128xf32, #tpu.memory_space<vmem>>, vector<8x128xf32>
    tpu.vector_store %arg3[%c0_226, %c0_227], %1169 {strides = array<i32>} : memref<8x128xf32, #tpu.memory_space<vmem>>, vector<8x128xf32>,
    return
  }
  func.func @transform_0(%arg0: i32) -> (i32, i32) {
    %c0_i32 = arith.constant 0 : i32
    %c0_i32_0 = arith.constant 0 : i32
    return %arg0, %c0_i32 : i32, i32
  }
  func.func @transform_1(%arg0: i32) -> (i32, i32) {
    %c0_i32 = arith.constant 0 : i32
    %c0_i32_0 = arith.constant 0 : i32
    %c0_i32_1 = arith.constant 0 : i32
    return %c0_i32, %c0_i32_0 : i32, i32
  }
  func.func @transform_2(%arg0: i32) -> (i32, i32) {
    %c0_i32 = arith.constant 0 : i32
    %c0_i32_0 = arith.constant 0 : i32
    return %arg0, %c0_i32 : i32, i32
  }
}

</mosaic_0001>

<bundles_post_ra>
// kernel: tpu_custom_call.1
= control target key start
LH: loop header
LB: loop body
LE: loop exit
PB: predicated region body
PF: predicated region fallthrough
CT: control target
= control target key end

     0   :  { %7 = vsyncpa [#allocation3], 0  ;;  %s5540_s0 = inlined_call_operand.vmem [shape: f32[72,12], index: 0, kind: input, shape index: {}]   ;;  %s5541_s1 = inlined_call_operand.hbm [shape: f32[544,128], index: 1, kind: input, shape index: {}]   ;;  %s5542_s2 = inlined_call_operand.hbm [shape: f32[8,128], index: 2, kind: output, shape index: {}]  }
   0x1   :  { %8 = vsyncpa [#allocation4], 0  ;;  %s4012_s9 = smov [#allocation2]   ;;  %s3964_s13 = scalar_lea.hbm %s5541_s1, 8704 }
   0x2   :  { %s16_s10 = sshll.u32 %s4012_s9, 4  ;;  %p3965_p0 = scmp.ne.s32.totalorder %s5541_s1, %s3964_s13  ;;  %s17_s10 = int_to_ptr.vmem [resolvable:$true] %s16_s10 }
   0x3   :  { %p3968_p1 = scmp.lt.u32.totalorder %s3964_s13, %s5541_s1 }
   0x5   :  { %p3970_p2 = pnand %p3968_p1, %p3965_p0 }
   0x7   :  { %3973 = shalt.err (!%p3970_p2)
}
   0x8   :  { %s3974_s18 = scalar_lea.vmem %s17_s10, 8704  ;;  %p3979_p4 = scmp.lt.s32.totalorder %s17_s10, %s17_s10 }
   0x9   :  { %p3975_p3 = scmp.ne.s32.totalorder %s17_s10, %s3974_s18  ;;  %p3980_p5 = scmp.lt.s32.totalorder %s3974_s18, %s3974_s18 }
   0xb   :  { %p3981_p6 = por %p3980_p5, %p3979_p4 }
   0xd   :  { %p3982_p7 = pnand %p3981_p6, %p3975_p3 }
   0xf   :  { %3985 = shalt.err (!%p3982_p7)
}
  0x10   :  { %s4013_s19 = smov 128   ;;  %s4014_s20 = smov 8  }
  0x11   :  { %22 = dma.hbm_to_vmem [thread:$0]  %s5541_s1, 8704, %s17_s10, [#allocation3], %s4013_s19, %s4013_s19, %s4014_s20  }
  0x12   :  { %4008 = dma.done.wait [#allocation3], 8704  }
  0x13   :  { %4009 = vsyncadd [#allocation3], 4294958592  ;;  %v5543_v0 = vmov 0.0|0.0   ;;  %vm4016_vm0 = vmmov 0   ;;  %v5545_v1 = vmov 0.0   ;;  %vm67_vm1 = vcmask 1043456  }
  0x14   :  { %3613 = vmatprep.subr.bf16.mxu0 %v5543_v0  ;;  %3713 = vmatprep.subr.bf16.mxu1 %v5543_v0  ;;  %v37_v2 = vld [vmem:[#allocation2] sm:$0xff]  ;;  %v38_v3 = vld [vmem:[#allocation2 + $0x8] sm:$0xf]  ;;  %vm4018_vm2 = vmmov 1   ;;  %vm39_vm4 = vcmask 97280   ;;  %v30_v7 = vld [vmem:[%s5540_s0 + $0x10] sm:$0xff] }
  0x15   :  { %3347 = vmatprep.mubr.msk.f32.mxu0 %vm4016_vm0, %v5545_v1  ;;  %3388 = vmatprep.mubr.msk.f32.mxu1 %vm4016_vm0, %v5545_v1  ;;  %vm3615_vm3 = vmpackc.low %vm67_vm1, %vm4018_vm2  ;;  %v3614_v4 = vpack.c.bf16 %v38_v3, %v37_v2  ;;  %v28_v5 = vld [vmem:[%s5540_s0] sm:$0xff]  ;;  %v29_v6 = vld [vmem:[%s5540_s0 + $0x8] sm:$0xff]  ;;  %s4019_s12 = smov 96   ;;  %vm190_vm5 = vcmask 261120   ;;  %vm2077_vm6 = vcmask 523264   ;;  %vm3089_vm7 = vcmask 785408  }
  0x16   :  { %v31_v8 = vld [vmem:[%s5540_s0 + $0x18] sm:$0xff]  ;;  %v32_v9 = vld [vmem:[%s5540_s0 + $0x20] sm:$0xff]  ;;  %v33_v10 = vld [vmem:[%s5540_s0 + $0x28] sm:$0xff]  ;;  %s4021_s13 = smov [#allocation5]  }
  0x17   :  { %3616 = vmatpush3.bf16.msk.msra.mxu0 %vm3615_vm3, %v3614_v4  ;;  %v34_v11 = vld [vmem:[%s5540_s0 + $0x30] sm:$0xff]  ;;  %v35_v12 = vld [vmem:[%s5540_s0 + $0x38] sm:$0xff]  ;;  %v36_v13 = vld [vmem:[%s5540_s0 + $0x40] sm:$0xff]  ;;  %s4020_s0 = smov 32   ;;  %s3175_s14 = sshll.u32 %s4021_s13, 4  ;;  %s3176_s14 = int_to_ptr.vmem [resolvable:$true] %s3175_s14 }
  0x18   :  { %3617 = vmatprep.subr.bf16.mxu0 %v5543_v0  ;;  %s3986_s15 = scalar_lea.vmem %s3176_s14, 128  ;;  %p3991_p9 = scmp.lt.s32.totalorder %s3176_s14, %s3176_s14 }
  0x19   :  { %p3987_p8 = scmp.ne.s32.totalorder %s3176_s14, %s3986_s15  ;;  %p3992_p10 = scmp.lt.s32.totalorder %s3986_s15, %s3986_s15 }
  0x1a   :  { %3348 = vmatmul.mubr.msk.f32.vlgmr.msra.gmra.mrb[0].mxu0 %vm39_vm4, %v28_v5 }
  0x1b   :  { %3350 = vmatprep.mubr.msk.f32.mxu0 %vm4016_vm0, %v5545_v1  ;;  %p3993_p11 = por %p3992_p10, %p3991_p9 }
  0x1d   :  { %p3994_p12 = pnand %p3993_p11, %p3987_p8 }
  0x1e   :  { %3351 = vmatmul.mubr.msk.f32.gmra.mrb[2].mxu0 %vm39_vm4, %v29_v6 }
  0x1f   :  { %3353 = vmatprep.mubr.msk.f32.mxu0 %vm4016_vm0, %v5545_v1 }
  0x22   :  { %3354 = vmatmul.mubr.msk.f32.gmra.mrb[4].mxu0 %vm39_vm4, %v30_v7 }
  0x23   :  { %3356 = vmatprep.mubr.msk.f32.mxu0 %vm4016_vm0, %v5545_v1 }
  0x26   :  { %3357 = vmatmul.mubr.msk.f32.gmra.mrb[6].mxu0 %vm39_vm4, %v31_v8 }
  0x27   :  { %3359 = vmatprep.mubr.msk.f32.mxu0 %vm4016_vm0, %v5545_v1 }
  0x2a   :  { %3360 = vmatmul.mubr.msk.f32.gmra.mrb[8].mxu0 %vm39_vm4, %v32_v9 }
  0x2b   :  { %3362 = vmatprep.mubr.msk.f32.mxu0 %vm4016_vm0, %v5545_v1 }
  0x2e   :  { %3363 = vmatmul.mubr.msk.f32.gmra.mrb[10].mxu0 %vm39_vm4, %v33_v10 }
  0x2f   :  { %3365 = vmatprep.mubr.msk.f32.mxu0 %vm4016_vm0, %v5545_v1 }
  0x32   :  { %3366 = vmatmul.mubr.msk.f32.gmra.mrb[12].mxu0 %vm39_vm4, %v34_v11 }
  0x33   :  { %3368 = vmatprep.mubr.msk.f32.mxu0 %vm4016_vm0, %v5545_v1 }
  0x36   :  { %3369 = vmatmul.mubr.msk.f32.gmra.mrb[14].mxu0 %vm39_vm4, %v35_v12 }
  0x37   :  { %3371 = vmatprep.mubr.msk.f32.mxu0 %vm4016_vm0, %v5545_v1 }
  0x3a   :  { %3372 = vmatmul.mubr.msk.f32.gmra.mrb[16].mxu0 %vm39_vm4, %v36_v13 }
  0x3b   :  { %3382 = vmatprep.mubr.msk.f32.mxu0 %vm4016_vm0, %v5545_v1 }
  0xed   :  { %v4110_v14 = vpop.f32.mrb[0].mxu0 }
  0xee   :  { %182 = vrot.lane.b32.xlu0 %v4110_v14, %s4019_s12  ;;  %v3349_v15 = vpop.f32.mrb[1].mxu0 }
  0xf1   :  { %v4114_v16 = vpop.f32.mrb[2].mxu0 }
  0xf2   :  { %196 = vrot.lane.b32.xlu1 %v4114_v16, %s4019_s12  ;;  %v3352_v17 = vpop.f32.mrb[3].mxu0 }
  0xf5   :  { %v4118_v18 = vpop.f32.mrb[4].mxu0 }
  0xf6   :  { %209 = vrot.lane.b32.xlu1 %v4118_v18, %s4019_s12  ;;  %v3355_v19 = vpop.f32.mrb[5].mxu0 }
  0xf9   :  { %v4122_v20 = vpop.f32.mrb[6].mxu0 }
  0xfa   :  { %222 = vrot.lane.b32.xlu0 %v4122_v20, %s4019_s12  ;;  %v3358_v21 = vpop.f32.mrb[7].mxu0 }
  0xfd   :  { %v4126_v22 = vpop.f32.mrb[8].mxu0 }
  0xfe   :  { %235 = vrot.lane.b32.xlu0 %v4126_v22, %s4019_s12  ;;  %v3361_v23 = vpop.f32.mrb[9].mxu0 }
 0x101   :  { %v4130_v24 = vpop.f32.mrb[10].mxu0 }
 0x102   :  { %248 = vrot.lane.b32.xlu1 %v4130_v24, %s4019_s12  ;;  %v3364_v25 = vpop.f32.mrb[11].mxu0 }
 0x105   :  { %v4134_v26 = vpop.f32.mrb[12].mxu0 }
 0x106   :  { %261 = vrot.lane.b32.xlu0 %v4134_v26, %s4019_s12  ;;  %v3367_v27 = vpop.f32.mrb[13].mxu0 }
 0x109   :  { %v4138_v28 = vpop.f32.mrb[14].mxu0 }
 0x10a   :  { %274 = vrot.lane.b32.xlu1 %v4138_v28, %s4019_s12  ;;  %v3370_v29 = vpop.f32.mrb[15].mxu0 }
 0x10d   :  { %v4142_v30 = vpop.f32.mrb[16].mxu0 }
 0x10e   :  { %287 = vrot.lane.b32.xlu0 %v4142_v30, %s4019_s12  ;;  %v3373_v31 = vpop.f32.mrb[17].mxu0 }
 0x160   :  { %v4146_v32 = vpop.permute.xlu0 %182 }
 0x161   :  { %v363_v33 = vmul.f32 %v4146_v32, %v4114_v16  ;;  %v185_v34 = vmul.f32 %v4146_v32, %v4110_v14  ;;  %v508_v37 = vmul.f32 %v4146_v32, %v4118_v18 }
 0x163   :  { %365 = vrot.lane.b32.xlu1 %v363_v33, %s4019_s12  ;;  %187 = vrot.lane.b32.xlu0 %v185_v34, %s4019_s12 }
 0x164   :  { %v4154_v35 = vpop.permute.xlu1 %196 }
 0x165   :  { %v517_v36 = vmul.f32 %v4154_v35, %v4118_v18  ;;  %v199_v40 = vmul.f32 %v4154_v35, %v4110_v14  ;;  %v372_v43 = vmul.f32 %v4154_v35, %v4114_v16 }
 0x167   :  { %519 = vrot.lane.b32.xlu1 %v517_v36, %s4019_s12  ;;  %510 = vrot.lane.b32.xlu0 %v508_v37, %s4019_s12 }
 0x168   :  { %v4162_v38 = vpop.permute.xlu1 %209 }
 0x169   :  { %v212_v39 = vmul.f32 %v4162_v38, %v4110_v14  ;;  %v381_v42 = vmul.f32 %v4162_v38, %v4114_v16 }
 0x16b   :  { %214 = vrot.lane.b32.xlu1 %v212_v39, %s4019_s12  ;;  %201 = vrot.lane.b32.xlu0 %v199_v40, %s4019_s12 }
 0x16c   :  { %v4170_v41 = vpop.permute.xlu0 %222 }
 0x16d   :  { %v225_v46 = vmul.f32 %v4170_v41, %v4110_v14  ;;  %v390_v48 = vmul.f32 %v4170_v41, %v4114_v16 }
 0x16f   :  { %383 = vrot.lane.b32.xlu1 %v381_v42, %s4019_s12  ;;  %374 = vrot.lane.b32.xlu0 %v372_v43, %s4019_s12 }
 0x170   :  { %v4178_v44 = vpop.permute.xlu0 %235 }
 0x171   :  { %v238_v45 = vmul.f32 %v4178_v44, %v4110_v14  ;;  %v399_v47 = vmul.f32 %v4178_v44, %v4114_v16 }
 0x173   :  { %240 = vrot.lane.b32.xlu1 %v238_v45, %s4019_s12  ;;  %227 = vrot.lane.b32.xlu0 %v225_v46, %s4019_s12 }
 0x174   :  { %v4190_v49 = vpop.permute.xlu1 %248 }
 0x175   :  { %v251_v50 = vmul.f32 %v4190_v49, %v4110_v14  ;;  %v408_v51 = vmul.f32 %v4190_v49, %v4114_v16 }
 0x177   :  { %401 = vrot.lane.b32.xlu1 %v399_v47, %s4019_s12  ;;  %392 = vrot.lane.b32.xlu0 %v390_v48, %s4019_s12 }
 0x178   :  { %v4198_v52 = vpop.permute.xlu0 %261 }
 0x179   :  { %v417_v53 = vmul.f32 %v4198_v52, %v4114_v16  ;;  %v264_v54 = vmul.f32 %v4198_v52, %v4110_v14 }
 0x17b   :  { %253 = vrot.lane.b32.xlu1 %v251_v50, %s4019_s12  ;;  %410 = vrot.lane.b32.xlu0 %v408_v51, %s4019_s12 }
 0x17c   :  { %v4206_v55 = vpop.permute.xlu1 %274 }
 0x17d   :  { %v277_v56 = vmul.f32 %v4206_v55, %v4110_v14  ;;  %v426_v57 = vmul.f32 %v4206_v55, %v4114_v16 }
 0x17f   :  { %419 = vrot.lane.b32.xlu1 %v417_v53, %s4019_s12  ;;  %266 = vrot.lane.b32.xlu0 %v264_v54, %s4019_s12 }
 0x180   :  { %v4214_v58 = vpop.permute.xlu0 %287 }
 0x181   :  { %v435_v59 = vmul.f32 %v4214_v58, %v4114_v16  ;;  %v290_v60 = vmul.f32 %v4214_v58, %v4110_v14 }
 0x183   :  { %279 = vrot.lane.b32.xlu1 %v277_v56, %s4019_s12  ;;  %428 = vrot.lane.b32.xlu0 %v426_v57, %s4019_s12  ;;  %v535_v56 = vmul.f32 %v4170_v41, %v4118_v18  ;;  %v653_v57 = vmul.f32 %v4146_v32, %v4122_v20 }
 0x187   :  { %437 = vrot.lane.b32.xlu1 %v435_v59, %s4019_s12  ;;  %292 = vrot.lane.b32.xlu0 %v290_v60, %s4019_s12  ;;  %v526_v59 = vmul.f32 %v4162_v38, %v4118_v18  ;;  %v662_v60 = vmul.f32 %v4154_v35, %v4122_v20 }
 0x1d5   :  { %v366_v61 = vpop.permute.xlu1 %365  ;;  %v188_v62 = vpop.permute.xlu0 %187 }
 0x1d6   :  { %v191_v63 = vsel %vm190_vm5, %v188_v62, 0.0  ;;  %v368_v4 = vsel %vm190_vm5, %v366_v61, 0.0  ;;  %v544_v61 = vmul.f32 %v4178_v44, %v4118_v18  ;;  %v671_v62 = vmul.f32 %v4162_v38, %v4122_v20 }
 0x1d7   :  { %192 = vadd.xlane.f32.xlu1 %v191_v63  ;;  %v680_v63 = vmul.f32 %v4170_v41, %v4122_v20 }
 0x1d9   :  { %v520_v2 = vpop.permute.xlu1 %519  ;;  %v511_v3 = vpop.permute.xlu0 %510 }
 0x1da   :  { %v513_v5 = vsel %vm190_vm5, %v511_v3, 0.0  ;;  %v522_v53 = vsel %vm190_vm5, %v520_v2, 0.0  ;;  %v798_v2 = vmul.f32 %v4146_v32, %v4126_v22  ;;  %v807_v3 = vmul.f32 %v4154_v35, %v4126_v22 }
 0x1db   :  { %369 = vadd.xlane.f32.xlu1 %v368_v4  ;;  %514 = vadd.xlane.f32.xlu0 %v513_v5  ;;  %v562_v4 = vmul.f32 %v4198_v52, %v4118_v18  ;;  %v689_v5 = vmul.f32 %v4178_v44, %v4122_v20 }
 0x1dd   :  { %v215_v6 = vpop.permute.xlu1 %214  ;;  %v202_v7 = vpop.permute.xlu0 %201 }
 0x1de   :  { %v217_v8 = vsel %vm190_vm5, %v215_v6, 0.0  ;;  %v204_v9 = vsel %vm190_vm5, %v202_v7, 0.0  ;;  %v571_v6 = vmul.f32 %v4206_v55, %v4118_v18  ;;  %v825_v7 = vmul.f32 %v4170_v41, %v4126_v22 }
 0x1df   :  { %218 = vadd.xlane.f32.xlu1 %v217_v8  ;;  %205 = vadd.xlane.f32.xlu0 %v204_v9  ;;  %v952_v8 = vmul.f32 %v4154_v35, %v4130_v24  ;;  %v707_v9 = vmul.f32 %v4198_v52, %v4122_v20 }
 0x1e1   :  { %v384_v10 = vpop.permute.xlu1 %383  ;;  %v375_v11 = vpop.permute.xlu0 %374 }
 0x1e2   :  { %v386_v12 = vsel %vm190_vm5, %v384_v10, 0.0  ;;  %v377_v13 = vsel %vm190_vm5, %v375_v11, 0.0  ;;  %v961_v10 = vmul.f32 %v4162_v38, %v4130_v24  ;;  %v843_v11 = vmul.f32 %v4190_v49, %v4126_v22 }
 0x1e3   :  { %387 = vadd.xlane.f32.xlu1 %v386_v12  ;;  %378 = vadd.xlane.f32.xlu0 %v377_v13  ;;  %v1088_v12 = vmul.f32 %v4146_v32, %v4134_v26  ;;  %v725_v13 = vmul.f32 %v4214_v58, %v4122_v20 }
 0x1e5   :  { %v241_v15 = vpop.permute.xlu1 %240  ;;  %v228_v17 = vpop.permute.xlu0 %227 }
 0x1e6   :  { %v230_v19 = vsel %vm190_vm5, %v228_v17, 0.0  ;;  %v243_v34 = vsel %vm190_vm5, %v241_v15, 0.0  ;;  %v979_v15 = vmul.f32 %v4178_v44, %v4130_v24  ;;  %v861_v17 = vmul.f32 %v4206_v55, %v4126_v22 }
 0x1e7   :  { %231 = vadd.xlane.f32.xlu1 %v230_v19  ;;  %v1115_v19 = vmul.f32 %v4170_v41, %v4134_v26 }
 0x1e9   :  { %v402_v21 = vpop.permute.xlu1 %401  ;;  %v393_v23 = vpop.permute.xlu0 %392 }
 0x1ea   :  { %v404_v25 = vsel %vm190_vm5, %v402_v21, 0.0  ;;  %v395_v27 = vsel %vm190_vm5, %v393_v23, 0.0  ;;  %v1242_v21 = vmul.f32 %v4154_v35, %v4138_v28 }
 0x1eb   :  { %405 = vadd.xlane.f32.xlu1 %v404_v25  ;;  %396 = vadd.xlane.f32.xlu0 %v395_v27  ;;  %v997_v25 = vmul.f32 %v4198_v52, %v4130_v24 }
 0x1ed   :  { %v254_v29 = vpop.permute.xlu1 %253  ;;  %v411_v31 = vpop.permute.xlu0 %410 }
 0x1ee   :  { %v256_v33 = vsel %vm190_vm5, %v254_v29, 0.0  ;;  %v413_v40 = vsel %vm190_vm5, %v411_v31, 0.0  ;;  %v1251_v31 = vmul.f32 %v4162_v38, %v4138_v28 }
 0x1ef   :  { %257 = vadd.xlane.f32.xlu1 %v256_v33  ;;  %244 = vadd.xlane.f32.xlu0 %v243_v34 }
 0x1f1   :  { %v420_v36 = vpop.permute.xlu1 %419  ;;  %v267_v37 = vpop.permute.xlu0 %266 }
 0x1f2   :  { %v422_v39 = vsel %vm190_vm5, %v420_v36, 0.0  ;;  %v269_v46 = vsel %vm190_vm5, %v267_v37, 0.0  ;;  %v1133_v36 = vmul.f32 %v4190_v49, %v4134_v26 }
 0x1f3   :  { %423 = vadd.xlane.f32.xlu1 %v422_v39  ;;  %414 = vadd.xlane.f32.xlu0 %v413_v40  ;;  %v1378_v40 = vmul.f32 %v4146_v32, %v4142_v30 }
 0x1f5   :  { %v280_v42 = vpop.permute.xlu1 %279  ;;  %v429_v43 = vpop.permute.xlu0 %428 }
 0x1f6   :  { %v282_v45 = vsel %vm190_vm5, %v280_v42, 0.0  ;;  %v431_v50 = vsel %vm190_vm5, %v429_v43, 0.0 }
 0x1f7   :  { %283 = vadd.xlane.f32.xlu1 %v282_v45  ;;  %270 = vadd.xlane.f32.xlu0 %v269_v46  ;;  %v1015_v45 = vmul.f32 %v4214_v58, %v4130_v24 }
 0x1f9   :  { %v438_v47 = vpop.permute.xlu1 %437  ;;  %v293_v51 = vpop.permute.xlu0 %292 }
 0x1fa   :  { %v440_v48 = vsel %vm190_vm5, %v438_v47, 0.0  ;;  %v295_v54 = vsel %vm190_vm5, %v293_v51, 0.0  ;;  %v1269_v51 = vmul.f32 %v4178_v44, %v4138_v28 }
 0x1fb   :  { %441 = vadd.xlane.f32.xlu1 %v440_v48  ;;  %432 = vadd.xlane.f32.xlu0 %v431_v50 }
 0x1ff   :  { %523 = vadd.xlane.f32.xlu1 %v522_v53  ;;  %296 = vadd.xlane.f32.xlu0 %v295_v54 }
 0x210   :  { %537 = vrot.lane.b32.xlu1 %v535_v56, %s4019_s12 }
 0x214   :  { %655 = vrot.lane.b32.xlu1 %v653_v57, %s4019_s12 }
 0x215   :  { %528 = vrot.lane.b32.xlu0 %v526_v59, %s4019_s12 }
 0x218   :  { %664 = vrot.lane.b32.xlu1 %v662_v60, %s4019_s12 }
 0x21c   :  { %546 = vrot.lane.b32.xlu1 %v544_v61, %s4019_s12 }
 0x220   :  { %673 = vrot.lane.b32.xlu1 %v671_v62, %s4019_s12  ;;  %v1151_v62 = vmul.f32 %v4206_v55, %v4134_v26 }
 0x224   :  { %682 = vrot.lane.b32.xlu1 %v680_v63, %s4019_s12 }
 0x228   :  { %800 = vrot.lane.b32.xlu1 %v798_v2, %s4019_s12 }
 0x22c   :  { %809 = vrot.lane.b32.xlu1 %v807_v3, %s4019_s12 }
 0x230   :  { %564 = vrot.lane.b32.xlu1 %v562_v4, %s4019_s12 }
 0x234   :  { %691 = vrot.lane.b32.xlu1 %v689_v5, %s4019_s12 }
 0x238   :  { %573 = vrot.lane.b32.xlu1 %v571_v6, %s4019_s12 }
 0x23c   :  { %827 = vrot.lane.b32.xlu1 %v825_v7, %s4019_s12 }
 0x240   :  { %954 = vrot.lane.b32.xlu1 %v952_v8, %s4019_s12 }
 0x244   :  { %709 = vrot.lane.b32.xlu1 %v707_v9, %s4019_s12  ;;  %v1405_v9 = vmul.f32 %v4170_v41, %v4142_v30 }
 0x248   :  { %963 = vrot.lane.b32.xlu1 %v961_v10, %s4019_s12 }
 0x24c   :  { %845 = vrot.lane.b32.xlu1 %v843_v11, %s4019_s12 }
 0x250   :  { %1090 = vrot.lane.b32.xlu1 %v1088_v12, %s4019_s12 }
 0x254   :  { %727 = vrot.lane.b32.xlu1 %v725_v13, %s4019_s12 }
 0x258   :  { %981 = vrot.lane.b32.xlu1 %v979_v15, %s4019_s12 }
 0x25c   :  { %863 = vrot.lane.b32.xlu1 %v861_v17, %s4019_s12 }
 0x260   :  { %1117 = vrot.lane.b32.xlu1 %v1115_v19, %s4019_s12 }
 0x264   :  { %v193_v23 = vpop.xlane.xlu1 %192  ;;  %1244 = vrot.lane.b32.xlu1 %v1242_v21, %s4019_s12  ;;  %v1287_v21 = vmul.f32 %v4198_v52, %v4138_v28 }
 0x265   :  { %v4338_v61 = vmul.f32 0.17677669, %v193_v23 }
 0x268   :  { %v370_v27 = vpop.xlane.xlu1 %369  ;;  %999 = vrot.lane.b32.xlu1 %v997_v25, %s4019_s12  ;;  %v4316_v29 = vpop.xlane.xlu0 %514 }
 0x269   :  { %v371_v46 = vmul.f32 0.17677669, %v370_v27 }
 0x26c   :  { %v219_v33 = vpop.xlane.xlu1 %218  ;;  %1253 = vrot.lane.b32.xlu1 %v1251_v31, %s4019_s12  ;;  %v206_v34 = vpop.xlane.xlu0 %205 }
 0x26d   :  { %v4335_v56 = vmul.f32 0.17677669, %v206_v34  ;;  %v4345_v7 = vmul.f32 0.17677669, %v219_v33 }
 0x26f   :  { %v299_v2 = vmax.f32 %v4338_v61, %v4335_v56 }
 0x270   :  { %v388_v37 = vpop.xlane.xlu1 %387  ;;  %1135 = vrot.lane.b32.xlu1 %v1133_v36, %s4019_s12  ;;  %v379_v39 = vpop.xlane.xlu0 %378 }
 0x271   :  { %v4327_v43 = vmul.f32 0.17677669, %v379_v39  ;;  %v389_v53 = vmul.f32 0.17677669, %v388_v37  ;;  %v300_v11 = vmax.f32 %v299_v2, %v4345_v7  ;;  %v1296_v39 = vmul.f32 %v4206_v55, %v4138_v28 }
 0x273   :  { %v444_v50 = vmax.f32 %v371_v46, %v4327_v43 }
 0x274   :  { %v232_v42 = vpop.xlane.xlu1 %231  ;;  %1380 = vrot.lane.b32.xlu1 %v1378_v40, %s4019_s12 }
 0x275   :  { %v445_v60 = vmax.f32 %v444_v50, %v389_v53  ;;  %v4347_v8 = vmul.f32 0.17677669, %v232_v42 }
 0x277   :  { %v301_v19 = vmax.f32 %v300_v11, %v4347_v8 }
 0x278   :  { %v406_v47 = vpop.xlane.xlu1 %405  ;;  %v397_v48 = vpop.xlane.xlu0 %396  ;;  %1017 = vrot.lane.b32.xlu1 %v1015_v45, %s4019_s12 }
 0x279   :  { %v398_v54 = vmul.f32 0.17677669, %v397_v48  ;;  %v407_v5 = vmul.f32 0.17677669, %v406_v47 }
 0x27b   :  { %v446_v63 = vmax.f32 %v445_v60, %v398_v54 }
 0x27c   :  { %v258_v57 = vpop.xlane.xlu1 %257  ;;  %v245_v59 = vpop.xlane.xlu0 %244  ;;  %1271 = vrot.lane.b32.xlu1 %v1269_v51, %s4019_s12  ;;  %v1305_v51 = vmul.f32 %v4214_v58, %v4138_v28 }
 0x27d   :  { %v447_v10 = vmax.f32 %v446_v63, %v407_v5  ;;  %v4352_v12 = vmul.f32 0.17677669, %v245_v59  ;;  %v4360_v36 = vmul.f32 0.17677669, %v258_v57 }
 0x27f   :  { %v302_v25 = vmax.f32 %v301_v19, %v4352_v12 }
 0x280   :  { %v424_v3 = vpop.xlane.xlu1 %423  ;;  %v415_v4 = vpop.xlane.xlu0 %414  ;;  %1153 = vrot.lane.b32.xlu1 %v1151_v62, %s4019_s12 }
 0x281   :  { %v416_v6 = vmul.f32 0.17677669, %v415_v4  ;;  %v425_v23 = vmul.f32 0.17677669, %v424_v3  ;;  %v303_v45 = vmax.f32 %v302_v25, %v4360_v36 }
 0x283   :  { %v448_v17 = vmax.f32 %v447_v10, %v416_v6 }
 0x284   :  { %v284_v13 = vpop.xlane.xlu1 %283  ;;  %v271_v15 = vpop.xlane.xlu0 %270  ;;  %1407 = vrot.lane.b32.xlu1 %v1405_v9, %s4019_s12 }
 0x285   :  { %v449_v33 = vmax.f32 %v448_v17, %v425_v23  ;;  %v4362_v37 = vmul.f32 0.17677669, %v271_v15  ;;  %v4372_v63 = vmul.f32 0.17677669, %v284_v13 }
 0x287   :  { %v304_v50 = vmax.f32 %v303_v45, %v4362_v37 }
 0x288   :  { %v442_v27 = vpop.xlane.xlu1 %441  ;;  %v433_v31 = vpop.xlane.xlu0 %432  ;;  %1289 = vrot.lane.b32.xlu1 %v1287_v21, %s4019_s12 }
 0x289   :  { %v434_v34 = vmul.f32 0.17677669, %v433_v31  ;;  %v443_v40 = vmul.f32 0.17677669, %v442_v27 }
 0x28b   :  { %v450_v42 = vmax.f32 %v449_v33, %v434_v34 }
 0x28c   :  { %v297_v47 = vpop.xlane.xlu0 %296  ;;  %1298 = vrot.lane.b32.xlu1 %v1296_v39, %s4019_s12 }
 0x28d   :  { %v451_v48 = vmax.f32 %v450_v42, %v443_v40  ;;  %v4374_v4 = vmul.f32 0.17677669, %v297_v47 }
 0x28f   :  { %v452_v57 = vsub.f32 %v371_v46, %v451_v48  ;;  %v458_v59 = vsub.f32 %v4327_v43, %v451_v48  ;;  %v464_v60 = vsub.f32 %v389_v53, %v451_v48  ;;  %v470_v62 = vsub.f32 %v398_v54, %v451_v48 }
 0x290   :  { %v476_v2 = vsub.f32 %v407_v5, %v451_v48  ;;  %v482_v3 = vsub.f32 %v416_v6, %v451_v48  ;;  %1307 = vrot.lane.b32.xlu1 %v1305_v51, %s4019_s12  ;;  %v488_v15 = vsub.f32 %v425_v23, %v451_v48  ;;  %v529_v17 = vpop.permute.xlu0 %528  ;;  %v305_v46 = vmax.f32 %v304_v50, %v4372_v63 }
 0x291   :  { %v453_v9 = vmul.f32 1.442695, %v452_v57  ;;  %v459_v10 = vmul.f32 1.442695, %v458_v59  ;;  %v465_v11 = vmul.f32 1.442695, %v464_v60  ;;  %v1441_v43 = vmul.f32 %v4206_v55, %v4142_v30 }
 0x292   :  { %v471_v19 = vmul.f32 1.442695, %v470_v62  ;;  %v494_v53 = vsub.f32 %v434_v34, %v451_v48  ;;  %v477_v54 = vmul.f32 1.442695, %v476_v2  ;;  %v306_v5 = vmax.f32 %v305_v46, %v4374_v4  ;;  %v4403_v62 = vpop.xlane.xlu1 %523 }
 0x293   :  { %3727 = vpow2.f32 %v453_v9  ;;  %v531_v6 = vsel %vm190_vm5, %v529_v17, 0.0  ;;  %v483_v13 = vmul.f32 1.442695, %v482_v3  ;;  %v489_v21 = vmul.f32 1.442695, %v488_v15 }
 0x294   :  { %3729 = vpow2.f32 %v459_v10  ;;  %1443 = vrot.lane.b32.xlu1 %v1441_v43, %s4019_s12  ;;  %532 = vadd.xlane.f32.xlu0 %v531_v6  ;;  %v307_v23 = vsub.f32 %v4338_v61, %v306_v5  ;;  %v313_v25 = vsub.f32 %v4335_v56, %v306_v5  ;;  %v319_v27 = vsub.f32 %v4345_v7, %v306_v5 }
 0x295   :  { %3731 = vpow2.f32 %v465_v11  ;;  %v495_v31 = vmul.f32 1.442695, %v494_v53  ;;  %v325_v33 = vsub.f32 %v4347_v8, %v306_v5  ;;  %v500_v34 = vsub.f32 %v443_v40, %v451_v48 }
 0x296   :  { %3733 = vpow2.f32 %v471_v19  ;;  %v308_v39 = vmul.f32 1.442695, %v307_v23  ;;  %v314_v42 = vmul.f32 1.442695, %v313_v25  ;;  %v331_v45 = vsub.f32 %v4352_v12, %v306_v5 }
 0x297   :  { %3735 = vpow2.f32 %v477_v54  ;;  %v320_v47 = vmul.f32 1.442695, %v319_v27  ;;  %v326_v50 = vmul.f32 1.442695, %v325_v33  ;;  %v337_v61 = vsub.f32 %v4360_v36, %v306_v5 }
 0x298   :  { %3737 = vpow2.f32 %v483_v13  ;;  %v501_v51 = vmul.f32 1.442695, %v500_v34  ;;  %v332_v7 = vmul.f32 1.442695, %v331_v45  ;;  %v343_v8 = vsub.f32 %v4362_v37, %v306_v5 }
 0x299   :  { %3739 = vpow2.f32 %v489_v21  ;;  %v338_v57 = vmul.f32 1.442695, %v337_v61  ;;  %v349_v36 = vsub.f32 %v4372_v63, %v306_v5  ;;  %v355_v37 = vsub.f32 %v4374_v4, %v306_v5  ;;  %v538_v5 = vpop.permute.xlu1 %537 }
 0x29a   :  { %3741 = vpow2.f32 %v495_v31  ;;  %v344_v2 = vmul.f32 1.442695, %v343_v8  ;;  %v553_v33 = vmul.f32 %v4190_v49, %v4118_v18 }
 0x29b   :  { %3743 = vpow2.f32 %v308_v39  ;;  %v350_v63 = vmul.f32 1.442695, %v349_v36  ;;  %v356_v4 = vmul.f32 1.442695, %v355_v37  ;;  %v816_v36 = vmul.f32 %v4162_v38, %v4126_v22 }
 0x29c   :  { %3745 = vpow2.f32 %v314_v42 }
 0x29d   :  { %v4389_v56 = vpop.eup %3727  ;;  %3747 = vpow2.f32 %v320_v47 }
 0x29e   :  { %v4392_v40 = vpop.eup %3729  ;;  %v456_v12 = vmul.f32 %v4389_v56, %v4110_v14  ;;  %3749 = vpow2.f32 %v326_v50 }
 0x29f   :  { %v4396_v48 = vpop.eup %3731  ;;  %v462_v59 = vmul.f32 %v4392_v40, %v4114_v16  ;;  %3751 = vpow2.f32 %v501_v51 }
 0x2a0   :  { %v4401_v60 = vpop.eup %3733  ;;  %3753 = vpow2.f32 %v332_v7  ;;  %v468_v9 = vmul.f32 %v4396_v48, %v4118_v18  ;;  %v4447_v7 = vpop.permute.xlu1 %655 }
 0x2a1   :  { %v463_v3 = vadd.f32 %v462_v59, %v456_v12  ;;  %v4408_v10 = vpop.eup %3735  ;;  %3755 = vpow2.f32 %v338_v57  ;;  %v474_v17 = vmul.f32 %v4401_v60, %v4122_v20 }
 0x2a2   :  { %v4410_v11 = vpop.eup %3737  ;;  %3757 = vpow2.f32 %v344_v2  ;;  %v480_v53 = vmul.f32 %v4408_v10, %v4126_v22 }
 0x2a3   :  { %v469_v15 = vadd.f32 %v468_v9, %v463_v3  ;;  %v4414_v19 = vpop.eup %3739  ;;  %3759 = vpow2.f32 %v350_v63  ;;  %v486_v21 = vmul.f32 %v4410_v11, %v4130_v24 }
 0x2a4   :  { %v4416_v46 = vpop.eup %3741  ;;  %3761 = vpow2.f32 %v356_v4  ;;  %v492_v39 = vmul.f32 %v4414_v19, %v4134_v26 }
 0x2a5   :  { %v475_v43 = vadd.f32 %v474_v17, %v469_v15  ;;  %v4420_v54 = vpop.eup %3743  ;;  %v498_v51 = vmul.f32 %v4416_v46, %v4138_v28 }
 0x2a6   :  { %v4422_v6 = vpop.eup %3745  ;;  %v311_v23 = vmul.f32 %v4420_v54, %v4110_v14 }
 0x2a7   :  { %v481_v13 = vadd.f32 %v480_v53, %v475_v43  ;;  %v4428_v25 = vpop.eup %3747  ;;  %v317_v27 = vmul.f32 %v4422_v6, %v4114_v16  ;;  %v698_v43 = vmul.f32 %v4190_v49, %v4122_v20  ;;  %v4470_v53 = vpop.permute.xlu1 %664 }
 0x2a8   :  { %v4432_v31 = vpop.eup %3749  ;;  %v323_v47 = vmul.f32 %v4428_v25, %v4118_v18 }
 0x2a9   :  { %v487_v34 = vadd.f32 %v486_v21, %v481_v13  ;;  %v4438_v42 = vpop.eup %3751  ;;  %v318_v45 = vadd.f32 %v317_v27, %v311_v23  ;;  %v329_v12 = vmul.f32 %v4432_v31, %v4122_v20 }
 0x2aa   :  { %v4442_v50 = vpop.eup %3753  ;;  %555 = vrot.lane.b32.xlu0 %v553_v33, %s4019_s12  ;;  %v504_v37 = vmul.f32 %v4438_v42, %v4142_v30 }
 0x2ab   :  { %v493_v61 = vadd.f32 %v492_v39, %v487_v34  ;;  %v324_v8 = vadd.f32 %v323_v47, %v318_v45  ;;  %v4451_v57 = vpop.eup %3755  ;;  %v335_v3 = vmul.f32 %v4442_v50, %v4126_v22  ;;  %v943_v34 = vmul.f32 %v4146_v32, %v4130_v24 }
 0x2ac   :  { %v4459_v9 = vpop.eup %3757  ;;  %v341_v17 = vmul.f32 %v4451_v57, %v4130_v24  ;;  %v540_v47 = vsel %vm190_vm5, %v538_v5, 0.0  ;;  %v716_v5 = vmul.f32 %v4206_v55, %v4122_v20 }
 0x2ad   :  { %v499_v59 = vadd.f32 %v498_v51, %v493_v61  ;;  %v330_v2 = vadd.f32 %v329_v12, %v324_v8  ;;  %v4466_v4 = vpop.eup %3759  ;;  %v347_v21 = vmul.f32 %v4459_v9, %v4134_v26  ;;  %v547_v61 = vpop.permute.xlu1 %546  ;;  %v580_v8 = vmul.f32 %v4214_v58, %v4118_v18 }
 0x2ae   :  { %818 = vrot.lane.b32.xlu0 %v816_v36, %s4019_s12  ;;  %v4474_v23 = vpop.eup %3761  ;;  %v353_v33 = vmul.f32 %v4466_v4, %v4138_v28  ;;  %v549_v12 = vsel %vm190_vm5, %v547_v61, 0.0  ;;  %v834_v36 = vmul.f32 %v4178_v44, %v4126_v22 }
 0x2af   :  { %v4462_v63 = vadd.f32 %v504_v37, %v499_v59  ;;  %v336_v15 = vadd.f32 %v335_v3, %v330_v2  ;;  %v359_v45 = vmul.f32 %v4474_v23, %v4142_v30  ;;  %v970_v59 = vmul.f32 %v4170_v41, %v4130_v24 }
 0x2b0   :  { %v1097_v37 = vmul.f32 %v4154_v35, %v4134_v26  ;;  %v852_v2 = vmul.f32 %v4198_v52, %v4126_v22  ;;  %v1106_v3 = vmul.f32 %v4162_v38, %v4134_v26 }
 0x2b1   :  { %v342_v13 = vadd.f32 %v341_v17, %v336_v15  ;;  %v988_v15 = vmul.f32 %v4190_v49, %v4130_v24  ;;  %v1233_v17 = vmul.f32 %v4146_v32, %v4138_v28  ;;  %v1260_v32 = vmul.f32 %v4170_v41, %v4138_v28 }
 0x2b2   :  { %700 = vrot.lane.b32.xlu0 %v698_v43, %s4019_s12  ;;  %v870_v43 = vmul.f32 %v4214_v58, %v4126_v22  ;;  %v1278_v41 = vmul.f32 %v4190_v49, %v4138_v28 }
 0x2b3   :  { %v348_v27 = vadd.f32 %v347_v21, %v342_v13  ;;  %v1124_v13 = vmul.f32 %v4178_v44, %v4134_v26  ;;  %v1006_v21 = vmul.f32 %v4206_v55, %v4130_v24  ;;  %v1396_v55 = vmul.f32 %v4162_v38, %v4142_v30 }
 0x2b4   :  { %v1423_v38 = vmul.f32 %v4190_v49, %v4142_v30 }
 0x2b5   :  { %v354_v39 = vadd.f32 %v353_v33, %v348_v27  ;;  %v1387_v27 = vmul.f32 %v4154_v35, %v4142_v30  ;;  %v674_v33 = vpop.permute.xlu1 %673 }
 0x2b6   :  { %945 = vrot.lane.b32.xlu0 %v943_v34, %s4019_s12  ;;  %v1142_v34 = vmul.f32 %v4198_v52, %v4134_v26 }
 0x2b7   :  { %v4485_v51 = vadd.f32 %v359_v45, %v354_v39  ;;  %v1160_v45 = vmul.f32 %v4214_v58, %v4134_v26 }
 0x2b8   :  { %541 = vadd.xlane.f32.xlu1 %v540_v47  ;;  %v1414_v47 = vmul.f32 %v4178_v44, %v4142_v30 }
 0x2b9   :  { %v683_v39 = vpop.permute.xlu1 %682 }
 0x2ba   :  { %582 = vrot.lane.b32.xlu0 %v580_v8, %s4019_s12 }
 0x2bc   :  { %550 = vadd.xlane.f32.xlu1 %v549_v12  ;;  %v1432_v12 = vmul.f32 %v4198_v52, %v4142_v30 }
 0x2bd   :  { %v801_v35 = vpop.permute.xlu1 %800 }
 0x2be   :  { %836 = vrot.lane.b32.xlu0 %v834_v36, %s4019_s12  ;;  %v1450_v36 = vmul.f32 %v4214_v58, %v4142_v30  ;;  %v803_v52 = vsel %vm190_vm5, %v801_v35, 0.0  ;;  %v658_v58 = vsel %vm190_vm5, %v4447_v7, 0.0 }
 0x2c1   :  { %v810_v61 = vpop.permute.xlu1 %809 }
 0x2c2   :  { %718 = vrot.lane.b32.xlu0 %v716_v5, %s4019_s12 }
 0x2c5   :  { %v565_v8 = vpop.permute.xlu1 %564 }
 0x2c6   :  { %972 = vrot.lane.b32.xlu0 %v970_v59, %s4019_s12 }
 0x2c9   :  { %v692_v5 = vpop.permute.xlu1 %691 }
 0x2ca   :  { %1099 = vrot.lane.b32.xlu0 %v1097_v37, %s4019_s12 }
 0x2cd   :  { %v574_v44 = vpop.permute.xlu1 %573 }
 0x2ce   :  { %854 = vrot.lane.b32.xlu0 %v852_v2, %s4019_s12 }
 0x2d1   :  { %v828_v59 = vpop.permute.xlu1 %827 }
 0x2d2   :  { %1108 = vrot.lane.b32.xlu0 %v1106_v3, %s4019_s12 }
 0x2d5   :  { %v955_v37 = vpop.permute.xlu1 %954 }
 0x2d6   :  { %990 = vrot.lane.b32.xlu0 %v988_v15, %s4019_s12 }
 0x2d9   :  { %v710_v49 = vpop.permute.xlu1 %709 }
 0x2da   :  { %1235 = vrot.lane.b32.xlu0 %v1233_v17, %s4019_s12 }
 0x2de   :  { %872 = vrot.lane.b32.xlu0 %v870_v43, %s4019_s12  ;;  %v964_v43 = vpop.permute.xlu1 %963 }
 0x2e2   :  { %1126 = vrot.lane.b32.xlu0 %v1124_v13, %s4019_s12 }
 0x2e6   :  { %1008 = vrot.lane.b32.xlu0 %v1006_v21, %s4019_s12  ;;  %v567_v21 = vsel %vm190_vm5, %v565_v8, 0.0  ;;  %v812_v8 = vsel %vm190_vm5, %v810_v61, 0.0 }
 0x2ea   :  { %1262 = vrot.lane.b32.xlu0 %v1260_v32, %s4019_s12  ;;  %v667_v32 = vsel %vm190_vm5, %v4470_v53, 0.0 }
 0x2ee   :  { %1389 = vrot.lane.b32.xlu0 %v1387_v27, %s4019_s12  ;;  %v846_v27 = vpop.permute.xlu1 %845 }
 0x2f2   :  { %1144 = vrot.lane.b32.xlu0 %v1142_v34, %s4019_s12 }
 0x2f6   :  { %1398 = vrot.lane.b32.xlu0 %v1396_v55, %s4019_s12 }
 0x2fa   :  { %1280 = vrot.lane.b32.xlu0 %v1278_v41, %s4019_s12  ;;  %v676_v41 = vsel %vm190_vm5, %v674_v33, 0.0 }
 0x2fe   :  { %1162 = vrot.lane.b32.xlu0 %v1160_v45, %s4019_s12  ;;  %v1091_v45 = vpop.permute.xlu1 %1090 }
 0x302   :  { %1416 = vrot.lane.b32.xlu0 %v1414_v47, %s4019_s12  ;;  %v685_v47 = vsel %vm190_vm5, %v683_v39, 0.0 }
 0x306   :  { %1425 = vrot.lane.b32.xlu0 %v1423_v38, %s4019_s12 }
 0x30a   :  { %1434 = vrot.lane.b32.xlu0 %v1432_v12, %s4019_s12  ;;  %v728_v12 = vpop.permute.xlu1 %727 }
 0x30e   :  { %1452 = vrot.lane.b32.xlu0 %v1450_v36, %s4019_s12  ;;  %v982_v39 = vpop.permute.xlu1 %981 }
 0x321   :  { %v4554_v2 = vpop.xlane.xlu0 %532 }
 0x325   :  { %v556_v3 = vpop.permute.xlu0 %555 }
 0x326   :  { %v558_v15 = vsel %vm190_vm5, %v556_v3, 0.0  ;;  %v694_v3 = vsel %vm190_vm5, %v692_v5, 0.0 }
 0x327   :  { %559 = vadd.xlane.f32.xlu1 %v558_v15 }
 0x329   :  { %v819_v17 = vpop.permute.xlu0 %818 }
 0x32a   :  { %v821_v55 = vsel %vm190_vm5, %v819_v17, 0.0 }
 0x32b   :  { %804 = vadd.xlane.f32.xlu1 %v803_v52  ;;  %v576_v52 = vsel %vm190_vm5, %v574_v44, 0.0 }
 0x32d   :  { %v701_v13 = vpop.permute.xlu0 %700  ;;  %659 = vadd.xlane.f32.xlu0 %v658_v58 }
 0x32e   :  { %v703_v7 = vsel %vm190_vm5, %v701_v13, 0.0  ;;  %v830_v13 = vsel %vm190_vm5, %v828_v59, 0.0 }
 0x32f   :  { %568 = vadd.xlane.f32.xlu1 %v567_v21  ;;  %v864_v21 = vpop.permute.xlu1 %863 }
 0x331   :  { %v946_v34 = vpop.permute.xlu0 %945  ;;  %668 = vadd.xlane.f32.xlu0 %v667_v32 }
 0x332   :  { %v948_v53 = vsel %vm190_vm5, %v946_v34, 0.0  ;;  %v957_v34 = vsel %vm190_vm5, %v955_v37, 0.0 }
 0x333   :  { %822 = vadd.xlane.f32.xlu1 %v821_v55  ;;  %v1118_v44 = vpop.permute.xlu1 %1117 }
 0x335   :  { %v583_v35 = vpop.permute.xlu0 %582  ;;  %677 = vadd.xlane.f32.xlu0 %v676_v41 }
 0x336   :  { %v585_v33 = vsel %vm190_vm5, %v583_v35, 0.0  ;;  %v712_v35 = vsel %vm190_vm5, %v710_v49, 0.0 }
 0x337   :  { %704 = vadd.xlane.f32.xlu1 %v703_v7 }
 0x339   :  { %v837_v38 = vpop.permute.xlu0 %836  ;;  %686 = vadd.xlane.f32.xlu0 %v685_v47  ;;  %v966_v47 = vsel %vm190_vm5, %v964_v43, 0.0 }
 0x33a   :  { %v839_v17 = vsel %vm190_vm5, %v837_v38, 0.0  ;;  %v1245_v38 = vpop.permute.xlu1 %1244 }
 0x33b   :  { %949 = vadd.xlane.f32.xlu1 %v948_v53 }
 0x33d   :  { %v719_v36 = vpop.permute.xlu0 %718  ;;  %813 = vadd.xlane.f32.xlu0 %v812_v8  ;;  %v848_v8 = vsel %vm190_vm5, %v846_v27, 0.0 }
 0x33e   :  { %v721_v61 = vsel %vm190_vm5, %v719_v36, 0.0  ;;  %v1000_v49 = vpop.permute.xlu1 %999 }
 0x33f   :  { %586 = vadd.xlane.f32.xlu1 %v585_v33 }
 0x341   :  { %v973_v15 = vpop.permute.xlu0 %972  ;;  %695 = vadd.xlane.f32.xlu0 %v694_v3  ;;  %v1093_v3 = vsel %vm190_vm5, %v1091_v45, 0.0 }
 0x342   :  { %v975_v5 = vsel %vm190_vm5, %v973_v15, 0.0 }
 0x343   :  { %840 = vadd.xlane.f32.xlu1 %v839_v17  ;;  %v730_v17 = vsel %vm190_vm5, %v728_v12, 0.0 }
 0x345   :  { %v1100_v58 = vpop.permute.xlu0 %1099  ;;  %577 = vadd.xlane.f32.xlu0 %v576_v52  ;;  %v1254_v52 = vpop.permute.xlu1 %1253 }
 0x346   :  { %v1102_v41 = vsel %vm190_vm5, %v1100_v58, 0.0 }
 0x347   :  { %722 = vadd.xlane.f32.xlu1 %v721_v61  ;;  %v984_v61 = vsel %vm190_vm5, %v982_v39, 0.0 }
 0x349   :  { %v855_v32 = vpop.permute.xlu0 %854  ;;  %831 = vadd.xlane.f32.xlu0 %v830_v13  ;;  %v1136_v45 = vpop.permute.xlu1 %1135 }
 0x34a   :  { %v857_v59 = vsel %vm190_vm5, %v855_v32, 0.0 }
 0x34b   :  { %976 = vadd.xlane.f32.xlu1 %v975_v5  ;;  %v866_v5 = vsel %vm190_vm5, %v864_v21, 0.0 }
 0x34d   :  { %v1109_v55 = vpop.permute.xlu0 %1108  ;;  %958 = vadd.xlane.f32.xlu0 %v957_v34 }
 0x34e   :  { %v1111_v37 = vsel %vm190_vm5, %v1109_v55, 0.0  ;;  %v1120_v55 = vsel %vm190_vm5, %v1118_v44, 0.0 }
 0x34f   :  { %1103 = vadd.xlane.f32.xlu1 %v1102_v41  ;;  %v1381_v41 = vpop.permute.xlu1 %1380 }
 0x351   :  { %v991_v7 = vpop.permute.xlu0 %990  ;;  %713 = vadd.xlane.f32.xlu0 %v712_v35 }
 0x352   :  { %v993_v33 = vsel %vm190_vm5, %v991_v7, 0.0  ;;  %v1247_v7 = vsel %vm190_vm5, %v1245_v38, 0.0 }
 0x353   :  { %858 = vadd.xlane.f32.xlu1 %v857_v59  ;;  %v1018_v21 = vpop.permute.xlu1 %1017 }
 0x355   :  { %v1236_v53 = vpop.permute.xlu0 %1235  ;;  %967 = vadd.xlane.f32.xlu0 %v966_v47 }
 0x356   :  { %v1238_v43 = vsel %vm190_vm5, %v1236_v53, 0.0  ;;  %v1002_v53 = vsel %vm190_vm5, %v1000_v49, 0.0  ;;  %v1138_v49 = vsel %vm190_vm5, %v1136_v45, 0.0  ;;  %v316_v45 = vadd.f32 %v4422_v6, %v4420_v54 }
 0x357   :  { %1112 = vadd.xlane.f32.xlu1 %v1111_v37  ;;  %v461_v37 = vadd.f32 %v4392_v40, %v4389_v56 }
 0x359   :  { %v873_v36 = vpop.permute.xlu0 %872  ;;  %849 = vadd.xlane.f32.xlu0 %v848_v8  ;;  %v467_v38 = vadd.f32 %v4396_v48, %v461_v37 }
 0x35a   :  { %v875_v27 = vsel %vm190_vm5, %v873_v36, 0.0  ;;  %v1256_v36 = vsel %vm190_vm5, %v1254_v52, 0.0  ;;  %v1383_v52 = vsel %vm190_vm5, %v1381_v41, 0.0 }
 0x35b   :  { %994 = vadd.xlane.f32.xlu1 %v993_v33  ;;  %v1272_v33 = vpop.permute.xlu1 %1271 }
 0x35d   :  { %v1127_v15 = vpop.permute.xlu0 %1126  ;;  %1094 = vadd.xlane.f32.xlu0 %v1093_v3 }
 0x35e   :  { %v1129_v32 = vsel %vm190_vm5, %v1127_v15, 0.0 }
 0x35f   :  { %1239 = vadd.xlane.f32.xlu1 %v1238_v43  ;;  %v473_v43 = vadd.f32 %v4401_v60, %v467_v38 }
 0x361   :  { %v1009_v58 = vpop.permute.xlu0 %1008  ;;  %731 = vadd.xlane.f32.xlu0 %v730_v17  ;;  %v1154_v17 = vpop.permute.xlu1 %1153  ;;  %v479_v48 = vadd.f32 %v4408_v10, %v473_v43 }
 0x362   :  { %v1011_v12 = vsel %vm190_vm5, %v1009_v58, 0.0  ;;  %v1156_v41 = vsel %vm190_vm5, %v1154_v17, 0.0 }
 0x363   :  { %876 = vadd.xlane.f32.xlu1 %v875_v27 }
 0x365   :  { %v1263_v13 = vpop.permute.xlu0 %1262  ;;  %985 = vadd.xlane.f32.xlu0 %v984_v61  ;;  %v1020_v61 = vsel %vm190_vm5, %v1018_v21, 0.0  ;;  %v1408_v60 = vpop.permute.xlu1 %1407 }
 0x366   :  { %v1265_v39 = vsel %vm190_vm5, %v1263_v13, 0.0  ;;  %v485_v13 = vadd.f32 %v4410_v11, %v479_v48  ;;  %v322_v11 = vadd.f32 %v4428_v25, %v316_v45  ;;  %v1526_v48 = vld [vmem:[#allocation2 + $0x28] sm:$0xff]  ;;  %v534_v45 = vmul.f32 0.17677669, %v4554_v2 }
 0x367   :  { %1130 = vadd.xlane.f32.xlu1 %v1129_v32 }
 0x368   :  { %v491_v10 = vadd.f32 %v4414_v19, %v485_v13  ;;  %v328_v6 = vadd.f32 %v4432_v31, %v322_v11  ;;  %v1410_v19 = vsel %vm190_vm5, %v1408_v60, 0.0  ;;  %v525_v13 = vmul.f32 0.17677669, %v4403_v62 }
 0x369   :  { %867 = vadd.xlane.f32.xlu0 %v866_v5  ;;  %v1390_v34 = vpop.permute.xlu0 %1389  ;;  %v1274_v5 = vsel %vm190_vm5, %v1272_v33, 0.0 }
 0x36a   :  { %v1392_v47 = vsel %vm190_vm5, %v1390_v34, 0.0  ;;  %v334_v25 = vadd.f32 %v4442_v50, %v328_v6 }
 0x36b   :  { %1012 = vadd.xlane.f32.xlu1 %v1011_v12 }
 0x36d   :  { %1121 = vadd.xlane.f32.xlu0 %v1120_v55  ;;  %v1145_v35 = vpop.permute.xlu0 %1144  ;;  %v1290_v55 = vpop.permute.xlu1 %1289 }
 0x36e   :  { %v1147_v8 = vsel %vm190_vm5, %v1145_v35, 0.0  ;;  %v497_v35 = vadd.f32 %v4416_v46, %v491_v10  ;;  %v1292_v46 = vsel %vm190_vm5, %v1290_v55, 0.0 }
 0x36f   :  { %1266 = vadd.xlane.f32.xlu1 %v1265_v39 }
 0x371   :  { %1248 = vadd.xlane.f32.xlu0 %v1247_v7  ;;  %v1399_v59 = vpop.permute.xlu0 %1398  ;;  %v503_v7 = vadd.f32 %v4438_v42, %v497_v35 }
 0x372   :  { %v1401_v15 = vsel %vm190_vm5, %v1399_v59, 0.0  ;;  %v1299_v59 = vpop.permute.xlu1 %1298 }
 0x373   :  { %1393 = vadd.xlane.f32.xlu1 %v1392_v47  ;;  %3763 = vrcp.f32 %v503_v7  ;;  %v1301_v31 = vsel %vm190_vm5, %v1299_v59, 0.0 }
 0x375   :  { %1003 = vadd.xlane.f32.xlu0 %v1002_v53  ;;  %v1281_v44 = vpop.permute.xlu0 %1280  ;;  %v340_v53 = vadd.f32 %v4451_v57, %v334_v25 }
 0x376   :  { %v1283_v40 = vsel %vm190_vm5, %v1281_v44, 0.0  ;;  %v1308_v21 = vpop.permute.xlu1 %1307 }
 0x377   :  { %1148 = vadd.xlane.f32.xlu1 %v1147_v8  ;;  %v346_v37 = vadd.f32 %v4459_v9, %v340_v53  ;;  %v1310_v42 = vsel %vm190_vm5, %v1308_v21, 0.0 }
 0x379   :  { %1257 = vadd.xlane.f32.xlu0 %v1256_v36  ;;  %v1163_v3 = vpop.permute.xlu0 %1162  ;;  %v352_v36 = vadd.f32 %v4466_v4, %v346_v37 }
 0x37a   :  { %v1165_v58 = vsel %vm190_vm5, %v1163_v3, 0.0  ;;  %v1444_v44 = vpop.permute.xlu1 %1443 }
 0x37b   :  { %1402 = vadd.xlane.f32.xlu1 %v1401_v15  ;;  %v1446_v50 = vsel %vm190_vm5, %v1444_v44, 0.0  ;;  %v358_v33 = vadd.f32 %v4474_v23, %v352_v36 }
 0x37d   :  { %1139 = vadd.xlane.f32.xlu0 %v1138_v49  ;;  %v1417_v56 = vpop.permute.xlu0 %1416  ;;  %v3764_v8 = vpop.eup %3763  ;;  %3765 = vrcp.f32 %v358_v33 }
 0x37e   :  { %v1419_v32 = vsel %vm190_vm5, %v1417_v56, 0.0  ;;  %v507_v38 = vmul.f32 %v3764_v8, %v4462_v63  ;;  %v542_v57 = vpop.xlane.xlu1 %541  ;;  %v1523_v56 = vld [vmem:[#allocation2 + $0x10] sm:$0xff] }
 0x37f   :  { %1284 = vadd.xlane.f32.xlu1 %v1283_v40  ;;  %v1524_v40 = vld [vmem:[#allocation2 + $0x18] sm:$0xff] }
 0x380   :  { %v3618_v17 = vpack.c.bf16 %v1524_v40, %v1523_v56 }
 0x381   :  { %1384 = vadd.xlane.f32.xlu0 %v1383_v52  ;;  %v1426_v27 = vpop.permute.xlu0 %1425  ;;  %v1525_v52 = vld [vmem:[#allocation2 + $0x20] sm:$0xff] }
 0x382   :  { %v1428_v12 = vsel %vm190_vm5, %v1426_v27, 0.0  ;;  %v551_v9 = vpop.xlane.xlu1 %550  ;;  %3619 = vmatpush3.bf16.msra.mxu0 %v3618_v17  ;;  %3715 = vmatpush3.bf16.msra.mxu1 %v3618_v17 }
 0x383   :  { %1166 = vadd.xlane.f32.xlu1 %v1165_v58  ;;  %3620 = vmatprep.subr.bf16.mxu0 %v5543_v0  ;;  %v552_v11 = vmul.f32 0.17677669, %v551_v9 }
 0x384   :  { %3714 = vmatprep.subr.bf16.mxu1 %v5543_v0 }
 0x385   :  { %1021 = vadd.xlane.f32.xlu0 %v1020_v61  ;;  %v1435_v34 = vpop.permute.xlu0 %1434 }
 0x386   :  { %v1437_v39 = vsel %vm190_vm5, %v1435_v34, 0.0  ;;  %v543_v34 = vmul.f32 0.17677669, %v542_v57 }
 0x387   :  { %1420 = vadd.xlane.f32.xlu1 %v1419_v32  ;;  %v3766_v3 = vpop.eup %3765  ;;  %v516_v32 = vmul.f32 0.17677669, %v4316_v29 }
 0x388   :  { %v362_v49 = vmul.f32 %v3766_v3, %v4485_v51  ;;  %v3621_v51 = vpack.c.bf16 %v1526_v48, %v1525_v52 }
 0x389   :  { %1275 = vadd.xlane.f32.xlu0 %v1274_v5  ;;  %v1453_v54 = vpop.permute.xlu0 %1452  ;;  %v589_v10 = vmax.f32 %v516_v32, %v525_v13 }
 0x38a   :  { %v1455_v47 = vsel %vm190_vm5, %v1453_v54, 0.0  ;;  %3622 = vmatpush3.bf16.msra.mxu0 %v3621_v51  ;;  %3716 = vmatpush3.bf16.msra.mxu1 %v3621_v51 }
 0x38b   :  { %1429 = vadd.xlane.f32.xlu1 %v1428_v12  ;;  %3623 = vmatprep.subr.bf16.mxu0 %v5543_v0  ;;  %v590_v55 = vmax.f32 %v589_v10, %v534_v45 }
 0x38c   :  { %3629 = vmatprep.subr.bf16.mxu1 %v5543_v0 }
 0x38d   :  { %1157 = vadd.xlane.f32.xlu0 %v1156_v41  ;;  %v591_v35 = vmax.f32 %v590_v55, %v543_v34 }
 0x38f   :  { %1438 = vadd.xlane.f32.xlu1 %v1437_v39  ;;  %v592_v6 = vmax.f32 %v591_v35, %v552_v11 }
 0x391   :  { %1411 = vadd.xlane.f32.xlu0 %v1410_v19 }
 0x393   :  { %1456 = vadd.xlane.f32.xlu1 %v1455_v47 }
 0x395   :  { %1293 = vadd.xlane.f32.xlu0 %v1292_v46 }
 0x399   :  { %1302 = vadd.xlane.f32.xlu0 %v1301_v31 }
 0x39d   :  { %1311 = vadd.xlane.f32.xlu0 %v1310_v42 }
 0x3a1   :  { %1447 = vadd.xlane.f32.xlu0 %v1446_v50 }
 0x3a4   :  { %1542 = vrot.lane.b32.xlu1 %v507_v38, %s4020_s0 }
 0x3b4   :  { %v560_v15 = vpop.xlane.xlu1 %559 }
 0x3b5   :  { %v561_v39 = vmul.f32 0.17677669, %v560_v15 }
 0x3b7   :  { %1540 = vrot.lane.b32.xlu0 %v362_v49, %s4020_s0  ;;  %v593_v62 = vmax.f32 %v592_v6, %v561_v39 }
 0x3b8   :  { %v4638_v4 = vpop.xlane.xlu1 %804 }
 0x3b9   :  { %v4681_v55 = vmul.f32 0.17677669, %v4638_v4 }
 0x3ba   :  { %v660_v43 = vpop.xlane.xlu0 %659 }
 0x3bb   :  { %v4661_v50 = vmul.f32 0.17677669, %v660_v43 }
 0x3bc   :  { %v569_v63 = vpop.xlane.xlu1 %568 }
 0x3bd   :  { %v570_v19 = vmul.f32 0.17677669, %v569_v63 }
 0x3be   :  { %v669_v23 = vpop.xlane.xlu0 %668 }
 0x3bf   :  { %v594_v29 = vmax.f32 %v593_v62, %v570_v19  ;;  %v4657_v31 = vmul.f32 0.17677669, %v669_v23 }
 0x3c0   :  { %v4642_v58 = vpop.xlane.xlu1 %822 }
 0x3c1   :  { %v734_v40 = vmax.f32 %v4661_v50, %v4657_v31 }
 0x3c2   :  { %v678_v27 = vpop.xlane.xlu0 %677 }
 0x3c3   :  { %v4663_v38 = vmul.f32 0.17677669, %v678_v27 }
 0x3c4   :  { %v4646_v61 = vpop.xlane.xlu1 %704 }
 0x3c5   :  { %v735_v52 = vmax.f32 %v734_v40, %v4663_v38 }
 0x3c6   :  { %v687_v60 = vpop.xlane.xlu0 %686 }
 0x3c7   :  { %v4669_v63 = vmul.f32 0.17677669, %v687_v60 }
 0x3c8   :  { %v4651_v5 = vpop.xlane.xlu1 %949 }
 0x3c9   :  { %v4706_v40 = vmul.f32 0.17677669, %v4651_v5 }
 0x3ca   :  { %v814_v12 = vpop.xlane.xlu0 %813 }
 0x3cc   :  { %v587_v41 = vpop.xlane.xlu1 %586 }
 0x3cd   :  { %v588_v25 = vmul.f32 0.17677669, %v587_v41 }
 0x3ce   :  { %v696_v54 = vpop.xlane.xlu0 %695 }
 0x3cf   :  { %v4672_v48 = vmul.f32 0.17677669, %v696_v54 }
 0x3d0   :  { %v4653_v7 = vpop.xlane.xlu1 %840 }
 0x3d2   :  { %v578_v59 = vpop.xlane.xlu0 %577 }
 0x3d3   :  { %v579_v47 = vmul.f32 0.17677669, %v578_v59  ;;  %v4693_v59 = vmul.f32 0.17677669, %v4642_v58 }
 0x3d4   :  { %v4655_v2 = vpop.xlane.xlu1 %722 }
 0x3d5   :  { %v595_v46 = vmax.f32 %v594_v29, %v579_v47 }
 0x3d6   :  { %v832_v21 = vpop.xlane.xlu0 %831 }
 0x3d7   :  { %v596_v53 = vmax.f32 %v595_v46, %v588_v25 }
 0x3d8   :  { %v4659_v37 = vpop.xlane.xlu1 %976 }
 0x3d9   :  { %v597_v42 = vsub.f32 %v516_v32, %v596_v53  ;;  %v603_v44 = vsub.f32 %v525_v13, %v596_v53  ;;  %v609_v8 = vsub.f32 %v534_v45, %v596_v53  ;;  %v615_v36 = vsub.f32 %v543_v34, %v596_v53 }
 0x3da   :  { %v621_v33 = vsub.f32 %v552_v11, %v596_v53  ;;  %v959_v57 = vpop.xlane.xlu0 %958  ;;  %v627_v43 = vsub.f32 %v561_v39, %v596_v53  ;;  %v633_v51 = vsub.f32 %v570_v19, %v596_v53  ;;  %v736_v13 = vmax.f32 %v735_v52, %v4669_v63 }
 0x3db   :  { %v598_v9 = vmul.f32 1.442695, %v597_v42  ;;  %v604_v3 = vmul.f32 1.442695, %v603_v44  ;;  %v610_v15 = vmul.f32 1.442695, %v609_v8  ;;  %v639_v45 = vsub.f32 %v579_v47, %v596_v53 }
 0x3dc   :  { %v616_v49 = vmul.f32 1.442695, %v615_v36  ;;  %v4665_v56 = vpop.xlane.xlu1 %1103  ;;  %v622_v17 = vmul.f32 1.442695, %v621_v33  ;;  %v4677_v32 = vmul.f32 0.17677669, %v814_v12  ;;  %v737_v34 = vmax.f32 %v736_v13, %v4672_v48 }
 0x3dd   :  { %3767 = vpow2.f32 %v598_v9  ;;  %v628_v60 = vmul.f32 1.442695, %v627_v43  ;;  %v634_v11 = vmul.f32 1.442695, %v633_v51  ;;  %v645_v41 = vsub.f32 %v588_v25, %v596_v53 }
 0x3de   :  { %3769 = vpow2.f32 %v604_v3  ;;  %v714_v23 = vpop.xlane.xlu0 %713  ;;  %v4686_v39 = vmul.f32 0.17677669, %v4646_v61  ;;  %v879_v12 = vmax.f32 %v4681_v55, %v4677_v32  ;;  %v640_v54 = vmul.f32 1.442695, %v639_v45 }
 0x3df   :  { %3771 = vpow2.f32 %v610_v15  ;;  %v4690_v6 = vmul.f32 0.17677669, %v714_v23  ;;  %v646_v47 = vmul.f32 1.442695, %v645_v41  ;;  %v4696_v25 = vmul.f32 0.17677669, %v832_v21 }
 0x3e0   :  { %3773 = vpow2.f32 %v616_v49  ;;  %v4674_v27 = vpop.xlane.xlu1 %858  ;;  %v738_v4 = vmax.f32 %v737_v34, %v4686_v39  ;;  %v880_v36 = vmax.f32 %v879_v12, %v4693_v59  ;;  %v4701_v58 = vmul.f32 0.17677669, %v959_v57 }
 0x3e1   :  { %3775 = vpow2.f32 %v622_v17  ;;  %v4709_v17 = vmul.f32 0.17677669, %v4655_v2 }
 0x3e2   :  { %v968_v10 = vpop.xlane.xlu0 %967  ;;  %3777 = vpow2.f32 %v628_v60  ;;  %v739_v33 = vmax.f32 %v738_v4, %v4690_v6  ;;  %v881_v43 = vmax.f32 %v880_v36, %v4696_v25  ;;  %v4718_v60 = vmul.f32 0.17677669, %v4653_v7 }
 0x3e3   :  { %3779 = vpow2.f32 %v634_v11  ;;  %v4714_v52 = vmul.f32 0.17677669, %v968_v10  ;;  %v1024_v5 = vmax.f32 %v4706_v40, %v4701_v58 }
 0x3e4   :  { %v4683_v35 = vpop.xlane.xlu1 %1112  ;;  %3781 = vpow2.f32 %v640_v54  ;;  %v740_v34 = vmax.f32 %v739_v33, %v4709_v17 }
 0x3e5   :  { %3783 = vpow2.f32 %v646_v47 }
 0x3e6   :  { %v850_v19 = vpop.xlane.xlu0 %849 }
 0x3e7   :  { %v3768_v62 = vpop.eup %3767  ;;  %v4722_v45 = vmul.f32 0.17677669, %v850_v19 }
 0x3e8   :  { %v3770_v29 = vpop.eup %3769  ;;  %v995_v61 = vpop.xlane.xlu1 %994  ;;  %v601_v46 = vmul.f32 %v3768_v62, %v4110_v14 }
 0x3e9   :  { %v3772_v53 = vpop.eup %3771  ;;  %v606_v42 = vadd.f32 %v3770_v29, %v3768_v62  ;;  %v607_v44 = vmul.f32 %v3770_v29, %v4114_v16  ;;  %v882_v62 = vmax.f32 %v881_v43, %v4718_v60  ;;  %v4730_v29 = vmax.f32 %v1024_v5, %v4714_v52 }
 0x3ea   :  { %v3774_v8 = vpop.eup %3773  ;;  %v1095_v9 = vpop.xlane.xlu0 %1094  ;;  %v613_v21 = vmul.f32 %v3772_v53, %v4118_v18  ;;  %v4746_v43 = vmul.f32 0.17677669, %v4674_v27  ;;  %v4754_v5 = vmul.f32 0.17677669, %v995_v61 }
 0x3eb   :  { %v612_v3 = vadd.f32 %v3772_v53, %v606_v42  ;;  %v608_v15 = vadd.f32 %v607_v44, %v601_v46  ;;  %v3776_v49 = vpop.eup %3775  ;;  %v619_v13 = vmul.f32 %v3774_v8, %v4122_v20  ;;  %v4734_v53 = vmul.f32 0.17677669, %v4659_v37 }
 0x3ec   :  { %v4712_v23 = vpop.xlane.xlu1 %1239  ;;  %v625_v10 = vmul.f32 %v3776_v49, %v4126_v22  ;;  %v3778_v54 = vpop.eup %3777  ;;  %v883_v42 = vmax.f32 %v882_v62, %v4722_v45  ;;  %v4737_v44 = vmul.f32 0.17677669, %v1095_v9  ;;  %v4749_v37 = vmul.f32 0.17677669, %v4683_v35 }
 0x3ed   :  { %v618_v57 = vadd.f32 %v3774_v8, %v612_v3  ;;  %v614_v51 = vadd.f32 %v613_v21, %v608_v15  ;;  %v3780_v46 = vpop.eup %3779  ;;  %v631_v61 = vmul.f32 %v3778_v54, %v4130_v24 }
 0x3ee   :  { %v732_v2 = vpop.xlane.xlu0 %731  ;;  %v3782_v21 = vpop.eup %3781 }
 0x3ef   :  { %v624_v11 = vadd.f32 %v3776_v49, %v618_v57  ;;  %v4725_v41 = vmul.f32 0.17677669, %v732_v2  ;;  %v620_v12 = vadd.f32 %v619_v13, %v614_v51  ;;  %v4743_v49 = vmul.f32 0.17677669, %v4665_v56 }
 0x3f0   :  { %v877_v4 = vpop.xlane.xlu1 %876 }
 0x3f1   :  { %v630_v7 = vadd.f32 %v3778_v54, %v624_v11  ;;  %v741_v19 = vmax.f32 %v740_v34, %v4725_v41  ;;  %v626_v47 = vadd.f32 %v625_v10, %v620_v12  ;;  %v884_v34 = vmax.f32 %v883_v42, %v4746_v43 }
 0x3f2   :  { %v986_v8 = vpop.xlane.xlu0 %985  ;;  %v643_v42 = vmul.f32 %v3782_v21, %v4138_v28 }
 0x3f3   :  { %v636_v36 = vadd.f32 %v3780_v46, %v630_v7  ;;  %v742_v33 = vsub.f32 %v4661_v50, %v741_v19  ;;  %v748_v3 = vsub.f32 %v4657_v31, %v741_v19  ;;  %v754_v15 = vsub.f32 %v4663_v38, %v741_v19  ;;  %v3784_v38 = vpop.eup %3783 }
 0x3f4   :  { %v760_v9 = vsub.f32 %v4669_v63, %v741_v19  ;;  %v1131_v57 = vpop.xlane.xlu1 %1130  ;;  %v1026_v31 = vmax.f32 %v4730_v29, %v4734_v53  ;;  %v766_v2 = vsub.f32 %v4672_v48, %v741_v19  ;;  %v1169_v63 = vmax.f32 %v4737_v44, %v4743_v49 }
 0x3f5   :  { %v642_v51 = vadd.f32 %v3782_v21, %v636_v36  ;;  %v743_v13 = vmul.f32 1.442695, %v742_v33  ;;  %v749_v50 = vmul.f32 1.442695, %v748_v3  ;;  %v755_v56 = vmul.f32 1.442695, %v754_v15 }
 0x3f6   :  { %v868_v27 = vpop.xlane.xlu0 %867  ;;  %v772_v11 = vsub.f32 %v4686_v39, %v741_v19  ;;  %v761_v12 = vmul.f32 1.442695, %v760_v9  ;;  %v778_v10 = vsub.f32 %v4690_v6, %v741_v19  ;;  %v784_v7 = vsub.f32 %v4709_v17, %v741_v19 }
 0x3f7   :  { %v648_v35 = vadd.f32 %v3784_v38, %v642_v51  ;;  %3785 = vpow2.f32 %v743_v13  ;;  %v4764_v48 = vmul.f32 0.17677669, %v868_v27  ;;  %v637_v29 = vmul.f32 %v3780_v46, %v4134_v26 }
 0x3f8   :  { %3787 = vpow2.f32 %v749_v50  ;;  %v1013_v62 = vpop.xlane.xlu1 %1012  ;;  %v767_v36 = vmul.f32 1.442695, %v766_v2  ;;  %v790_v33 = vsub.f32 %v4725_v41, %v741_v19  ;;  %v632_v3 = vadd.f32 %v631_v61, %v626_v47 }
 0x3f9   :  { %3789 = vpow2.f32 %v755_v56  ;;  %v773_v15 = vmul.f32 1.442695, %v772_v11  ;;  %v4769_v6 = vmul.f32 0.17677669, %v877_v4  ;;  %v885_v54 = vmax.f32 %v884_v34, %v4764_v48 }
 0x3fa   :  { %v1122_v39 = vpop.xlane.xlu0 %1121  ;;  %3791 = vrcp.f32 %v648_v35  ;;  %v779_v17 = vmul.f32 1.442695, %v778_v10  ;;  %v4772_v9 = vmul.f32 0.17677669, %v986_v8  ;;  %v638_v46 = vadd.f32 %v637_v29, %v632_v3 }
 0x3fb   :  { %3793 = vpow2.f32 %v761_v12  ;;  %v4775_v21 = vmul.f32 0.17677669, %v4712_v23  ;;  %v785_v13 = vmul.f32 1.442695, %v784_v7  ;;  %v4778_v41 = vmax.f32 %v885_v54, %v4769_v6 }
 0x3fc   :  { %v1267_v51 = vpop.xlane.xlu1 %1266  ;;  %v4781_v19 = vmax.f32 %v1169_v63, %v4749_v37  ;;  %3795 = vpow2.f32 %v767_v36  ;;  %v791_v4 = vmul.f32 1.442695, %v790_v33  ;;  %v644_v50 = vadd.f32 %v643_v42, %v638_v46 }
 0x3fd   :  { %v649_v56 = vmul.f32 %v3784_v38, %v4142_v30  ;;  %3797 = vpow2.f32 %v773_v15  ;;  %v887_v8 = vsub.f32 %v4681_v55, %v4778_v41  ;;  %v893_v23 = vsub.f32 %v4677_v32, %v4778_v41 }
 0x3fe   :  { %v1249_v47 = vpop.xlane.xlu0 %1248  ;;  %v899_v2 = vsub.f32 %v4693_v59, %v4778_v41  ;;  %3799 = vpow2.f32 %v779_v17  ;;  %v1027_v27 = vmax.f32 %v1026_v31, %v4772_v9  ;;  %v905_v34 = vsub.f32 %v4696_v25, %v4778_v41 }
 0x3ff   :  { %v4793_v35 = vmul.f32 0.17677669, %v1122_v39  ;;  %3801 = vpow2.f32 %v785_v13  ;;  %v888_v11 = vmul.f32 1.442695, %v887_v8  ;;  %v894_v12 = vmul.f32 1.442695, %v893_v23 }
 0x400   :  { %v1394_v63 = vpop.xlane.xlu1 %1393  ;;  %v900_v55 = vmul.f32 1.442695, %v899_v2  ;;  %3803 = vpow2.f32 %v791_v4  ;;  %v4795_v32 = vmul.f32 0.17677669, %v1131_v57  ;;  %v911_v59 = vsub.f32 %v4718_v60, %v4778_v41 }
 0x401   :  { %v3786_v38 = vpop.eup %3785  ;;  %v4799_v61 = vmul.f32 0.17677669, %v1013_v62  ;;  %3805 = vpow2.f32 %v888_v11  ;;  %v906_v25 = vmul.f32 1.442695, %v905_v34  ;;  %v917_v29 = vsub.f32 %v4722_v45, %v4778_v41 }
 0x402   :  { %v3788_v10 = vpop.eup %3787  ;;  %v1004_v31 = vpop.xlane.xlu0 %1003  ;;  %3807 = vpow2.f32 %v894_v12  ;;  %v923_v36 = vsub.f32 %v4746_v43, %v4778_v41  ;;  %v1171_v57 = vmax.f32 %v4781_v19, %v4793_v35  ;;  %v1028_v33 = vmax.f32 %v1027_v27, %v4754_v5 }
 0x403   :  { %v751_v7 = vadd.f32 %v3788_v10, %v3786_v38  ;;  %v3790_v42 = vpop.eup %3789  ;;  %3809 = vpow2.f32 %v900_v55  ;;  %v929_v3 = vsub.f32 %v4764_v48, %v4778_v41  ;;  %v4810_v15 = vmul.f32 0.17677669, %v1249_v47 }
 0x404   :  { %v1149_v60 = vpop.xlane.xlu1 %1148  ;;  %v3792_v62 = vpop.eup %3791  ;;  %v912_v54 = vmul.f32 1.442695, %v911_v59  ;;  %v935_v17 = vsub.f32 %v4769_v6, %v4778_v41  ;;  %v4814_v43 = vmul.f32 0.17677669, %v1004_v31  ;;  %v650_v46 = vadd.f32 %v649_v56, %v644_v50 }
 0x405   :  { %v757_v39 = vadd.f32 %v3790_v42, %v751_v7  ;;  %v3794_v45 = vpop.eup %3793  ;;  %3811 = vpow2.f32 %v906_v25  ;;  %v918_v4 = vmul.f32 1.442695, %v917_v29  ;;  %v924_v2 = vmul.f32 1.442695, %v923_v36 }
 0x406   :  { %v1258_v13 = vpop.xlane.xlu0 %1257  ;;  %v3796_v23 = vpop.eup %3795  ;;  %v4818_v27 = vmul.f32 0.17677669, %v1267_v51  ;;  %v652_v48 = vmul.f32 %v3792_v62, %v650_v46  ;;  %v746_v34 = vmul.f32 %v3786_v38, %v4110_v14  ;;  %v930_v6 = vmul.f32 1.442695, %v929_v3 }
 0x407   :  { %v763_v19 = vadd.f32 %v3794_v45, %v757_v39  ;;  %v4816_v8 = vmul.f32 0.17677669, %v1258_v13  ;;  %v3798_v11 = vpop.eup %3797  ;;  %v1314_v41 = vmax.f32 %v4775_v21, %v4810_v15  ;;  %v4823_v50 = vmul.f32 0.17677669, %v1394_v63 }
 0x408   :  { %v1403_v47 = vpop.xlane.xlu1 %1402  ;;  %v3800_v56 = vpop.eup %3799  ;;  %3813 = vpow2.f32 %v912_v54  ;;  %v936_v55 = vmul.f32 1.442695, %v935_v17  ;;  %v1029_v59 = vmax.f32 %v1028_v33, %v4814_v43  ;;  %1544 = vrot.lane.b32.xlu1 %v652_v48, %s4020_s0  ;;  %v752_v31 = vmul.f32 %v3788_v10, %v4114_v16 }
 0x409   :  { %v769_v12 = vadd.f32 %v3796_v23, %v763_v19  ;;  %v3802_v7 = vpop.eup %3801  ;;  %3815 = vpow2.f32 %v918_v4  ;;  %v4828_v25 = vmul.f32 0.17677669, %v1149_v60  ;;  %v4831_v29 = vmax.f32 %v1314_v41, %v4816_v8 }
 0x40a   :  { %v1140_v51 = vpop.xlane.xlu0 %1139  ;;  %v3804_v63 = vpop.eup %3803  ;;  %3817 = vpow2.f32 %v924_v2  ;;  %v1172_v36 = vmax.f32 %v1171_v57, %v4795_v32  ;;  %v753_v39 = vadd.f32 %v752_v31, %v746_v34  ;;  %v758_v33 = vmul.f32 %v3790_v42, %v4118_v18 }
 0x40b   :  { %v775_v38 = vadd.f32 %v3798_v11, %v769_v12  ;;  %v3806_v3 = vpop.eup %3805  ;;  %3819 = vpow2.f32 %v930_v6  ;;  %v4835_v10 = vmul.f32 0.17677669, %v1403_v47  ;;  %v4837_v17 = vmul.f32 0.17677669, %v1140_v51 }
 0x40c   :  { %v1285_v62 = vpop.xlane.xlu1 %1284  ;;  %v3808_v60 = vpop.eup %3807  ;;  %v1030_v13 = vmax.f32 %v1029_v59, %v4799_v61  ;;  %v759_v19 = vadd.f32 %v758_v33, %v753_v39  ;;  %v764_v4 = vmul.f32 %v3794_v45, %v4122_v20  ;;  %v891_v57 = vmul.f32 %v3806_v3, %v4110_v14 }
 0x40d   :  { %v781_v54 = vadd.f32 %v3800_v56, %v775_v38  ;;  %v3810_v2 = vpop.eup %3809  ;;  %v896_v34 = vadd.f32 %v3808_v60, %v3806_v3  ;;  %3821 = vpow2.f32 %v936_v55  ;;  %v1316_v42 = vmax.f32 %v4831_v29, %v4818_v27 }
 0x40e   :  { %v1385_v46 = vpop.xlane.xlu0 %1384  ;;  %v765_v12 = vadd.f32 %v764_v4, %v759_v19  ;;  %v770_v6 = vmul.f32 %v3796_v23, %v4126_v22  ;;  %v897_v41 = vmul.f32 %v3808_v60, %v4114_v16  ;;  %v1173_v45 = vmax.f32 %v1172_v36, %v4837_v17 }
 0x40f   :  { %v787_v48 = vadd.f32 %v3802_v7, %v781_v54  ;;  %v4844_v47 = vmul.f32 0.17677669, %v1385_v46  ;;  %v3812_v59 = vpop.eup %3811  ;;  %v902_v31 = vadd.f32 %v3810_v2, %v896_v34  ;;  %v776_v39 = vmul.f32 %v3798_v11, %v4130_v24 }
 0x410   :  { %v1167_v38 = vpop.xlane.xlu1 %1166  ;;  %v4850_v33 = vmul.f32 0.17677669, %v1285_v62  ;;  %v771_v3 = vadd.f32 %v770_v6, %v765_v12  ;;  %v898_v54 = vadd.f32 %v897_v41, %v891_v57  ;;  %v903_v46 = vmul.f32 %v3810_v2, %v4118_v18 }
 0x411   :  { %v793_v51 = vadd.f32 %v3804_v63, %v787_v48  ;;  %v908_v19 = vadd.f32 %v3812_v59, %v902_v31  ;;  %v782_v23 = vmul.f32 %v3800_v56, %v4134_v26  ;;  %v788_v60 = vmul.f32 %v3802_v7, %v4138_v28 }
 0x412   :  { %v1022_v55 = vpop.xlane.xlu0 %1021  ;;  %v3814_v48 = vpop.eup %3813  ;;  %v1459_v36 = vmax.f32 %v4844_v47, %v4823_v50  ;;  %v777_v34 = vadd.f32 %v776_v39, %v771_v3  ;;  %v904_v11 = vadd.f32 %v903_v46, %v898_v54  ;;  %v909_v62 = vmul.f32 %v3812_v59, %v4122_v20 }
 0x413   :  { %v4853_v4 = vmul.f32 0.17677669, %v1022_v55  ;;  %v3816_v0 = vpop.eup %3815  ;;  %3823 = vrcp.f32 %v793_v51  ;;  %v914_v57 = vadd.f32 %v3814_v48, %v908_v19  ;;  %v794_v12 = vmul.f32 %v3804_v63, %v4142_v30 }
 0x414   :  { %v3818_v6 = vpop.eup %3817  ;;  %v4862_v41 = vmul.f32 0.17677669, %v1167_v38  ;;  %v1174_v7 = vmax.f32 %v1173_v45, %v4828_v25  ;;  %v783_v31 = vadd.f32 %v782_v23, %v777_v34  ;;  %v910_v55 = vadd.f32 %v909_v62, %v904_v11  ;;  %v1421_v54 = vpop.xlane.xlu1 %1420 }
 0x415   :  { %v1031_v2 = vmax.f32 %v1030_v13, %v4853_v4  ;;  %v3820_v1 = vpop.eup %3819  ;;  %v920_v39 = vadd.f32 %v3816_v0, %v914_v57  ;;  %v4870_v63 = vmax.f32 %v1459_v36, %v4835_v10  ;;  %v915_v38 = vmul.f32 %v3814_v48, %v4126_v22 }
 0x416   :  { %v1276_v56 = vpop.xlane.xlu0 %1275  ;;  %v921_v45 = vmul.f32 %v3816_v0, %v4130_v24  ;;  %v4882_v0 = vmul.f32 %v3820_v1, %v4138_v28 }
 0x417   :  { %v1032_v3 = vsub.f32 %v4706_v40, %v1031_v2  ;;  %v1038_v59 = vsub.f32 %v4701_v58, %v1031_v2  ;;  %v1044_v51 = vsub.f32 %v4714_v52, %v1031_v2  ;;  %v1050_v13 = vsub.f32 %v4734_v53, %v1031_v2  ;;  %v3822_v46 = vpop.eup %3821 }
 0x418   :  { %v926_v19 = vadd.f32 %v3818_v6, %v920_v39  ;;  %v1056_v40 = vsub.f32 %v4772_v9, %v1031_v2  ;;  %v1062_v58 = vsub.f32 %v4754_v5, %v1031_v2  ;;  %v4876_v52 = vmul.f32 0.17677669, %v1421_v54 }
 0x419   :  { %v1033_v23 = vmul.f32 1.442695, %v1032_v3  ;;  %v1039_v34 = vmul.f32 1.442695, %v1038_v59  ;;  %v1045_v11 = vmul.f32 1.442695, %v1044_v51  ;;  %v4879_v53 = vmul.f32 %v3818_v6, %v4134_v26  ;;  %v1430_v6 = vpop.xlane.xlu1 %1429 }
 0x41a   :  { %v1158_v62 = vpop.xlane.xlu0 %1157  ;;  %v932_v36 = vadd.f32 %v3820_v1, %v926_v19  ;;  %v1051_v48 = vmul.f32 1.442695, %v1050_v13  ;;  %v1068_v57 = vsub.f32 %v4814_v43, %v1031_v2  ;;  %v1074_v9 = vsub.f32 %v4799_v61, %v1031_v2 }
 0x41b   :  { %3825 = vpow2.f32 %v1033_v23  ;;  %v4887_v39 = vmul.f32 %v3822_v46, %v4142_v30  ;;  %v1057_v3 = vmul.f32 1.442695, %v1056_v40  ;;  %v1080_v59 = vsub.f32 %v4853_v4, %v1031_v2 }
 0x41c   :  { %3827 = vpow2.f32 %v1039_v34  ;;  %v938_v5 = vadd.f32 %v3822_v46, %v932_v36  ;;  %v4890_v51 = vmul.f32 0.17677669, %v1158_v62  ;;  %v1063_v54 = vmul.f32 1.442695, %v1062_v58 }
 0x41d   :  { %3829 = vpow2.f32 %v1045_v11  ;;  %v4892_v13 = vmul.f32 0.17677669, %v1276_v56  ;;  %v789_v19 = vadd.f32 %v788_v60, %v783_v31  ;;  %v3824_v23 = vpop.eup %3823  ;;  %v916_v34 = vadd.f32 %v915_v38, %v910_v55  ;;  %v1439_v58 = vpop.xlane.xlu1 %1438 }
 0x41e   :  { %v1412_v1 = vpop.xlane.xlu0 %1411  ;;  %3831 = vpow2.f32 %v1051_v48  ;;  %v1175_v61 = vmax.f32 %v1174_v7, %v4890_v51  ;;  %v1069_v46 = vmul.f32 1.442695, %v1068_v57  ;;  %v1075_v40 = vmul.f32 1.442695, %v1074_v9 }
 0x41f   :  { %v4895_v43 = vmul.f32 0.17677669, %v1412_v1  ;;  %3833 = vrcp.f32 %v938_v5  ;;  %v795_v4 = vadd.f32 %v794_v12, %v789_v19  ;;  %v1081_v2 = vmul.f32 1.442695, %v1080_v59 }
 0x420   :  { %3835 = vpow2.f32 %v1057_v3  ;;  %v4897_v62 = vmul.f32 0.17677669, %v1430_v6  ;;  %v4900_v56 = vmax.f32 %v1175_v61, %v4862_v41  ;;  %v1317_v60 = vmax.f32 %v1316_v42, %v4892_v13 }
 0x421   :  { %3837 = vpow2.f32 %v1063_v54  ;;  %v797_v7 = vmul.f32 %v3824_v23, %v795_v4  ;;  %v922_v55 = vadd.f32 %v921_v45, %v916_v34  ;;  %v1461_v36 = vmax.f32 %v4870_v63, %v4895_v43  ;;  %v1457_v34 = vpop.xlane.xlu1 %1456 }
 0x422   :  { %v1294_v31 = vpop.xlane.xlu0 %1293  ;;  %v1177_v38 = vsub.f32 %v4737_v44, %v4900_v56  ;;  %v1183_v12 = vsub.f32 %v4743_v49, %v4900_v56  ;;  %v1189_v11 = vsub.f32 %v4749_v37, %v4900_v56  ;;  %3839 = vpow2.f32 %v1069_v46 }
 0x423   :  { %v1195_v29 = vsub.f32 %v4793_v35, %v4900_v56  ;;  %v1201_v42 = vsub.f32 %v4795_v32, %v4900_v56  ;;  %v1207_v44 = vsub.f32 %v4837_v17, %v4900_v56  ;;  %1546 = vrot.lane.b32.xlu0 %v797_v7, %s4020_s0  ;;  %3841 = vpow2.f32 %v1075_v40 }
 0x424   :  { %v1178_v45 = vmul.f32 1.442695, %v1177_v38  ;;  %v1184_v37 = vmul.f32 1.442695, %v1183_v12  ;;  %v1213_v48 = vsub.f32 %v4828_v25, %v4900_v56  ;;  %3843 = vpow2.f32 %v1081_v2 }
 0x425   :  { %v3826_v49 = vpop.eup %3825  ;;  %v1190_v57 = vmul.f32 1.442695, %v1189_v11  ;;  %v4923_v9 = vmul.f32 0.17677669, %v1439_v58  ;;  %v1318_v35 = vmax.f32 %v1317_v60, %v4850_v33  ;;  %v1196_v17 = vmul.f32 1.442695, %v1195_v29 }
 0x426   :  { %v3828_v63 = vpop.eup %3827  ;;  %v1303_v32 = vpop.xlane.xlu0 %1302  ;;  %3845 = vpow2.f32 %v1178_v45  ;;  %v1202_v3 = vmul.f32 1.442695, %v1201_v42  ;;  %v1208_v6 = vmul.f32 1.442695, %v1207_v44  ;;  %v1462_v54 = vmax.f32 %v1461_v36, %v4876_v52 }
 0x427   :  { %v1041_v5 = vadd.f32 %v3828_v63, %v3826_v49  ;;  %v3830_v59 = vpop.eup %3829  ;;  %3847 = vpow2.f32 %v1184_v37  ;;  %v4927_v1 = vmul.f32 0.17677669, %v1294_v31  ;;  %v1214_v23 = vmul.f32 1.442695, %v1213_v48 }
 0x428   :  { %v4929_v25 = vpop.eup %3831  ;;  %v1219_v61 = vsub.f32 %v4890_v51, %v4900_v56  ;;  %v4933_v46 = vmul.f32 0.17677669, %v1303_v32  ;;  %3849 = vpow2.f32 %v1190_v57  ;;  %v1225_v4 = vsub.f32 %v4862_v41, %v4900_v56 }
 0x429   :  { %v1047_v19 = vadd.f32 %v3830_v59, %v1041_v5  ;;  %v3834_v40 = vpop.eup %3833  ;;  %v1319_v2 = vmax.f32 %v1318_v35, %v4927_v1  ;;  %v928_v60 = vadd.f32 %v4879_v53, %v922_v55  ;;  %v1463_v51 = vmax.f32 %v1462_v54, %v4897_v62 }
 0x42a   :  { %v1312_v7 = vpop.xlane.xlu0 %1311  ;;  %v4939_v31 = vpop.eup %3835  ;;  %v1036_v11 = vmul.f32 %v3826_v49, %v4110_v14  ;;  %3851 = vpow2.f32 %v1196_v17  ;;  %v4948_v36 = vmul.f32 0.17677669, %v1457_v34  ;;  %v1220_v55 = vmul.f32 1.442695, %v1219_v61 }
 0x42b   :  { %v1053_v38 = vadd.f32 %v4929_v25, %v1047_v19  ;;  %v4942_v12 = vmul.f32 0.17677669, %v1312_v7  ;;  %v4946_v58 = vpop.eup %3837  ;;  %v1320_v41 = vmax.f32 %v1319_v2, %v4933_v46  ;;  %v934_v53 = vadd.f32 %v4882_v0, %v928_v60 }
 0x42c   :  { %3853 = vpow2.f32 %v1202_v3  ;;  %v1042_v29 = vmul.f32 %v3828_v63, %v4114_v16  ;;  %v4954_v42 = vpop.eup %3839  ;;  %v1226_v44 = vmul.f32 1.442695, %v1225_v4  ;;  %v1464_v57 = vmax.f32 %v1463_v51, %v4923_v9 }
 0x42d   :  { %v1059_v56 = vadd.f32 %v4939_v31, %v1053_v38  ;;  %3855 = vpow2.f32 %v1208_v6  ;;  %v940_v49 = vadd.f32 %v4887_v39, %v934_v53  ;;  %v4958_v45 = vmax.f32 %v1320_v41, %v4942_v12  ;;  %v4960_v48 = vpop.eup %3841  ;;  %v1543_v53 = vpop.permute.xlu1 %1542 }
 0x42e   :  { %v1448_v37 = vpop.xlane.xlu0 %1447  ;;  %3857 = vpow2.f32 %v1214_v23  ;;  %v1043_v35 = vadd.f32 %v1042_v29, %v1036_v11  ;;  %v4964_v32 = vpop.eup %3843  ;;  %v1048_v19 = vmul.f32 %v3830_v59, %v4118_v18  ;;  %v5547_v7 = vmov 0.0  }
 0x42f   :  { %v1065_v0 = vadd.f32 %v4946_v58, %v1059_v56  ;;  %v942_v63 = vmul.f32 %v3834_v40, %v940_v49  ;;  %v1322_v5 = vsub.f32 %v4775_v21, %v4958_v45  ;;  %v1328_v39 = vsub.f32 %v4810_v15, %v4958_v45 }
 0x430   :  { %v1334_v17 = vsub.f32 %v4816_v8, %v4958_v45  ;;  %v4972_v3 = vpop.eup %3845  ;;  %3859 = vpow2.f32 %v1220_v55  ;;  %v1340_v54 = vsub.f32 %v4818_v27, %v4958_v45  ;;  %v1346_v15 = vsub.f32 %v4892_v13, %v4958_v45 }
 0x431   :  { %v1071_v6 = vadd.f32 %v4954_v42, %v1065_v0  ;;  %v4978_v23 = vpop.eup %3847  ;;  %1548 = vrot.lane.b32.xlu1 %v942_v63, %s4020_s0  ;;  %v1323_v21 = vmul.f32 1.442695, %v1322_v5  ;;  %v1329_v61 = vmul.f32 1.442695, %v1328_v39  ;;  %v4983_v8 = vmul.f32 0.17677669, %v1448_v37 }
 0x432   :  { %v1541_v34 = vpop.permute.xlu0 %1540  ;;  %v1186_v4 = vadd.f32 %v4978_v23, %v4972_v3  ;;  %v1335_v27 = vmul.f32 1.442695, %v1334_v17  ;;  %v1352_v59 = vsub.f32 %v4850_v33, %v4958_v45  ;;  %v4991_v2 = vpop.eup %3849  ;;  %v1341_v60 = vmul.f32 1.442695, %v1340_v54 }
 0x433   :  { %v1077_v40 = vadd.f32 %v4960_v48, %v1071_v6  ;;  %3383 = vmatmul.mubr.msk.f32.vlgmr.msra.gmra.mrb[18].mxu0 %vm190_vm5, %v1541_v34  ;;  %3861 = vpow2.f32 %v1323_v21  ;;  %v1358_v13 = vsub.f32 %v4927_v1, %v4958_v45  ;;  %v1054_v38 = vmul.f32 %v4929_v25, %v4122_v20 }
 0x434   :  { %3385 = vmatprep.mubr.msk.f32.mxu0 %vm4016_vm0, %v5547_v7  ;;  %v1192_v11 = vadd.f32 %v4991_v2, %v1186_v4  ;;  %3863 = vpow2.f32 %v1329_v61  ;;  %v1364_v33 = vsub.f32 %v4933_v46, %v4958_v45  ;;  %v5003_v41 = vpop.eup %3851  ;;  %v1347_v56 = vmul.f32 1.442695, %v1346_v15 }
 0x435   :  { %v1083_v51 = vadd.f32 %v4964_v32, %v1077_v40  ;;  %3865 = vpow2.f32 %v1226_v44  ;;  %v1465_v1 = vmax.f32 %v1464_v57, %v4983_v8  ;;  %v1049_v55 = vadd.f32 %v1048_v19, %v1043_v35 }
 0x436   :  { %v5006_v29 = vpop.eup %3853  ;;  %v1198_v25 = vadd.f32 %v5003_v41, %v1192_v11  ;;  %3867 = vpow2.f32 %v1335_v27  ;;  %v1353_v49 = vmul.f32 1.442695, %v1352_v59  ;;  %v1370_v37 = vsub.f32 %v4942_v12, %v4958_v45 }
 0x437   :  { %3386 = vmatmul.mubr.msk.f32.gmra.mrb[20].mxu0 %vm190_vm5, %v1543_v53  ;;  %v5012_v46 = vpop.eup %3855  ;;  %3869 = vrcp.f32 %v1083_v51  ;;  %v1359_v44 = vmul.f32 1.442695, %v1358_v13  ;;  %v5015_v0 = vmax.f32 %v1465_v1, %v4948_v36  ;;  %v1055_v57 = vadd.f32 %v1054_v38, %v1049_v55 }
 0x438   :  { %3417 = vmatprep.mubr.msk.f32.mxu0 %vm4016_vm0, %v5547_v7  ;;  %v5019_v35 = vpop.eup %3857  ;;  %v1204_v63 = vadd.f32 %v5006_v29, %v1198_v25  ;;  %3871 = vpow2.f32 %v1341_v60  ;;  %v1365_v5 = vmul.f32 1.442695, %v1364_v33  ;;  %v1371_v54 = vmul.f32 1.442695, %v1370_v37 }
 0x439   :  { %3873 = vpow2.f32 %v1347_v56  ;;  %v1467_v12 = vsub.f32 %v4844_v47, %v5015_v0  ;;  %v1473_v45 = vsub.f32 %v4823_v50, %v5015_v0  ;;  %v1479_v39 = vsub.f32 %v4835_v10, %v5015_v0 }
 0x43a   :  { %v5028_v17 = vpop.eup %3859  ;;  %v1210_v6 = vadd.f32 %v5012_v46, %v1204_v63  ;;  %3875 = vpow2.f32 %v1353_v49  ;;  %v1485_v19 = vsub.f32 %v4895_v43, %v5015_v0  ;;  %v1060_v47 = vmul.f32 %v4939_v31, %v4126_v22 }
 0x43b   :  { %3877 = vpow2.f32 %v1359_v44  ;;  %v1468_v21 = vmul.f32 1.442695, %v1467_v12  ;;  %v1474_v61 = vmul.f32 1.442695, %v1473_v45  ;;  %v1480_v15 = vmul.f32 1.442695, %v1479_v39 }
 0x43c   :  { %v1216_v50 = vadd.f32 %v5019_v35, %v1210_v6  ;;  %3879 = vpow2.f32 %v1365_v5  ;;  %v1491_v10 = vsub.f32 %v4876_v52, %v5015_v0  ;;  %v1486_v40 = vmul.f32 1.442695, %v1485_v19 }
 0x43d   :  { %v3862_v34 = vpop.eup %3861  ;;  %3881 = vpow2.f32 %v1468_v21  ;;  %v1497_v43 = vsub.f32 %v4897_v62, %v5015_v0  ;;  %v1061_v59 = vadd.f32 %v1060_v47, %v1055_v57  ;;  %v1503_v13 = vsub.f32 %v4923_v9, %v5015_v0 }
 0x43e   :  { %v3864_v4 = vpop.eup %3863  ;;  %v1222_v27 = vadd.f32 %v5028_v17, %v1216_v50  ;;  %3883 = vpow2.f32 %v1474_v61  ;;  %v1066_v52 = vmul.f32 %v4946_v58, %v4130_v24  ;;  %v1492_v51 = vmul.f32 1.442695, %v1491_v10 }
 0x43f   :  { %v5041_v60 = vpop.eup %3865  ;;  %v1331_v31 = vadd.f32 %v3864_v4, %v3862_v34  ;;  %3885 = vpow2.f32 %v1371_v54  ;;  %v1509_v11 = vsub.f32 %v4983_v8, %v5015_v0  ;;  %v1072_v62 = vmul.f32 %v4954_v42, %v4134_v26 }
 0x440   :  { %v3868_v38 = vpop.eup %3867  ;;  %3887 = vpow2.f32 %v1480_v15  ;;  %v1228_v53 = vadd.f32 %v5041_v60, %v1222_v27  ;;  %v1515_v1 = vsub.f32 %v4948_v36, %v5015_v0  ;;  %v1067_v9 = vadd.f32 %v1066_v52, %v1061_v59 }
 0x441   :  { %v3870_v33 = vpop.eup %3869  ;;  %v1337_v56 = vadd.f32 %v3868_v38, %v1331_v31  ;;  %3889 = vpow2.f32 %v1486_v40  ;;  %v1498_v58 = vmul.f32 1.442695, %v1497_v43  ;;  %v1181_v25 = vmul.f32 %v4972_v3, %v4110_v14 }
 0x442   :  { %v3872_v55 = vpop.eup %3871  ;;  %v1187_v8 = vmul.f32 %v4978_v23, %v4114_v16  ;;  %v1504_v42 = vmul.f32 1.442695, %v1503_v13  ;;  %v1073_v44 = vadd.f32 %v1072_v62, %v1067_v9  ;;  %v1078_v57 = vmul.f32 %v4960_v48, %v4138_v28 }
 0x443   :  { %v3874_v49 = vpop.eup %3873  ;;  %v1343_v37 = vadd.f32 %v3872_v55, %v1337_v56  ;;  %3891 = vpow2.f32 %v1492_v51  ;;  %v1510_v36 = vmul.f32 1.442695, %v1509_v11  ;;  %v1193_v5 = vmul.f32 %v4991_v2, %v4118_v18 }
 0x444   :  { %v3876_v63 = vpop.eup %3875  ;;  %v1188_v0 = vadd.f32 %v1187_v8, %v1181_v25  ;;  %3893 = vrcp.f32 %v1228_v53  ;;  %v1079_v45 = vadd.f32 %v1078_v57, %v1073_v44  ;;  %v1084_v23 = vmul.f32 %v4964_v32, %v4142_v30 }
 0x445   :  { %v3878_v12 = vpop.eup %3877  ;;  %v1349_v3 = vadd.f32 %v3874_v49, %v1343_v37  ;;  %3895 = vpow2.f32 %v1498_v58  ;;  %v1516_v6 = vmul.f32 1.442695, %v1515_v1  ;;  %v1199_v48 = vmul.f32 %v5003_v41, %v4122_v20 }
 0x446   :  { %v5064_v39 = vpop.eup %3879  ;;  %v1194_v54 = vadd.f32 %v1193_v5, %v1188_v0  ;;  %v1085_v61 = vadd.f32 %v1084_v23, %v1079_v45  ;;  %v1326_v2 = vmul.f32 %v3862_v34, %v4110_v14  ;;  %v1332_v47 = vmul.f32 %v3864_v4, %v4114_v16 }
 0x447   :  { %v3882_v19 = vpop.eup %3881  ;;  %v1355_v21 = vadd.f32 %v3876_v63, %v1349_v3  ;;  %3897 = vpow2.f32 %v1504_v42  ;;  %v1205_v32 = vmul.f32 %v5006_v29, %v4126_v22  ;;  %v1338_v10 = vmul.f32 %v3868_v38, %v4118_v18 }
 0x448   :  { %v3884_v50 = vpop.eup %3883  ;;  %v1200_v15 = vadd.f32 %v1199_v48, %v1194_v54  ;;  %v1087_v59 = vmul.f32 %v3870_v33, %v1085_v61  ;;  %v1333_v41 = vadd.f32 %v1332_v47, %v1326_v2  ;;  %3899 = vpow2.f32 %v1510_v36 }
 0x449   :  { %v3886_v40 = vpop.eup %3885  ;;  %v1361_v27 = vadd.f32 %v3878_v12, %v1355_v21  ;;  %v1476_v43 = vadd.f32 %v3884_v50, %v3882_v19  ;;  %v1211_v34 = vmul.f32 %v5012_v46, %v4130_v24  ;;  %v1217_v4 = vmul.f32 %v5019_v35, %v4134_v26 }
 0x44a   :  { %v3888_v31 = vpop.eup %3887  ;;  %v1206_v13 = vadd.f32 %v1205_v32, %v1200_v15  ;;  %1550 = vrot.lane.b32.xlu0 %v1087_v59, %s4020_s0  ;;  %v1339_v29 = vadd.f32 %v1338_v10, %v1333_v41  ;;  %v1344_v38 = vmul.f32 %v3872_v55, %v4122_v20  ;;  %3901 = vpow2.f32 %v1516_v6 }
 0x44b   :  { %v1367_v52 = vadd.f32 %v5064_v39, %v1361_v27  ;;  %v1482_v51 = vadd.f32 %v3888_v31, %v1476_v43  ;;  %v3890_v11 = vpop.eup %3889  ;;  %v1471_v33 = vmul.f32 %v3882_v19, %v4110_v14  ;;  %v1477_v53 = vmul.f32 %v3884_v50, %v4114_v16 }
 0x44c   :  { %v1212_v62 = vadd.f32 %v1211_v34, %v1206_v13  ;;  %v1345_v1 = vadd.f32 %v1344_v38, %v1339_v29  ;;  %v1350_v35 = vmul.f32 %v3874_v49, %v4126_v22  ;;  %v1223_v25 = vmul.f32 %v5028_v17, %v4138_v28 }
 0x44d   :  { %v1373_v56 = vadd.f32 %v3886_v40, %v1367_v52  ;;  %v1488_v46 = vadd.f32 %v3890_v11, %v1482_v51  ;;  %v3892_v9 = vpop.eup %3891  ;;  %v1478_v8 = vadd.f32 %v1477_v53, %v1471_v33  ;;  %v1483_v55 = vmul.f32 %v3888_v31, %v4118_v18 }
 0x44e   :  { %v1218_v58 = vadd.f32 %v1217_v4, %v1212_v62  ;;  %v3894_v37 = vpop.eup %3893  ;;  %v1351_v44 = vadd.f32 %v1350_v35, %v1345_v1  ;;  %v1356_v57 = vmul.f32 %v3876_v63, %v4130_v24  ;;  %v1229_v5 = vmul.f32 %v5041_v60, %v4142_v30 }
 0x44f   :  { %3903 = vrcp.f32 %v1373_v56  ;;  %v1494_v42 = vadd.f32 %v3892_v9, %v1488_v46  ;;  %v3896_v36 = vpop.eup %3895  ;;  %v1484_v49 = vadd.f32 %v1483_v55, %v1478_v8  ;;  %v1489_v3 = vmul.f32 %v3890_v11, %v4122_v20 }
 0x450   :  { %v1224_v0 = vadd.f32 %v1223_v25, %v1218_v58  ;;  %v1357_v23 = vadd.f32 %v1356_v57, %v1351_v44  ;;  %v1362_v17 = vmul.f32 %v3878_v12, %v4134_v26  ;;  %v1495_v19 = vmul.f32 %v3892_v9, %v4126_v22  ;;  %v5127_v58 = vld [vmem:[#allocation2 + $0x210] sm:$0xff] }
 0x451   :  { %v1500_v45 = vadd.f32 %v3896_v36, %v1494_v42  ;;  %v3898_v6 = vpop.eup %3897  ;;  %v1490_v48 = vadd.f32 %v1489_v3, %v1484_v49  ;;  %v1368_v63 = vmul.f32 %v5064_v39, %v4138_v28  ;;  %v1501_v50 = vmul.f32 %v3896_v36, %v4130_v24 }
 0x452   :  { %v1230_v54 = vadd.f32 %v1229_v5, %v1224_v0  ;;  %v1363_v61 = vadd.f32 %v1362_v17, %v1357_v23  ;;  %v3900_v2 = vpop.eup %3899  ;;  %v1374_v10 = vmul.f32 %v3886_v40, %v4142_v30  ;;  %v1507_v43 = vmul.f32 %v3898_v6, %v4134_v26 }
 0x453   :  { %v1506_v21 = vadd.f32 %v3898_v6, %v1500_v45  ;;  %v1496_v60 = vadd.f32 %v1495_v19, %v1490_v48  ;;  %v1513_v39 = vmul.f32 %v3900_v2, %v4138_v28  ;;  %v1527_v1 = vlaneseq }
 0x454   :  { %v1232_v47 = vmul.f32 %v3894_v37, %v1230_v54  ;;  %v1369_v32 = vadd.f32 %v1368_v63, %v1363_v61  ;;  %v3902_v12 = vpop.eup %3901 }
 0x455   :  { %v1512_v15 = vadd.f32 %v3900_v2, %v1506_v21  ;;  %v1502_v27 = vadd.f32 %v1501_v50, %v1496_v60  ;;  %v1519_v52 = vmul.f32 %v3902_v12, %v4142_v30  ;;  %v5124_v35 = vshrl.u32 %v1527_v1, 7 }
 0x456   :  { %1552 = vrot.lane.b32.xlu1 %v1232_v47, %s4020_s0  ;;  %v1375_v41 = vadd.f32 %v1374_v10, %v1369_v32 }
 0x457   :  { %v1518_v59 = vadd.f32 %v3902_v12, %v1512_v15  ;;  %v1508_v31 = vadd.f32 %v1507_v43, %v1502_v27  ;;  %v1529_v9 = vsub.s32 0, %v5124_v35 }
 0x459   :  { %v3904_v13 = vpop.eup %3903  ;;  %3905 = vrcp.f32 %v1518_v59  ;;  %v1514_v4 = vadd.f32 %v1513_v39, %v1508_v31  ;;  %v1530_v25 = vrot.slane %v5127_v58, %v1529_v9 }
 0x45a   :  { %v1377_v34 = vmul.f32 %v3904_v13, %v1375_v41 }
 0x45b   :  { %v1520_v40 = vadd.f32 %v1519_v52, %v1514_v4 }
 0x45c   :  { %1554 = vrot.lane.b32.xlu0 %v1377_v34, %s4020_s0 }
 0x463   :  { %v3906_v51 = vpop.eup %3905 }
 0x464   :  { %v1522_v29 = vmul.f32 %v3906_v51, %v1520_v40 }
 0x466   :  { %1556 = vrot.lane.b32.xlu1 %v1522_v29, %s4020_s0 }
 0x47a   :  { %v1545_v38 = vpop.permute.xlu1 %1544 }
 0x47b   :  { %3389 = vmatmul.mubr.msk.f32.vlgmr.msra.gmra.mrb[0].mxu1 %vm190_vm5, %v1545_v38 }
 0x47c   :  { %3391 = vmatprep.mubr.msk.f32.mxu1 %vm4016_vm0, %v5547_v7 }
 0x495   :  { %v1547_v11 = vpop.permute.xlu0 %1546 }
 0x496   :  { %3392 = vmatmul.mubr.msk.f32.gmra.mrb[2].mxu1 %vm190_vm5, %v1547_v11 }
 0x497   :  { %3394 = vmatprep.mubr.msk.f32.mxu1 %vm4016_vm0, %v5547_v7 }
 0x4a3   :  { %v1549_v62 = vpop.permute.xlu1 %1548 }
 0x4a4   :  { %3395 = vmatmul.mubr.msk.f32.gmra.mrb[4].mxu1 %vm190_vm5, %v1549_v62 }
 0x4a5   :  { %3397 = vmatprep.mubr.msk.f32.mxu1 %vm4016_vm0, %v5547_v7 }
 0x4bc   :  { %v1551_v33 = vpop.permute.xlu0 %1550 }
 0x4bd   :  { %3398 = vmatmul.mubr.msk.f32.gmra.mrb[6].mxu1 %vm190_vm5, %v1551_v33 }
 0x4be   :  { %3400 = vmatprep.mubr.msk.f32.mxu1 %vm4016_vm0, %v5547_v7 }
 0x4c8   :  { %v1553_v53 = vpop.permute.xlu1 %1552 }
 0x4c9   :  { %3401 = vmatmul.mubr.msk.f32.gmra.mrb[8].mxu1 %vm190_vm5, %v1553_v53 }
 0x4ca   :  { %3403 = vmatprep.mubr.msk.f32.mxu1 %vm4016_vm0, %v5547_v7 }
 0x4ce   :  { %v1555_v56 = vpop.permute.xlu0 %1554 }
 0x4cf   :  { %3404 = vmatmul.mubr.msk.f32.gmra.mrb[10].mxu1 %vm190_vm5, %v1555_v56  ;;  %v1839_v56 = vld [vmem:[#allocation2 + $0x30] sm:$0xff] }
 0x4d0   :  { %3406 = vmatprep.mubr.msk.f32.mxu1 %vm4016_vm0, %v5547_v7 }
 0x4d8   :  { %v1557_v46 = vpop.permute.xlu1 %1556 }
 0x4d9   :  { %3407 = vmatmul.mubr.msk.f32.gmra.mrb[12].mxu1 %vm190_vm5, %v1557_v46  ;;  %v1840_v46 = vld [vmem:[#allocation2 + $0x38] sm:$0xff] }
 0x4da   :  { %3460 = vmatprep.mubr.msk.f32.mxu1 %vm4016_vm0, %v5547_v7 }
 0x506   :  { %v1642_v8 = vpop.f32.mrb[18].mxu0 }
 0x507   :  { %v1643_v55 = vadd.f32 %v1642_v8, %v1530_v25  ;;  %v3384_v37 = vpop.f32.mrb[19].mxu0  ;;  %v1841_v8 = vld [vmem:[#allocation2 + $0x40] sm:$0xff] }
 0x508   :  { %v1842_v37 = vld [vmem:[#allocation2 + $0x48] sm:$0xff] }
 0x509   :  { %v1686_v42 = vadd.f32 %v1643_v55, %v4110_v14  ;;  %v3624_v55 = vpack.c.bf16 %v1840_v46, %v1839_v56 }
 0x50a   :  { %v1647_v44 = vpop.f32.mrb[20].mxu0 }
 0x50b   :  { %v1648_v57 = vadd.f32 %v1647_v44, %v1530_v25  ;;  %v3387_v36 = vpop.f32.mrb[21].mxu0  ;;  %v1695_v0 = vsel %vm190_vm5, %v1686_v42, 0.0  ;;  %3625 = vmatpush3.bf16.msra.mxu0 %v3624_v55 }
 0x50c   :  { %1696 = vadd.xlane.f32.xlu0 %v1695_v0 }
 0x50d   :  { %v1687_v5 = vadd.f32 %v1648_v57, %v4114_v16 }
 0x50f   :  { %v1698_v49 = vsel %vm190_vm5, %v1687_v5, 0.0 }
 0x510   :  { %1699 = vadd.xlane.f32.xlu1 %v1698_v49 }
 0x54e   :  { %v1652_v3 = vpop.f32.mrb[0].mxu1 }
 0x54f   :  { %v1653_v45 = vadd.f32 %v1652_v3, %v1530_v25  ;;  %v3390_v23 = vpop.f32.mrb[1].mxu1 }
 0x551   :  { %v5137_v17 = vadd.f32 %v1653_v45, %v4118_v18 }
 0x553   :  { %v1701_v14 = vsel %vm190_vm5, %v5137_v17, 0.0 }
 0x554   :  { %1702 = vadd.xlane.f32.xlu0 %v1701_v14 }
 0x569   :  { %v1657_v6 = vpop.f32.mrb[2].mxu1 }
 0x56a   :  { %v1658_v54 = vadd.f32 %v1657_v6, %v1530_v25  ;;  %v3393_v48 = vpop.f32.mrb[3].mxu1 }
 0x56c   :  { %v5142_v19 = vadd.f32 %v1658_v54, %v4122_v20 }
 0x56e   :  { %v1704_v16 = vsel %vm190_vm5, %v5142_v19, 0.0 }
 0x56f   :  { %1705 = vadd.xlane.f32.xlu0 %v1704_v16 }
 0x577   :  { %v1662_v21 = vpop.f32.mrb[4].mxu1 }
 0x578   :  { %v1663_v61 = vadd.f32 %v1662_v21, %v1530_v25  ;;  %v3396_v63 = vpop.f32.mrb[5].mxu1 }
 0x57a   :  { %v5147_v18 = vadd.f32 %v1663_v61, %v4126_v22 }
 0x57c   :  { %v1707_v2 = vsel %vm190_vm5, %v5147_v18, 0.0 }
 0x57d   :  { %1708 = vadd.xlane.f32.xlu1 %v1707_v2 }
 0x590   :  { %v1667_v47 = vpop.f32.mrb[6].mxu1 }
 0x591   :  { %v1668_v60 = vadd.f32 %v1667_v47, %v1530_v25  ;;  %v3399_v50 = vpop.f32.mrb[7].mxu1 }
 0x593   :  { %v5152_v20 = vadd.f32 %v1668_v60, %v4130_v24 }
 0x595   :  { %v1710_v15 = vsel %vm190_vm5, %v5152_v20, 0.0 }
 0x596   :  { %1711 = vadd.xlane.f32.xlu0 %v1710_v15 }
 0x599   :  { %v1697_v10 = vpop.xlane.xlu0 %1696 }
 0x59a   :  { %v1723_v43 = vmul.f32 0.03125, %v1697_v10 }
 0x59c   :  { %v1672_v32 = vpop.f32.mrb[8].mxu1  ;;  %v5158_v31 = vsub.f32 %v1686_v42, %v1723_v43  ;;  %v3627_v42 = vpack.c.bf16 %v1842_v37, %v1841_v8 }
 0x59d   :  { %v1673_v12 = vadd.f32 %v1672_v32, %v1530_v25  ;;  %v3402_v27 = vpop.f32.mrb[9].mxu1  ;;  %v1700_v34 = vpop.xlane.xlu1 %1699 }
 0x59e   :  { %v1741_v52 = vmul.f32 %v5158_v31, %v5158_v31  ;;  %v1724_v40 = vmul.f32 0.03125, %v1700_v34 }
 0x59f   :  { %v1692_v22 = vadd.f32 %v1673_v12, %v4134_v26 }
 0x5a0   :  { %v1750_v26 = vsel %vm190_vm5, %v1741_v52, 0.0  ;;  %v5165_v29 = vsub.f32 %v1687_v5, %v1724_v40  ;;  %v1828_v52 = vsub.s32 2, %v5124_v35 }
 0x5a1   :  { %v1713_v59 = vsel %vm190_vm5, %v1692_v22, 0.0 }
 0x5a2   :  { %1714 = vadd.xlane.f32.xlu1 %v1713_v59  ;;  %v1677_v41 = vpop.f32.mrb[10].mxu1  ;;  %v1742_v33 = vmul.f32 %v5165_v29, %v5165_v29 }
 0x5a3   :  { %v1678_v39 = vadd.f32 %v1677_v41, %v1530_v25  ;;  %v3405_v24 = vpop.f32.mrb[11].mxu1 }
 0x5a4   :  { %v1753_v53 = vsel %vm190_vm5, %v1742_v33, 0.0  ;;  %v1815_v24 = vsub.s32 1, %v5124_v35 }
 0x5a5   :  { %v1693_v13 = vadd.f32 %v1678_v39, %v4138_v28 }
 0x5a7   :  { %v1716_v4 = vsel %vm190_vm5, %v1693_v13, 0.0 }
 0x5a8   :  { %1717 = vadd.xlane.f32.xlu0 %v1716_v4 }
 0x5ac   :  { %v1682_v51 = vpop.f32.mrb[12].mxu1  ;;  %1751 = vadd.xlane.f32.xlu0 %v1750_v26 }
 0x5ad   :  { %v1683_v38 = vadd.f32 %v1682_v51, %v1530_v25  ;;  %v3408_v11 = vpop.f32.mrb[13].mxu1  ;;  %v5548_v25 = vmov 0.0|0.0   ;;  %v5216_v51 = vrot.slane %v5127_v58, %v1815_v24 }
 0x5ae   :  { %3626 = vmatprep.subr.bf16.mxu0 %v5548_v25  ;;  %v5219_v11 = vrot.slane %v5127_v58, %v1828_v52 }
 0x5af   :  { %v1694_v62 = vadd.f32 %v1683_v38, %v4142_v30  ;;  %3628 = vmatpush3.bf16.msra.mxu0 %v3627_v42 }
 0x5b0   :  { %3641 = vmatprep.subr.bf16.mxu0 %v5548_v25 }
 0x5b1   :  { %v1719_v28 = vsel %vm190_vm5, %v1694_v62, 0.0 }
 0x5b2   :  { %1720 = vadd.xlane.f32.xlu1 %v1719_v28 }
 0x5b6   :  { %1754 = vadd.xlane.f32.xlu1 %v1753_v53 }
 0x5e1   :  { %v1703_v30 = vpop.xlane.xlu0 %1702 }
 0x5e2   :  { %v1725_v44 = vmul.f32 0.03125, %v1703_v30 }
 0x5e4   :  { %v5175_v57 = vsub.f32 %v5137_v17, %v1725_v44 }
 0x5e6   :  { %v1743_v36 = vmul.f32 %v5175_v57, %v5175_v57 }
 0x5e8   :  { %v1756_v0 = vsel %vm190_vm5, %v1743_v36, 0.0 }
 0x5e9   :  { %1757 = vadd.xlane.f32.xlu0 %v1756_v0 }
 0x5fc   :  { %v1706_v5 = vpop.xlane.xlu0 %1705 }
 0x5fd   :  { %v1726_v49 = vmul.f32 0.03125, %v1706_v5 }
 0x5ff   :  { %v5181_v3 = vsub.f32 %v5142_v19, %v1726_v49 }
 0x601   :  { %v1744_v45 = vmul.f32 %v5181_v3, %v5181_v3 }
 0x603   :  { %v1759_v23 = vsel %vm190_vm5, %v1744_v45, 0.0 }
 0x604   :  { %1760 = vadd.xlane.f32.xlu1 %v1759_v23 }
 0x60a   :  { %v1709_v14 = vpop.xlane.xlu1 %1708 }
 0x60b   :  { %v1727_v17 = vmul.f32 0.03125, %v1709_v14 }
 0x60d   :  { %v5187_v6 = vsub.f32 %v5147_v18, %v1727_v17 }
 0x60f   :  { %v1745_v54 = vmul.f32 %v5187_v6, %v5187_v6 }
 0x611   :  { %v1762_v48 = vsel %vm190_vm5, %v1745_v54, 0.0 }
 0x612   :  { %1763 = vadd.xlane.f32.xlu0 %v1762_v48 }
 0x623   :  { %v1712_v16 = vpop.xlane.xlu0 %1711 }
 0x624   :  { %v1728_v19 = vmul.f32 0.03125, %v1712_v16 }
 0x626   :  { %v5193_v21 = vsub.f32 %v5152_v20, %v1728_v19 }
 0x628   :  { %v1746_v61 = vmul.f32 %v5193_v21, %v5193_v21 }
 0x62a   :  { %v1765_v63 = vsel %vm190_vm5, %v1746_v61, 0.0 }
 0x62b   :  { %1766 = vadd.xlane.f32.xlu1 %v1765_v63 }
 0x62f   :  { %v1715_v2 = vpop.xlane.xlu1 %1714 }
 0x630   :  { %v1729_v18 = vmul.f32 0.03125, %v1715_v2 }
 0x632   :  { %v5198_v47 = vsub.f32 %v1692_v22, %v1729_v18  ;;  %v2065_v18 = vld [vmem:[#allocation2 + $0x50] sm:$0xff] }
 0x634   :  { %v1747_v60 = vmul.f32 %v5198_v47, %v5198_v47 }
 0x635   :  { %v1718_v50 = vpop.xlane.xlu0 %1717 }
 0x636   :  { %v1768_v15 = vsel %vm190_vm5, %v1747_v60, 0.0  ;;  %v1730_v32 = vmul.f32 0.03125, %v1718_v50  ;;  %v2066_v60 = vld [vmem:[#allocation2 + $0x58] sm:$0xff]  ;;  %v2067_v50 = vld [vmem:[#allocation2 + $0x60] sm:$0xff] }
 0x637   :  { %1769 = vadd.xlane.f32.xlu0 %v1768_v15  ;;  %v3630_v15 = vpack.c.bf16 %v2066_v60, %v2065_v18 }
 0x638   :  { %v5203_v20 = vsub.f32 %v1693_v13, %v1730_v32  ;;  %v2068_v32 = vld [vmem:[#allocation2 + $0x68] sm:$0xff] }
 0x639   :  { %v1752_v10 = vpop.xlane.xlu0 %1751  ;;  %3631 = vmatpush3.bf16.msra.mxu1 %v3630_v15 }
 0x63a   :  { %v1777_v12 = vmul.f32 0.03125, %v1752_v10  ;;  %v1748_v27 = vmul.f32 %v5203_v20, %v5203_v20  ;;  %3632 = vmatprep.subr.bf16.mxu1 %v5548_v25  ;;  %v2069_v10 = vld [vmem:[#allocation2 + $0x70] sm:$0xff] }
 0x63c   :  { %v1786_v43 = vadd.f32 1e-05, %v1777_v12  ;;  %v1771_v59 = vsel %vm190_vm5, %v1748_v27, 0.0  ;;  %v2070_v12 = vld [vmem:[#allocation2 + $0x78] sm:$0xff] }
 0x63d   :  { %1772 = vadd.xlane.f32.xlu1 %v1771_v59  ;;  %v3636_v27 = vpack.c.bf16 %v2070_v12, %v2069_v10  ;;  %v2071_v59 = vld [vmem:[#allocation2 + $0x80] sm:$0xff] }
 0x63e   :  { %3907 = vrsqrt.f32 %v1786_v43 }
 0x63f   :  { %v1721_v22 = vpop.xlane.xlu1 %1720 }
 0x640   :  { %v1731_v41 = vmul.f32 0.03125, %v1721_v22  ;;  %v2072_v22 = vld [vmem:[#allocation2 + $0x88] sm:$0xff] }
 0x642   :  { %v5208_v39 = vsub.f32 %v1694_v62, %v1731_v41 }
 0x643   :  { %v1755_v34 = vpop.xlane.xlu1 %1754 }
 0x644   :  { %v1778_v4 = vmul.f32 0.03125, %v1755_v34  ;;  %v1749_v13 = vmul.f32 %v5208_v39, %v5208_v39  ;;  %v3639_v34 = vpack.c.bf16 %v2072_v22, %v2071_v59 }
 0x646   :  { %v1787_v40 = vadd.f32 1e-05, %v1778_v4  ;;  %v1774_v26 = vsel %vm190_vm5, %v1749_v13, 0.0 }
 0x647   :  { %1775 = vadd.xlane.f32.xlu0 %v1774_v26 }
 0x648   :  { %v3908_v38 = vpop.eup %3907  ;;  %3909 = vrsqrt.f32 %v1787_v40 }
 0x649   :  { %v1804_v62 = vmul.f32 %v3908_v38, %v5158_v31 }
 0x64b   :  { %v1817_v28 = vmul.f32 %v5216_v51, %v1804_v62 }
 0x64d   :  { %v5224_v33 = vadd.f32 %v5219_v11, %v1817_v28 }
 0x64f   :  { %3418 = vmatmul.mubr.msk.f32.vlgmr.msra.gmra.mrb[22].mxu0 %vm190_vm5, %v5224_v33 }
 0x650   :  { %3420 = vmatprep.mubr.msk.f32.mxu0 %vm4016_vm0, %v5547_v7 }
 0x652   :  { %v3910_v53 = vpop.eup %3909 }
 0x653   :  { %v1805_v56 = vmul.f32 %v3910_v53, %v5165_v29 }
 0x655   :  { %v1818_v46 = vmul.f32 %v5216_v51, %v1805_v56 }
 0x657   :  { %v5233_v8 = vadd.f32 %v5219_v11, %v1818_v46 }
 0x659   :  { %3421 = vmatmul.mubr.msk.f32.gmra.mrb[24].mxu0 %vm190_vm5, %v5233_v8 }
 0x65a   :  { %3423 = vmatprep.mubr.msk.f32.mxu0 %vm4016_vm0, %v5547_v7 }
 0x676   :  { %v1758_v31 = vpop.xlane.xlu0 %1757 }
 0x677   :  { %v1779_v55 = vmul.f32 0.03125, %v1758_v31 }
 0x679   :  { %v1788_v37 = vadd.f32 1e-05, %v1779_v55 }
 0x67b   :  { %3911 = vrsqrt.f32 %v1788_v37 }
 0x685   :  { %v3912_v42 = vpop.eup %3911 }
 0x686   :  { %v1806_v30 = vmul.f32 %v3912_v42, %v5175_v57 }
 0x688   :  { %v1819_v29 = vmul.f32 %v5216_v51, %v1806_v30 }
 0x68a   :  { %v5242_v44 = vadd.f32 %v5219_v11, %v1819_v29 }
 0x68c   :  { %3424 = vmatmul.mubr.msk.f32.gmra.mrb[26].mxu0 %vm190_vm5, %v5242_v44 }
 0x68d   :  { %3426 = vmatprep.mubr.msk.f32.mxu0 %vm4016_vm0, %v5547_v7 }
 0x691   :  { %v1761_v36 = vpop.xlane.xlu1 %1760 }
 0x692   :  { %v1780_v0 = vmul.f32 0.03125, %v1761_v36 }
 0x694   :  { %v1789_v5 = vadd.f32 1e-05, %v1780_v0 }
 0x696   :  { %3913 = vrsqrt.f32 %v1789_v5  ;;  %v1845_v5 = vsub.s32 3, %v5124_v35 }
 0x69f   :  { %v1764_v49 = vpop.xlane.xlu0 %1763 }
 0x6a0   :  { %v3914_v45 = vpop.eup %3913  ;;  %v1781_v23 = vmul.f32 0.03125, %v1764_v49  ;;  %v5308_v49 = vrot.slane %v5127_v58, %v1845_v5 }
 0x6a1   :  { %v1807_v57 = vmul.f32 %v3914_v45, %v5181_v3 }
 0x6a2   :  { %v1790_v14 = vadd.f32 1e-05, %v1781_v23 }
 0x6a3   :  { %v1820_v17 = vmul.f32 %v5216_v51, %v1807_v57 }
 0x6a4   :  { %3915 = vrsqrt.f32 %v1790_v14 }
 0x6a5   :  { %v5251_v54 = vadd.f32 %v5219_v11, %v1820_v17 }
 0x6a7   :  { %3427 = vmatmul.mubr.msk.f32.gmra.mrb[28].mxu0 %vm190_vm5, %v5251_v54 }
 0x6a8   :  { %3429 = vmatprep.mubr.msk.f32.mxu0 %vm4016_vm0, %v5547_v7 }
 0x6ae   :  { %v3916_v48 = vpop.eup %3915 }
 0x6af   :  { %v1808_v16 = vmul.f32 %v3916_v48, %v5187_v6  ;;  %v3633_v6 = vpack.c.bf16 %v2068_v32, %v2067_v50 }
 0x6b1   :  { %v1821_v19 = vmul.f32 %v5216_v51, %v1808_v16  ;;  %3634 = vmatpush3.bf16.msra.mxu1 %v3633_v6 }
 0x6b2   :  { %3635 = vmatprep.subr.bf16.mxu1 %v5548_v25 }
 0x6b3   :  { %v5260_v3 = vadd.f32 %v5219_v11, %v1821_v19 }
 0x6b5   :  { %3430 = vmatmul.mubr.msk.f32.gmra.mrb[30].mxu0 %vm190_vm5, %v5260_v3  ;;  %3637 = vmatpush3.bf16.msra.mxu1 %v3636_v27 }
 0x6b6   :  { %3432 = vmatprep.mubr.msk.f32.mxu0 %vm4016_vm0, %v5547_v7  ;;  %3638 = vmatprep.subr.bf16.mxu1 %v5548_v25 }
 0x6b8   :  { %v1767_v61 = vpop.xlane.xlu1 %1766 }
 0x6b9   :  { %v1782_v63 = vmul.f32 0.03125, %v1767_v61  ;;  %3640 = vmatpush3.bf16.msra.mxu1 %v3639_v34 }
 0x6ba   :  { %3647 = vmatprep.subr.bf16.mxu1 %v5548_v25 }
 0x6bb   :  { %v1791_v2 = vadd.f32 1e-05, %v1782_v63 }
 0x6bd   :  { %3917 = vrsqrt.f32 %v1791_v2 }
 0x6c4   :  { %v1770_v43 = vpop.xlane.xlu0 %1769 }
 0x6c5   :  { %v1783_v41 = vmul.f32 0.03125, %v1770_v43 }
 0x6c7   :  { %v1792_v24 = vadd.f32 1e-05, %v1783_v41  ;;  %v3918_v4 = vpop.eup %3917 }
 0x6c8   :  { %v1809_v13 = vmul.f32 %v3918_v4, %v5193_v21 }
 0x6c9   :  { %3919 = vrsqrt.f32 %v1792_v24 }
 0x6ca   :  { %v1773_v52 = vpop.xlane.xlu1 %1772  ;;  %v1822_v40 = vmul.f32 %v5216_v51, %v1809_v13 }
 0x6cb   :  { %v1784_v26 = vmul.f32 0.03125, %v1773_v52 }
 0x6cc   :  { %v5273_v38 = vadd.f32 %v5219_v11, %v1822_v40 }
 0x6cd   :  { %v1793_v62 = vadd.f32 1e-05, %v1784_v26 }
 0x6ce   :  { %3433 = vmatmul.mubr.msk.f32.gmra.mrb[32].mxu0 %vm190_vm5, %v5273_v38 }
 0x6cf   :  { %3921 = vrsqrt.f32 %v1793_v62  ;;  %3435 = vmatprep.mubr.msk.f32.mxu0 %vm4016_vm0, %v5547_v7 }
 0x6d3   :  { %v3920_v28 = vpop.eup %3919 }
 0x6d4   :  { %v1776_v21 = vpop.xlane.xlu0 %1775  ;;  %v1810_v53 = vmul.f32 %v3920_v28, %v5198_v47 }
 0x6d5   :  { %v1785_v56 = vmul.f32 0.03125, %v1776_v21 }
 0x6d6   :  { %v1823_v46 = vmul.f32 %v5216_v51, %v1810_v53 }
 0x6d7   :  { %v1794_v31 = vadd.f32 1e-05, %v1785_v56 }
 0x6d8   :  { %v5282_v55 = vadd.f32 %v5219_v11, %v1823_v46 }
 0x6d9   :  { %v3922_v37 = vpop.eup %3921  ;;  %3923 = vrsqrt.f32 %v1794_v31 }
 0x6da   :  { %3436 = vmatmul.mubr.msk.f32.gmra.mrb[34].mxu0 %vm190_vm5, %v5282_v55  ;;  %v1811_v42 = vmul.f32 %v3922_v37, %v5203_v20 }
 0x6db   :  { %3438 = vmatprep.mubr.msk.f32.mxu0 %vm4016_vm0, %v5547_v7 }
 0x6dc   :  { %v1824_v30 = vmul.f32 %v5216_v51, %v1811_v42 }
 0x6de   :  { %v5291_v47 = vadd.f32 %v5219_v11, %v1824_v30 }
 0x6e0   :  { %3439 = vmatmul.mubr.msk.f32.gmra.mrb[36].mxu0 %vm190_vm5, %v5291_v47 }
 0x6e1   :  { %3441 = vmatprep.mubr.msk.f32.mxu0 %vm4016_vm0, %v5547_v7 }
 0x6e3   :  { %v3924_v29 = vpop.eup %3923 }
 0x6e4   :  { %v1812_v36 = vmul.f32 %v3924_v29, %v5208_v39 }
 0x6e6   :  { %v1825_v0 = vmul.f32 %v5216_v51, %v1812_v36 }
 0x6e8   :  { %v5300_v20 = vadd.f32 %v5219_v11, %v1825_v0 }
 0x6ea   :  { %3442 = vmatmul.mubr.msk.f32.gmra.mrb[38].mxu0 %vm190_vm5, %v5300_v20 }
 0x6eb   :  { %3495 = vmatprep.mubr.msk.f32.mxu0 %vm4016_vm0, %v5547_v7 }
 0x722   :  { %v1940_v45 = vpop.f32.mrb[22].mxu0 }
 0x723   :  { %v1941_v23 = vadd.f32 %v1940_v45, %v5308_v49  ;;  %v3419_v39 = vpop.f32.mrb[23].mxu0 }
 0x725   :  { %v1993_v57 = vmul.f32 0.044715, %v1941_v23  ;;  %v1984_v15 = vmul.f32 0.5, %v1941_v23 }
 0x727   :  { %v2002_v51 = vmul.f32 %v1993_v57, %v1941_v23 }
 0x729   :  { %v2011_v14 = vmul.f32 %v2002_v51, %v1941_v23 }
 0x72b   :  { %v2020_v11 = vadd.f32 %v2011_v14, %v1941_v23 }
 0x72c   :  { %v1945_v17 = vpop.f32.mrb[24].mxu0 }
 0x72d   :  { %v2029_v48 = vmul.f32 0.7978846, %v2020_v11  ;;  %v1946_v16 = vadd.f32 %v1945_v17, %v5308_v49  ;;  %v3422_v19 = vpop.f32.mrb[25].mxu0 }
 0x72f   :  { %3925 = vtanh.f32 %v2029_v48  ;;  %v1994_v61 = vmul.f32 0.044715, %v1946_v16  ;;  %v1985_v12 = vmul.f32 0.5, %v1946_v16 }
 0x731   :  { %v2003_v63 = vmul.f32 %v1994_v61, %v1946_v16 }
 0x733   :  { %v2012_v2 = vmul.f32 %v2003_v63, %v1946_v16 }
 0x735   :  { %v2021_v18 = vadd.f32 %v2012_v2, %v1946_v16 }
 0x737   :  { %v2030_v60 = vmul.f32 0.7978846, %v2021_v18 }
 0x739   :  { %v3926_v50 = vpop.eup %3925  ;;  %3927 = vtanh.f32 %v2030_v60 }
 0x73a   :  { %v2047_v32 = vadd.f32 1.0, %v3926_v50 }
 0x73c   :  { %v2056_v6 = vmul.f32 %v2047_v32, %v1984_v15 }
 0x73e   :  { %3461 = vmatmul.mubr.msk.f32.vlgmr.msra.gmra.mrb[14].mxu1 %vm2077_vm6, %v2056_v6 }
 0x73f   :  { %3463 = vmatprep.mubr.msk.f32.mxu1 %vm4016_vm0, %v5547_v7 }
 0x743   :  { %v3928_v10 = vpop.eup %3927 }
 0x744   :  { %v2048_v27 = vadd.f32 1.0, %v3928_v10 }
 0x746   :  { %v2057_v43 = vmul.f32 %v2048_v27, %v1985_v12 }
 0x748   :  { %3464 = vmatmul.mubr.msk.f32.gmra.mrb[16].mxu1 %vm2077_vm6, %v2057_v43 }
 0x749   :  { %3466 = vmatprep.mubr.msk.f32.mxu1 %vm4016_vm0, %v5547_v7 }
 0x75f   :  { %v1950_v59 = vpop.f32.mrb[26].mxu0 }
 0x760   :  { %v1951_v22 = vadd.f32 %v1950_v59, %v5308_v49  ;;  %v3425_v41 = vpop.f32.mrb[27].mxu0 }
 0x762   :  { %v1995_v24 = vmul.f32 0.044715, %v1951_v22  ;;  %v1986_v26 = vmul.f32 0.5, %v1951_v22 }
 0x764   :  { %v2004_v34 = vmul.f32 %v1995_v24, %v1951_v22 }
 0x766   :  { %v2013_v4 = vmul.f32 %v2004_v34, %v1951_v22 }
 0x768   :  { %v2022_v13 = vadd.f32 %v2013_v4, %v1951_v22 }
 0x76a   :  { %v2031_v52 = vmul.f32 0.7978846, %v2022_v13 }
 0x76c   :  { %3929 = vtanh.f32 %v2031_v52 }
 0x776   :  { %v3930_v40 = vpop.eup %3929 }
 0x777   :  { %v2049_v62 = vadd.f32 1.0, %v3930_v40 }
 0x779   :  { %v2058_v21 = vmul.f32 %v2049_v62, %v1986_v26 }
 0x77a   :  { %v1955_v28 = vpop.f32.mrb[28].mxu0 }
 0x77b   :  { %v1956_v53 = vadd.f32 %v1955_v28, %v5308_v49  ;;  %v3428_v56 = vpop.f32.mrb[29].mxu0  ;;  %3467 = vmatmul.mubr.msk.f32.gmra.mrb[18].mxu1 %vm2077_vm6, %v2058_v21 }
 0x77c   :  { %3469 = vmatprep.mubr.msk.f32.mxu1 %vm4016_vm0, %v5547_v7 }
 0x77d   :  { %v1996_v46 = vmul.f32 0.044715, %v1956_v53  ;;  %v1987_v51 = vmul.f32 0.5, %v1956_v53 }
 0x77f   :  { %v2005_v31 = vmul.f32 %v1996_v46, %v1956_v53 }
 0x781   :  { %v2014_v37 = vmul.f32 %v2005_v31, %v1956_v53 }
 0x783   :  { %v2023_v42 = vadd.f32 %v2014_v37, %v1956_v53 }
 0x785   :  { %v2032_v30 = vmul.f32 0.7978846, %v2023_v42 }
 0x787   :  { %3931 = vtanh.f32 %v2032_v30 }
 0x788   :  { %v1960_v29 = vpop.f32.mrb[30].mxu0 }
 0x789   :  { %v1961_v36 = vadd.f32 %v1960_v29, %v5308_v49  ;;  %v3431_v0 = vpop.f32.mrb[31].mxu0 }
 0x78b   :  { %v1997_v5 = vmul.f32 0.044715, %v1961_v36  ;;  %v1988_v16 = vmul.f32 0.5, %v1961_v36 }
 0x78d   :  { %v2006_v45 = vmul.f32 %v1997_v5, %v1961_v36 }
 0x78f   :  { %v2015_v23 = vmul.f32 %v2006_v45, %v1961_v36 }
 0x791   :  { %v3932_v39 = vpop.eup %3931  ;;  %v2024_v57 = vadd.f32 %v2015_v23, %v1961_v36 }
 0x792   :  { %v2050_v14 = vadd.f32 1.0, %v3932_v39 }
 0x793   :  { %v2033_v11 = vmul.f32 0.7978846, %v2024_v57 }
 0x794   :  { %v2059_v17 = vmul.f32 %v2050_v14, %v1987_v51 }
 0x795   :  { %3933 = vtanh.f32 %v2033_v11 }
 0x796   :  { %3470 = vmatmul.mubr.msk.f32.gmra.mrb[20].mxu1 %vm2077_vm6, %v2059_v17 }
 0x797   :  { %3472 = vmatprep.mubr.msk.f32.mxu1 %vm4016_vm0, %v5547_v7 }
 0x79f   :  { %v3934_v48 = vpop.eup %3933 }
 0x7a0   :  { %v2051_v19 = vadd.f32 1.0, %v3934_v48 }
 0x7a1   :  { %v1965_v61 = vpop.f32.mrb[32].mxu0 }
 0x7a2   :  { %v2060_v63 = vmul.f32 %v2051_v19, %v1988_v16  ;;  %v1966_v2 = vadd.f32 %v1965_v61, %v5308_v49  ;;  %v3434_v18 = vpop.f32.mrb[33].mxu0  ;;  %v2075_v61 = vsub.s32 4, %v5124_v35 }
 0x7a4   :  { %3473 = vmatmul.mubr.msk.f32.gmra.mrb[22].mxu1 %vm2077_vm6, %v2060_v63  ;;  %v1998_v60 = vmul.f32 0.044715, %v1966_v2  ;;  %v1989_v28 = vmul.f32 0.5, %v1966_v2  ;;  %v2076_v63 = vrot.slane %v5127_v58, %v2075_v61  ;;  %v2367_v61 = vld [vmem:[#allocation2 + $0x90] sm:$0xff] }
 0x7a5   :  { %3475 = vmatprep.mubr.msk.f32.mxu1 %vm4016_vm0, %v5547_v7 }
 0x7a6   :  { %v2007_v50 = vmul.f32 %v1998_v60, %v1966_v2 }
 0x7a8   :  { %v2016_v15 = vmul.f32 %v2007_v50, %v1966_v2 }
 0x7aa   :  { %v2025_v32 = vadd.f32 %v2016_v15, %v1966_v2 }
 0x7ac   :  { %v2034_v10 = vmul.f32 0.7978846, %v2025_v32 }
 0x7ad   :  { %v1970_v6 = vpop.f32.mrb[34].mxu0 }
 0x7ae   :  { %v1971_v12 = vadd.f32 %v1970_v6, %v5308_v49  ;;  %v3437_v27 = vpop.f32.mrb[35].mxu0  ;;  %3935 = vtanh.f32 %v2034_v10 }
 0x7b0   :  { %v1999_v43 = vmul.f32 0.044715, %v1971_v12  ;;  %v1990_v5 = vmul.f32 0.5, %v1971_v12 }
 0x7b2   :  { %v2008_v59 = vmul.f32 %v1999_v43, %v1971_v12 }
 0x7b3   :  { %v1975_v22 = vpop.f32.mrb[36].mxu0 }
 0x7b4   :  { %v2017_v41 = vmul.f32 %v2008_v59, %v1971_v12  ;;  %v1976_v24 = vadd.f32 %v1975_v22, %v5308_v49  ;;  %v3440_v34 = vpop.f32.mrb[37].mxu0 }
 0x7b6   :  { %v2026_v4 = vadd.f32 %v2017_v41, %v1971_v12  ;;  %v2000_v13 = vmul.f32 0.044715, %v1976_v24 }
 0x7b8   :  { %v2009_v52 = vmul.f32 %v2000_v13, %v1976_v24  ;;  %v2035_v40 = vmul.f32 0.7978846, %v2026_v4  ;;  %v3936_v26 = vpop.eup %3935 }
 0x7b9   :  { %v2052_v21 = vadd.f32 1.0, %v3936_v26 }
 0x7ba   :  { %v2018_v62 = vmul.f32 %v2009_v52, %v1976_v24  ;;  %3937 = vtanh.f32 %v2035_v40 }
 0x7bb   :  { %v2061_v56 = vmul.f32 %v2052_v21, %v1989_v28 }
 0x7bc   :  { %v2027_v53 = vadd.f32 %v2018_v62, %v1976_v24 }
 0x7bd   :  { %v1980_v46 = vpop.f32.mrb[38].mxu0  ;;  %3476 = vmatmul.mubr.msk.f32.gmra.mrb[24].mxu1 %vm2077_vm6, %v2061_v56 }
 0x7be   :  { %v1981_v31 = vadd.f32 %v1980_v46, %v5308_v49  ;;  %v3443_v37 = vpop.f32.mrb[39].mxu0  ;;  %v2036_v42 = vmul.f32 0.7978846, %v2027_v53  ;;  %3478 = vmatprep.mubr.msk.f32.mxu1 %vm4016_vm0, %v5547_v7  ;;  %v1991_v49 = vmul.f32 0.5, %v1976_v24 }
 0x7c0   :  { %v2001_v30 = vmul.f32 0.044715, %v1981_v31  ;;  %3939 = vtanh.f32 %v2036_v42  ;;  %v1992_v48 = vmul.f32 0.5, %v1981_v31 }
 0x7c2   :  { %v2010_v29 = vmul.f32 %v2001_v30, %v1981_v31 }
 0x7c4   :  { %v3938_v36 = vpop.eup %3937  ;;  %v2019_v0 = vmul.f32 %v2010_v29, %v1981_v31 }
 0x7c5   :  { %v2053_v45 = vadd.f32 1.0, %v3938_v36 }
 0x7c6   :  { %v2028_v23 = vadd.f32 %v2019_v0, %v1981_v31 }
 0x7c7   :  { %v2062_v39 = vmul.f32 %v2053_v45, %v1990_v5 }
 0x7c8   :  { %v2037_v57 = vmul.f32 0.7978846, %v2028_v23 }
 0x7c9   :  { %3479 = vmatmul.mubr.msk.f32.gmra.mrb[26].mxu1 %vm2077_vm6, %v2062_v39 }
 0x7ca   :  { %v3940_v51 = vpop.eup %3939  ;;  %3481 = vmatprep.mubr.msk.f32.mxu1 %vm4016_vm0, %v5547_v7  ;;  %3941 = vtanh.f32 %v2037_v57 }
 0x7cb   :  { %v2054_v14 = vadd.f32 1.0, %v3940_v51 }
 0x7cd   :  { %v2063_v11 = vmul.f32 %v2054_v14, %v1991_v49 }
 0x7cf   :  { %3482 = vmatmul.mubr.msk.f32.gmra.mrb[28].mxu1 %vm2077_vm6, %v2063_v11 }
 0x7d0   :  { %3484 = vmatprep.mubr.msk.f32.mxu1 %vm4016_vm0, %v5547_v7 }
 0x7d4   :  { %v3942_v17 = vpop.eup %3941 }
 0x7d5   :  { %v2055_v16 = vadd.f32 1.0, %v3942_v17 }
 0x7d7   :  { %v2064_v19 = vmul.f32 %v2055_v16, %v1992_v48 }
 0x7d9   :  { %3485 = vmatmul.mubr.msk.f32.gmra.mrb[30].mxu1 %vm2077_vm6, %v2064_v19 }
 0x7da   :  { %3506 = vmatprep.mubr.msk.f32.mxu1 %vm4016_vm0, %v5547_v7 }
 0x811   :  { %v2171_v2 = vpop.f32.mrb[14].mxu1 }
 0x812   :  { %v2172_v18 = vadd.f32 %v2171_v2, %v2076_v63  ;;  %v3462_v60 = vpop.f32.mrb[15].mxu1  ;;  %v2369_v2 = vld [vmem:[#allocation2 + $0xa0] sm:$0xff] }
 0x813   :  { %v2370_v60 = vld [vmem:[#allocation2 + $0xa8] sm:$0xff] }
 0x814   :  { %v2215_v50 = vadd.f32 %v2172_v18, %v5224_v33 }
 0x816   :  { %v2224_v15 = vsel %vm190_vm5, %v2215_v50, 0.0 }
 0x817   :  { %2225 = vadd.xlane.f32.xlu1 %v2224_v15 }
 0x81b   :  { %v2176_v32 = vpop.f32.mrb[16].mxu1 }
 0x81c   :  { %v2177_v6 = vadd.f32 %v2176_v32, %v2076_v63  ;;  %v3465_v10 = vpop.f32.mrb[17].mxu1  ;;  %v2373_v32 = vld [vmem:[#allocation2 + $0xc0] sm:$0xff] }
 0x81d   :  { %v3651_v10 = vpack.c.bf16 %v2370_v60, %v2369_v2  ;;  %v2599_v60 = vld [vmem:[#allocation2 + $0xf0] sm:$0xff] }
 0x81e   :  { %v2216_v12 = vadd.f32 %v2177_v6, %v5233_v8  ;;  %v2374_v6 = vld [vmem:[#allocation2 + $0xc8] sm:$0xff] }
 0x820   :  { %v2227_v27 = vsel %vm190_vm5, %v2216_v12, 0.0 }
 0x821   :  { %2228 = vadd.xlane.f32.xlu0 %v2227_v27 }
 0x84e   :  { %v2181_v43 = vpop.f32.mrb[18].mxu1 }
 0x84f   :  { %v2182_v59 = vadd.f32 %v2181_v43, %v2076_v63  ;;  %v3468_v22 = vpop.f32.mrb[19].mxu1 }
 0x851   :  { %v5353_v41 = vadd.f32 %v2182_v59, %v5242_v44 }
 0x853   :  { %v2230_v33 = vsel %vm190_vm5, %v5353_v41, 0.0 }
 0x854   :  { %2231 = vadd.xlane.f32.xlu1 %v2230_v33 }
 0x869   :  { %v2186_v24 = vpop.f32.mrb[20].mxu1 }
 0x86a   :  { %v2187_v34 = vadd.f32 %v2186_v24, %v2076_v63  ;;  %v3471_v4 = vpop.f32.mrb[21].mxu1 }
 0x86c   :  { %v5358_v13 = vadd.f32 %v2187_v34, %v5251_v54 }
 0x86e   :  { %v2233_v8 = vsel %vm190_vm5, %v5358_v13, 0.0 }
 0x86f   :  { %2234 = vadd.xlane.f32.xlu0 %v2233_v8 }
 0x877   :  { %v2191_v52 = vpop.f32.mrb[22].mxu1 }
 0x878   :  { %v2192_v40 = vadd.f32 %v2191_v52, %v2076_v63  ;;  %v3474_v26 = vpop.f32.mrb[23].mxu1 }
 0x87a   :  { %v5363_v44 = vadd.f32 %v2192_v40, %v5260_v3 }
 0x87c   :  { %v2236_v62 = vsel %vm190_vm5, %v5363_v44, 0.0 }
 0x87d   :  { %2237 = vadd.xlane.f32.xlu1 %v2236_v62 }
 0x890   :  { %v2196_v28 = vpop.f32.mrb[24].mxu1 }
 0x891   :  { %v2197_v21 = vadd.f32 %v2196_v28, %v2076_v63  ;;  %v3477_v53 = vpop.f32.mrb[25].mxu1 }
 0x893   :  { %v5368_v54 = vadd.f32 %v2197_v21, %v5273_v38 }
 0x895   :  { %v2239_v56 = vsel %vm190_vm5, %v5368_v54, 0.0 }
 0x896   :  { %2240 = vadd.xlane.f32.xlu0 %v2239_v56 }
 0x89c   :  { %v2201_v46 = vpop.f32.mrb[26].mxu1 }
 0x89d   :  { %v2202_v31 = vadd.f32 %v2201_v46, %v2076_v63  ;;  %v3480_v37 = vpop.f32.mrb[27].mxu1 }
 0x89f   :  { %v5373_v3 = vadd.f32 %v2202_v31, %v5282_v55 }
 0x8a1   :  { %v2242_v42 = vsel %vm190_vm5, %v5373_v3, 0.0 }
 0x8a2   :  { %2243 = vadd.xlane.f32.xlu1 %v2242_v42  ;;  %v2206_v30 = vpop.f32.mrb[28].mxu1 }
 0x8a3   :  { %v2207_v29 = vadd.f32 %v2206_v30, %v2076_v63  ;;  %v3483_v36 = vpop.f32.mrb[29].mxu1 }
 0x8a4   :  { %v2226_v0 = vpop.xlane.xlu1 %2225 }
 0x8a5   :  { %v5378_v38 = vadd.f32 %v2207_v29, %v5291_v47  ;;  %v2251_v5 = vmul.f32 0.03125, %v2226_v0 }
 0x8a7   :  { %v5380_v45 = vsub.f32 %v2215_v50, %v2251_v5  ;;  %v2245_v23 = vsel %vm190_vm5, %v5378_v38, 0.0  ;;  %v2372_v50 = vld [vmem:[#allocation2 + $0xb8] sm:$0xff] }
 0x8a8   :  { %2246 = vadd.xlane.f32.xlu0 %v2245_v23 }
 0x8a9   :  { %v2269_v55 = vmul.f32 %v5380_v45, %v5380_v45 }
 0x8ab   :  { %v2278_v39 = vsel %vm190_vm5, %v2269_v55, 0.0 }
 0x8ac   :  { %v2211_v57 = vpop.f32.mrb[30].mxu1  ;;  %2279 = vadd.xlane.f32.xlu0 %v2278_v39 }
 0x8ad   :  { %v2212_v51 = vadd.f32 %v2211_v57, %v2076_v63  ;;  %v3486_v49 = vpop.f32.mrb[31].mxu1  ;;  %v2368_v63 = vld [vmem:[#allocation2 + $0x98] sm:$0xff] }
 0x8ae   :  { %v2229_v14 = vpop.xlane.xlu0 %2228  ;;  %v3648_v18 = vpack.c.bf16 %v2368_v63, %v2367_v61  ;;  %v2343_v49 = vsub.s32 5, %v5124_v35 }
 0x8af   :  { %v5388_v47 = vadd.f32 %v2212_v51, %v5300_v20  ;;  %v2252_v11 = vmul.f32 0.03125, %v2229_v14  ;;  %v2371_v20 = vld [vmem:[#allocation2 + $0xb0] sm:$0xff] }
 0x8b0   :  { %v3642_v15 = vpack.c.bf16 %v2372_v50, %v2371_v20  ;;  %3649 = vmatpush3.bf16.msra.mxu1 %v3648_v18  ;;  %v5446_v61 = vrot.slane %v5127_v58, %v2343_v49  ;;  %v2600_v20 = vld [vmem:[#allocation2 + $0xf8] sm:$0xff]  ;;  %v2602_v58 = vld [vmem:[#allocation2 + $0x108] sm:$0xff] }
 0x8b1   :  { %v5390_v17 = vsub.f32 %v2216_v12, %v2252_v11  ;;  %v2248_v48 = vsel %vm190_vm5, %v5388_v47, 0.0  ;;  %3650 = vmatprep.subr.bf16.mxu1 %v5548_v25  ;;  %v3645_v12 = vpack.c.bf16 %v2374_v6, %v2373_v32  ;;  %v2601_v6 = vld [vmem:[#allocation2 + $0x100] sm:$0xff] }
 0x8b2   :  { %2249 = vadd.xlane.f32.xlu1 %v2248_v48  ;;  %3643 = vmatpush3.bf16.msra.mxu0 %v3642_v15  ;;  %v2356_v48 = vsub.s32 6, %v5124_v35  ;;  %v3660_v15 = vpack.c.bf16 %v2600_v20, %v2599_v60 }
 0x8b3   :  { %v2270_v16 = vmul.f32 %v5390_v17, %v5390_v17  ;;  %3644 = vmatprep.subr.bf16.mxu0 %v5548_v25 }
 0x8b4   :  { %3652 = vmatpush3.bf16.msra.mxu1 %v3651_v10  ;;  %v3663_v10 = vpack.c.bf16 %v2602_v58, %v2601_v6 }
 0x8b5   :  { %v2281_v19 = vsel %vm190_vm5, %v2270_v16, 0.0  ;;  %3659 = vmatprep.subr.bf16.mxu1 %v5548_v25 }
 0x8b6   :  { %2282 = vadd.xlane.f32.xlu1 %v2281_v19  ;;  %3646 = vmatpush3.bf16.msra.mxu0 %v3645_v12 }
 0x8b7   :  { %3653 = vmatprep.subr.bf16.mxu0 %v5548_v25 }
 0x8e1   :  { %v2232_v27 = vpop.xlane.xlu1 %2231 }
 0x8e2   :  { %v2253_v43 = vmul.f32 0.03125, %v2232_v27  ;;  %v2521_v27 = vld [vmem:[#allocation2 + $0xd0] sm:$0xff] }
 0x8e4   :  { %v5402_v59 = vsub.f32 %v5353_v41, %v2253_v43  ;;  %v2522_v43 = vld [vmem:[#allocation2 + $0xd8] sm:$0xff] }
 0x8e6   :  { %v2271_v22 = vmul.f32 %v5402_v59, %v5402_v59 }
 0x8e8   :  { %v2284_v33 = vsel %vm190_vm5, %v2271_v22, 0.0 }
 0x8e9   :  { %2285 = vadd.xlane.f32.xlu0 %v2284_v33  ;;  %v3654_v33 = vpack.c.bf16 %v2522_v43, %v2521_v27 }
 0x8fc   :  { %v2235_v24 = vpop.xlane.xlu0 %2234 }
 0x8fd   :  { %v2254_v34 = vmul.f32 0.03125, %v2235_v24 }
 0x8ff   :  { %v5408_v4 = vsub.f32 %v5358_v13, %v2254_v34  ;;  %v2523_v34 = vld [vmem:[#allocation2 + $0xe0] sm:$0xff] }
 0x901   :  { %v2272_v8 = vmul.f32 %v5408_v4, %v5408_v4 }
 0x903   :  { %v2287_v52 = vsel %vm190_vm5, %v2272_v8, 0.0  ;;  %v2524_v8 = vld [vmem:[#allocation2 + $0xe8] sm:$0xff] }
 0x904   :  { %2288 = vadd.xlane.f32.xlu1 %v2287_v52  ;;  %v3657_v52 = vpack.c.bf16 %v2524_v8, %v2523_v34 }
 0x90a   :  { %v2238_v40 = vpop.xlane.xlu1 %2237 }
 0x90b   :  { %v2255_v41 = vmul.f32 0.03125, %v2238_v40 }
 0x90d   :  { %v5414_v26 = vsub.f32 %v5363_v44, %v2255_v41 }
 0x90f   :  { %v2273_v62 = vmul.f32 %v5414_v26, %v5414_v26 }
 0x911   :  { %v2290_v28 = vsel %vm190_vm5, %v2273_v62, 0.0 }
 0x912   :  { %2291 = vadd.xlane.f32.xlu0 %v2290_v28 }
 0x923   :  { %v2241_v21 = vpop.xlane.xlu0 %2240 }
 0x924   :  { %v2256_v13 = vmul.f32 0.03125, %v2241_v21  ;;  %v2677_v21 = vld [vmem:[#allocation2 + $0x110] sm:$0xff] }
 0x926   :  { %v5420_v53 = vsub.f32 %v5368_v54, %v2256_v13  ;;  %v2678_v13 = vld [vmem:[#allocation2 + $0x118] sm:$0xff] }
 0x928   :  { %v2274_v56 = vmul.f32 %v5420_v53, %v5420_v53 }
 0x92a   :  { %v2293_v46 = vsel %vm190_vm5, %v2274_v56, 0.0 }
 0x92b   :  { %2294 = vadd.xlane.f32.xlu1 %v2293_v46  ;;  %v3666_v46 = vpack.c.bf16 %v2678_v13, %v2677_v21 }
 0x92f   :  { %v2244_v31 = vpop.xlane.xlu1 %2243 }
 0x930   :  { %v2257_v44 = vmul.f32 0.03125, %v2244_v31 }
 0x932   :  { %v5426_v37 = vsub.f32 %v5373_v3, %v2257_v44  ;;  %v2679_v44 = vld [vmem:[#allocation2 + $0x120] sm:$0xff] }
 0x934   :  { %v2275_v42 = vmul.f32 %v5426_v37, %v5426_v37 }
 0x935   :  { %v2247_v30 = vpop.xlane.xlu0 %2246 }
 0x936   :  { %v2296_v29 = vsel %vm190_vm5, %v2275_v42, 0.0  ;;  %v2258_v36 = vmul.f32 0.03125, %v2247_v30  ;;  %v2680_v42 = vld [vmem:[#allocation2 + $0x128] sm:$0xff] }
 0x937   :  { %2297 = vadd.xlane.f32.xlu0 %v2296_v29  ;;  %v3669_v30 = vpack.c.bf16 %v2680_v42, %v2679_v44 }
 0x938   :  { %v5432_v54 = vsub.f32 %v5378_v38, %v2258_v36 }
 0x939   :  { %v2280_v0 = vpop.xlane.xlu0 %2279 }
 0x93a   :  { %v2305_v5 = vmul.f32 0.03125, %v2280_v0  ;;  %v2276_v23 = vmul.f32 %v5432_v54, %v5432_v54 }
 0x93c   :  { %v2314_v55 = vadd.f32 1e-05, %v2305_v5  ;;  %v2299_v3 = vsel %vm190_vm5, %v2276_v23, 0.0 }
 0x93d   :  { %2300 = vadd.xlane.f32.xlu1 %v2299_v3  ;;  %v2755_v3 = vld [vmem:[#allocation2 + $0x130] sm:$0xff] }
 0x93e   :  { %3943 = vrsqrt.f32 %v2314_v55 }
 0x93f   :  { %v2250_v39 = vpop.xlane.xlu1 %2249 }
 0x940   :  { %v2259_v57 = vmul.f32 0.03125, %v2250_v39  ;;  %v2756_v39 = vld [vmem:[#allocation2 + $0x138] sm:$0xff] }
 0x942   :  { %v5438_v51 = vsub.f32 %v5388_v47, %v2259_v57  ;;  %v5448_v47 = vld [vmem:[#allocation2 + $0x210] sm:$0xff] }
 0x943   :  { %v2283_v14 = vpop.xlane.xlu1 %2282  ;;  %v5451_v2 = vrot.slane %v5448_v47, %v2356_v48  ;;  %v2758_v48 = vld [vmem:[#allocation2 + $0x148] sm:$0xff] }
 0x944   :  { %v2306_v38 = vmul.f32 0.03125, %v2283_v14  ;;  %v2277_v11 = vmul.f32 %v5438_v51, %v5438_v51  ;;  %v3672_v14 = vpack.c.bf16 %v2756_v39, %v2755_v3 }
 0x946   :  { %v2315_v16 = vadd.f32 1e-05, %v2306_v38  ;;  %v2302_v19 = vsel %vm190_vm5, %v2277_v11, 0.0  ;;  %v2757_v11 = vld [vmem:[#allocation2 + $0x140] sm:$0xff] }
 0x947   :  { %2303 = vadd.xlane.f32.xlu0 %v2302_v19 }
 0x948   :  { %v3944_v63 = vpop.eup %3943  ;;  %3945 = vrsqrt.f32 %v2315_v16  ;;  %v3675_v16 = vpack.c.bf16 %v2758_v48, %v2757_v11 }
 0x949   :  { %v2332_v18 = vmul.f32 %v3944_v63, %v5380_v45  ;;  %v2833_v63 = vld [vmem:[#allocation2 + $0x150] sm:$0xff] }
 0x94b   :  { %v2345_v50 = vmul.f32 %v5446_v61, %v2332_v18  ;;  %v2834_v18 = vld [vmem:[#allocation2 + $0x158] sm:$0xff] }
 0x94c   :  { %v3678_v20 = vpack.c.bf16 %v2834_v18, %v2833_v63  ;;  %v3075_v63 = vld [vmem:[#allocation2 + $0x1c0] sm:$0xff] }
 0x94d   :  { %v2358_v32 = vadd.f32 %v5451_v2, %v2345_v50 }
 0x94f   :  { %3507 = vmatmul.mubr.msk.f32.vlgmr.msra.gmra.mrb[32].mxu1 %vm190_vm5, %v2358_v32  ;;  %v2836_v32 = vld [vmem:[#allocation2 + $0x168] sm:$0xff] }
 0x950   :  { %3661 = vmatpush3.bf16.msra.mxu1 %v3660_v15  ;;  %3528 = vmatprep.mubr.msk.f32.mxu1 %vm4016_vm0, %v5547_v7  ;;  %v2835_v15 = vld [vmem:[#allocation2 + $0x160] sm:$0xff] }
 0x951   :  { %3662 = vmatprep.subr.bf16.mxu1 %v5548_v25  ;;  %v3681_v6 = vpack.c.bf16 %v2836_v32, %v2835_v15  ;;  %v3081_v32 = vld [vmem:[#allocation2 + $0x1f0] sm:$0xff] }
 0x952   :  { %v3946_v12 = vpop.eup %3945 }
 0x953   :  { %v2333_v45 = vmul.f32 %v3946_v12, %v5390_v17 }
 0x954   :  { %3664 = vmatpush3.bf16.msra.mxu1 %v3663_v10 }
 0x955   :  { %v2346_v22 = vmul.f32 %v5446_v61, %v2333_v45  ;;  %3671 = vmatprep.subr.bf16.mxu1 %v5548_v25 }
 0x957   :  { %v2359_v24 = vadd.f32 %v5451_v2, %v2346_v22 }
 0x959   :  { %3496 = vmatmul.mubr.msk.f32.vlgmr.msra.gmra.mrb[40].mxu0 %vm190_vm5, %v2359_v24  ;;  %v2912_v24 = vld [vmem:[#allocation2 + $0x178] sm:$0xff] }
 0x95a   :  { %3655 = vmatpush3.bf16.msra.mxu0 %v3654_v33  ;;  %3517 = vmatprep.mubr.msk.f32.mxu0 %vm4016_vm0, %v5547_v7  ;;  %v2911_v33 = vld [vmem:[#allocation2 + $0x170] sm:$0xff] }
 0x95b   :  { %3656 = vmatprep.subr.bf16.mxu0 %v5548_v25 }
 0x95e   :  { %3658 = vmatpush3.bf16.msra.mxu0 %v3657_v52 }
 0x95f   :  { %3665 = vmatprep.subr.bf16.mxu0 %v5548_v25 }
 0x976   :  { %v2286_v17 = vpop.xlane.xlu0 %2285 }
 0x977   :  { %v2307_v40 = vmul.f32 0.03125, %v2286_v17  ;;  %v3684_v17 = vpack.c.bf16 %v2912_v24, %v2911_v33 }
 0x979   :  { %v2316_v41 = vadd.f32 1e-05, %v2307_v40 }
 0x97b   :  { %3947 = vrsqrt.f32 %v2316_v41 }
 0x985   :  { %v3948_v62 = vpop.eup %3947 }
 0x986   :  { %v2334_v28 = vmul.f32 %v3948_v62, %v5402_v59  ;;  %v2913_v62 = vld [vmem:[#allocation2 + $0x180] sm:$0xff] }
 0x988   :  { %v2347_v56 = vmul.f32 %v5446_v61, %v2334_v28  ;;  %v2914_v28 = vld [vmem:[#allocation2 + $0x188] sm:$0xff] }
 0x989   :  { %v3687_v21 = vpack.c.bf16 %v2914_v28, %v2913_v62 }
 0x98a   :  { %v2360_v31 = vadd.f32 %v5451_v2, %v2347_v56 }
 0x98c   :  { %3518 = vmatmul.mubr.msk.f32.vlgmr.msra.gmra.mrb[42].mxu0 %vm190_vm5, %v2360_v31  ;;  %v2990_v31 = vld [vmem:[#allocation2 + $0x198] sm:$0xff] }
 0x98d   :  { %3667 = vmatpush3.bf16.msra.mxu0 %v3666_v46  ;;  %3539 = vmatprep.mubr.msk.f32.mxu0 %vm4016_vm0, %v5547_v7  ;;  %v2989_v46 = vld [vmem:[#allocation2 + $0x190] sm:$0xff] }
 0x98e   :  { %3668 = vmatprep.subr.bf16.mxu0 %v5548_v25 }
 0x991   :  { %v2289_v29 = vpop.xlane.xlu1 %2288  ;;  %3670 = vmatpush3.bf16.msra.mxu0 %v3669_v30 }
 0x992   :  { %v2308_v59 = vmul.f32 0.03125, %v2289_v29  ;;  %3677 = vmatprep.subr.bf16.mxu0 %v5548_v25  ;;  %v3690_v29 = vpack.c.bf16 %v2990_v31, %v2989_v46 }
 0x994   :  { %v2317_v36 = vadd.f32 1e-05, %v2308_v59 }
 0x996   :  { %3949 = vrsqrt.f32 %v2317_v36  ;;  %v2991_v36 = vld [vmem:[#allocation2 + $0x1a0] sm:$0xff] }
 0x99f   :  { %v2292_v0 = vpop.xlane.xlu0 %2291 }
 0x9a0   :  { %v3950_v5 = vpop.eup %3949  ;;  %v2309_v23 = vmul.f32 0.03125, %v2292_v0  ;;  %v2992_v0 = vld [vmem:[#allocation2 + $0x1a8] sm:$0xff] }
 0x9a1   :  { %v2335_v55 = vmul.f32 %v3950_v5, %v5408_v4 }
 0x9a2   :  { %v2318_v57 = vadd.f32 1e-05, %v2309_v23 }
 0x9a3   :  { %v2348_v49 = vmul.f32 %v5446_v61, %v2335_v55 }
 0x9a4   :  { %3951 = vrsqrt.f32 %v2318_v57 }
 0x9a5   :  { %v2361_v38 = vadd.f32 %v5451_v2, %v2348_v49 }
 0x9a7   :  { %3529 = vmatmul.mubr.msk.f32.vlgmr.msra.gmra.mrb[34].mxu1 %vm190_vm5, %v2361_v38 }
 0x9a8   :  { %3673 = vmatpush3.bf16.msra.mxu1 %v3672_v14  ;;  %3550 = vmatprep.mubr.msk.f32.mxu1 %vm4016_vm0, %v5547_v7 }
 0x9a9   :  { %3674 = vmatprep.subr.bf16.mxu1 %v5548_v25 }
 0x9ac   :  { %3676 = vmatpush3.bf16.msra.mxu1 %v3675_v16 }
 0x9ad   :  { %3683 = vmatprep.subr.bf16.mxu1 %v5548_v25 }
 0x9ae   :  { %v3952_v4 = vpop.eup %3951 }
 0x9af   :  { %v2336_v19 = vmul.f32 %v3952_v4, %v5414_v26  ;;  %v3073_v4 = vld [vmem:[#allocation2 + $0x1b0] sm:$0xff] }
 0x9b1   :  { %v2349_v60 = vmul.f32 %v5446_v61, %v2336_v19  ;;  %v3074_v19 = vld [vmem:[#allocation2 + $0x1b8] sm:$0xff] }
 0x9b2   :  { %v3696_v18 = vpack.c.bf16 %v3074_v19, %v3073_v4 }
 0x9b3   :  { %v2362_v50 = vadd.f32 %v5451_v2, %v2349_v60  ;;  %v3076_v60 = vld [vmem:[#allocation2 + $0x1c8] sm:$0xff] }
 0x9b5   :  { %3540 = vmatmul.mubr.msk.f32.vlgmr.msra.gmra.mrb[44].mxu0 %vm190_vm5, %v2362_v50  ;;  %v3080_v50 = vld [vmem:[#allocation2 + $0x1e8] sm:$0xff] }
 0x9b6   :  { %3679 = vmatpush3.bf16.msra.mxu0 %v3678_v20  ;;  %3561 = vmatprep.mubr.msk.f32.mxu0 %vm4016_vm0, %v5547_v7  ;;  %v3079_v20 = vld [vmem:[#allocation2 + $0x1e0] sm:$0xff] }
 0x9b7   :  { %3680 = vmatprep.subr.bf16.mxu0 %v5548_v25  ;;  %v3705_v15 = vpack.c.bf16 %v3080_v50, %v3079_v20 }
 0x9b8   :  { %v2295_v58 = vpop.xlane.xlu1 %2294 }
 0x9b9   :  { %v2310_v26 = vmul.f32 0.03125, %v2295_v58  ;;  %v3083_v58 = vld [vmem:[#allocation2 + $0x200] sm:$0xff] }
 0x9ba   :  { %3682 = vmatpush3.bf16.msra.mxu0 %v3681_v6  ;;  %v3082_v6 = vld [vmem:[#allocation2 + $0x1f8] sm:$0xff] }
 0x9bb   :  { %3689 = vmatprep.subr.bf16.mxu0 %v5548_v25  ;;  %v2319_v10 = vadd.f32 1e-05, %v2310_v26  ;;  %v3708_v26 = vpack.c.bf16 %v3082_v6, %v3081_v32 }
 0x9bd   :  { %3953 = vrsqrt.f32 %v2319_v10  ;;  %v3084_v10 = vld [vmem:[#allocation2 + $0x208] sm:$0xff] }
 0x9c4   :  { %v2298_v12 = vpop.xlane.xlu0 %2297 }
 0x9c5   :  { %v2311_v45 = vmul.f32 0.03125, %v2298_v12  ;;  %v3711_v12 = vpack.c.bf16 %v3084_v10, %v3083_v58 }
 0x9c7   :  { %v2320_v27 = vadd.f32 1e-05, %v2311_v45  ;;  %v3954_v43 = vpop.eup %3953 }
 0x9c8   :  { %v2337_v22 = vmul.f32 %v3954_v43, %v5420_v53 }
 0x9c9   :  { %3955 = vrsqrt.f32 %v2320_v27 }
 0x9ca   :  { %v2301_v34 = vpop.xlane.xlu1 %2300  ;;  %v2350_v8 = vmul.f32 %v5446_v61, %v2337_v22 }
 0x9cb   :  { %v2312_v52 = vmul.f32 0.03125, %v2301_v34 }
 0x9cc   :  { %v2363_v40 = vadd.f32 %v5451_v2, %v2350_v8 }
 0x9cd   :  { %v2321_v41 = vadd.f32 1e-05, %v2312_v52 }
 0x9ce   :  { %3551 = vmatmul.mubr.msk.f32.vlgmr.msra.gmra.mrb[36].mxu1 %vm190_vm5, %v2363_v40 }
 0x9cf   :  { %3957 = vrsqrt.f32 %v2321_v41  ;;  %3685 = vmatpush3.bf16.msra.mxu1 %v3684_v17  ;;  %3572 = vmatprep.mubr.msk.f32.mxu1 %vm4016_vm0, %v5547_v7 }
 0x9d0   :  { %3686 = vmatprep.subr.bf16.mxu1 %v5548_v25 }
 0x9d3   :  { %v3956_v53 = vpop.eup %3955  ;;  %3688 = vmatpush3.bf16.msra.mxu1 %v3687_v21 }
 0x9d4   :  { %v2338_v13 = vmul.f32 %v3956_v53, %v5426_v37  ;;  %v2304_v56 = vpop.xlane.xlu0 %2303  ;;  %3695 = vmatprep.subr.bf16.mxu1 %v5548_v25  ;;  %v3693_v37 = vpack.c.bf16 %v2992_v0, %v2991_v36 }
 0x9d5   :  { %v2313_v44 = vmul.f32 0.03125, %v2304_v56 }
 0x9d6   :  { %v2351_v42 = vmul.f32 %v5446_v61, %v2338_v13 }
 0x9d7   :  { %v2322_v30 = vadd.f32 1e-05, %v2313_v44 }
 0x9d8   :  { %v2364_v59 = vadd.f32 %v5451_v2, %v2351_v42 }
 0x9d9   :  { %v3958_v5 = vpop.eup %3957  ;;  %3959 = vrsqrt.f32 %v2322_v30 }
 0x9da   :  { %v2339_v23 = vmul.f32 %v3958_v5, %v5432_v54  ;;  %3562 = vmatmul.mubr.msk.f32.vlgmr.msra.gmra.mrb[46].mxu0 %vm190_vm5, %v2364_v59  ;;  %v27_v59 = vld [vmem:[#allocation2 + $0x218] sm:$0xff] }
 0x9db   :  { %3691 = vmatpush3.bf16.msra.mxu0 %v3690_v29  ;;  %3583 = vmatprep.mubr.msk.f32.mxu0 %vm4016_vm0, %v5547_v7  ;;  %v3088_v36 = vrot.slane %v27_v59, %v1529_v9 }
 0x9dc   :  { %v2352_v55 = vmul.f32 %v5446_v61, %v2339_v23  ;;  %3692 = vmatprep.subr.bf16.mxu0 %v5548_v25 }
 0x9de   :  { %v2365_v3 = vadd.f32 %v5451_v2, %v2352_v55 }
 0x9df   :  { %3694 = vmatpush3.bf16.msra.mxu0 %v3693_v37  ;;  %v3164_v37 = vand.u32 127, %v1527_v1 }
 0x9e0   :  { %3573 = vmatmul.mubr.msk.f32.vlgmr.msra.gmra.mrb[38].mxu1 %vm190_vm5, %v2365_v3 }
 0x9e1   :  { %3610 = vmatprep.mubr.msk.f32.mxu1 %vm4016_vm0, %v5547_v7  ;;  %3697 = vmatpush3.bf16.msra.mxu1 %v3696_v18  ;;  %v3699_v7 = vpack.c.bf16 %v3076_v60, %v3075_v63  ;;  %vm3165_vm8 = vcmp.eq.s32.totalorder %v3164_v37, 9 }
 0x9e2   :  { %3698 = vmatprep.subr.bf16.mxu1 %v5548_v25 }
 0x9e3   :  { %v3960_v54 = vpop.eup %3959 }
 0x9e4   :  { %v2340_v39 = vmul.f32 %v3960_v54, %v5438_v51  ;;  %v3077_v51 = vld [vmem:[#allocation2 + $0x1d0] sm:$0xff] }
 0x9e5   :  { %3700 = vmatpush3.bf16.msra.mxu1 %v3699_v7 }
 0x9e6   :  { %v2353_v57 = vmul.f32 %v5446_v61, %v2340_v39  ;;  %v3078_v61 = vld [vmem:[#allocation2 + $0x1d8] sm:$0xff]  ;;  %3701 = vmatprep.subr.bf16.mxu1 %v5548_v25 }
 0x9e8   :  { %v2366_v49 = vadd.f32 %v5451_v2, %v2353_v57  ;;  %v3702_v2 = vpack.c.bf16 %v3078_v61, %v3077_v51 }
 0x9ea   :  { %3584 = vmatmul.mubr.msk.f32.vlgmr.msra.gmra.mrb[48].mxu0 %vm190_vm5, %v2366_v49  ;;  %3703 = vmatpush3.bf16.msra.mxu1 %v3702_v2 }
 0x9eb   :  { %3704 = vmatprep.subr.bf16.mxu1 %v5548_v25 }
 0x9ee   :  { %3706 = vmatpush3.bf16.msra.mxu1 %v3705_v15 }
 0x9ef   :  { %3707 = vmatprep.subr.bf16.mxu1 %v5548_v25 }
 0x9f2   :  { %3709 = vmatpush3.bf16.msra.mxu1 %v3708_v26 }
 0x9f3   :  { %3710 = vmatprep.subr.bf16.mxu1 %v5548_v25  ;;  %v3069_v25 = vsub.s32 7, %v5124_v35 }
 0x9f5   :  { %v3070_v46 = vrot.slane %v5448_v47, %v3069_v25 }
 0x9f6   :  { %3712 = vmatpush3.bf16.msra.mxu1 %v3711_v12 }
 0xa22   :  { %v2517_v14 = vpop.f32.mrb[32].mxu1 }
 0xa23   :  { %v3508_v38 = vpop.f32.mrb[33].mxu1 }
 0xa2c   :  { %v2444_v11 = vpop.f32.mrb[40].mxu0 }
 0xa2d   :  { %v2518_v48 = vadd.f32 %v2517_v14, %v2444_v11  ;;  %v3497_v16 = vpop.f32.mrb[41].mxu0 }
 0xa5f   :  { %v2594_v45 = vpop.f32.mrb[42].mxu0 }
 0xa60   :  { %v2598_v27 = vadd.f32 %v2594_v45, %v2518_v48  ;;  %v3519_v43 = vpop.f32.mrb[43].mxu0 }
 0xa7a   :  { %v2672_v22 = vpop.f32.mrb[34].mxu1 }
 0xa7b   :  { %v2676_v33 = vadd.f32 %v2672_v22, %v2598_v27  ;;  %v3530_v24 = vpop.f32.mrb[35].mxu1 }
 0xa88   :  { %v2750_v34 = vpop.f32.mrb[44].mxu0 }
 0xa89   :  { %v2754_v8 = vadd.f32 %v2750_v34, %v2676_v33  ;;  %v3541_v52 = vpop.f32.mrb[45].mxu0 }
 0xaa1   :  { %v2828_v17 = vpop.f32.mrb[36].mxu1 }
 0xaa2   :  { %v2832_v40 = vadd.f32 %v2828_v17, %v2754_v8  ;;  %v3552_v41 = vpop.f32.mrb[37].mxu1 }
 0xaad   :  { %v2906_v62 = vpop.f32.mrb[46].mxu0 }
 0xaae   :  { %v2910_v28 = vadd.f32 %v2906_v62, %v2832_v40  ;;  %v3563_v21 = vpop.f32.mrb[47].mxu0 }
 0xab3   :  { %v2984_v53 = vpop.f32.mrb[38].mxu1 }
 0xab4   :  { %v2988_v13 = vadd.f32 %v2984_v53, %v2910_v28  ;;  %v3574_v56 = vpop.f32.mrb[39].mxu1 }
 0xabd   :  { %v3062_v31 = vpop.f32.mrb[48].mxu0 }
 0xabe   :  { %v3066_v44 = vadd.f32 %v3062_v31, %v2988_v13  ;;  %v3585_v42 = vpop.f32.mrb[49].mxu0 }
 0xac0   :  { %v3071_v30 = vadd.f32 %v3070_v46, %v3066_v44 }
 0xac2   :  { %v3072_v29 = vmax.f32 %v3071_v30, 0.0 }
 0xac4   :  { %3611 = vmatmul.mubr.msk.f32.vlgmr.msra.gmra.mrb[40].mxu1 %vm3089_vm7, %v3072_v29 }
 0xb97   :  { %v3159_v0 = vpop.f32.mrb[40].mxu1 }
 0xb98   :  { %v3160_v5 = vadd.f32 %v3159_v0, %v3088_v36  ;;  %v3612_v23 = vpop.f32.mrb[41].mxu1 }
 0xb9a   :  { %3961 = vtanh.f32 %v3160_v5 }
 0xba4   :  { %v3962_v47 = vpop.eup %3961 }
 0xba5   :  { %v3167_v55 = vsel %vm3165_vm8, %v3962_v47, %v3160_v5 }
 0xba6   :  { %3168 = vst [vmem:[#allocation5] sm:$0xff] %v3167_v55 }
 0xba7   :  { %3997 = shalt.err (!%p3994_p12)
}
 0xba8   :  { %s3998_s18 = scalar_lea.hbm %s5542_s2, 128 }
 0xba9   :  { %p3999_p13 = scmp.ne.s32.totalorder %s5542_s2, %s3998_s18  ;;  %p4002_p0 = scmp.lt.u32.totalorder %s3998_s18, %s5542_s2 }
 0xbab   :  { %p4004_p1 = pnand %p4002_p0, %p3999_p13 }
 0xbad   :  { %4007 = shalt.err (!%p4004_p1)
}
 0xbae   :  { %3178 = dma.vmem_to_hbm [thread:$0]  %s3176_s14, 128, %s5542_s2, [#allocation4]  }
 0xbaf   :  { %4010 = dma.done.wait [#allocation4], 128  }
 0xbb0   :  { %4011 = vsyncadd [#allocation4], 4294967168 }
 0xbb1   :  { %3182 = vsyncpa [#allocation3], 1 }
 0xbb2   :  { %3183 = vsyncpa [#allocation4], 1 }

</bundles_post_ra>
